<compile_context>
chip_gen: v5e
topology: v5e:2x2
jax: 0.10.0
libtpu: 0.0.40
codegen_flags: <defaults>
</compile_context>

<pallas_src>
import functools

import jax
import jax.numpy as jnp
from jax.experimental import pallas as pl
from jax.experimental.pallas import tpu as pltpu

BETA = 0.5         # leak factor (no effect on a single step from zero hidden state)
THRESHOLD = 1.0    # snn.Leaky default threshold

# Network geometry implied by Linear(32*5*5, 10)  (N-MNIST style 2x34x34 input)
IN_C, IN_H, IN_W = 2, 34, 34
KSZ = 5
C1, C2 = 12, 32
CONV1_O = IN_H - KSZ + 1        # 30
POOL1_O = CONV1_O // 2          # 15
CONV2_O = POOL1_O - KSZ + 1     # 11
POOL2_O = CONV2_O // 2          # 5
NCLS = 10


# ---------------------- host-side (traced) weight re-layout ----------------------

def _conv_band_mats(w, w_in):
    """w: (Cout, Cin, KH, KW) -> (KH, w_in*Cin, w_out*Cout) banded block-Toeplitz
    matrices.  Matrix kh maps lanes (col*Cin + ci) of one input-row slab to lanes
    (ocol*Cout + co) of one conv-output row."""
    cout, cin, ksz_h, ksz_w = w.shape
    w_out = w_in - ksz_w + 1
    mats = []
    for kh in range(ksz_h):
        m = jnp.zeros((w_in * cin, w_out * cout), jnp.float32)
        for kw in range(ksz_w):
            m = m + jnp.kron(jnp.eye(w_in, w_out, k=-kw, dtype=jnp.float32),
                             w[:, :, kh, kw].T)
        mats.append(m)
    return jnp.stack(mats)


def _pool_w_mats(w_out, ch):
    """0/1 matrices selecting even / odd output columns (lane-block selection):
    shape (2, w_out*ch, (w_out//2)*ch)."""
    wp = w_out // 2
    cols = jnp.arange(w_out)[:, None]
    even = (cols == 2 * jnp.arange(wp)[None, :]).astype(jnp.float32)
    odd = (cols == 2 * jnp.arange(wp)[None, :] + 1).astype(jnp.float32)
    eye_c = jnp.eye(ch, dtype=jnp.float32)
    return jnp.stack([jnp.kron(even, eye_c), jnp.kron(odd, eye_c)])


def _pool_h_mats(h_out):
    """0/1 matrices selecting even / odd rows (applied from the left):
    shape (2, h_out//2, h_out)."""
    hp = h_out // 2
    rows = jnp.arange(hp)[:, None]
    even = (2 * rows == jnp.arange(h_out)[None, :]).astype(jnp.float32)
    odd = (2 * rows + 1 == jnp.arange(h_out)[None, :]).astype(jnp.float32)
    return jnp.stack([even, odd])


def _zero_block_index(rank, *_grid_indices):
    return (0,) * rank


def _whole_array_spec(a):
    return pl.BlockSpec(a.shape, functools.partial(_zero_block_index, a.ndim))


# ---------------------- fused forward (one pallas_call, batch on the grid) ----------------------

def _net_kernel(x_ref, m1_ref, b1_ref, s1w_ref, s1h_ref,
                m2_ref, b2_ref, s2w_ref, s2h_ref, wfc_ref, bfc_ref,
                spk_ref, mem_ref):
    x = x_ref[0]                                           # (34, 68) one batch element

    # ---- Conv2d(2,12,5): 5 banded block-Toeplitz matmuls (one per kernel row) ----
    acc1 = jnp.zeros((CONV1_O, CONV1_O * C1), jnp.float32)
    for kh in range(KSZ):
        acc1 = acc1 + jnp.dot(x[kh:kh + CONV1_O, :], m1_ref[kh],
                              preferred_element_type=jnp.float32)
    y1 = acc1 + b1_ref[...]                                # (30, 360)

    # ---- MaxPool2d(2) via 0/1-selection matmuls, then Leaky threshold ----
    pw1 = jnp.maximum(
        jnp.dot(y1, s1w_ref[0], preferred_element_type=jnp.float32),
        jnp.dot(y1, s1w_ref[1], preferred_element_type=jnp.float32))
    pooled1 = jnp.maximum(
        jnp.dot(s1h_ref[0], pw1, preferred_element_type=jnp.float32),
        jnp.dot(s1h_ref[1], pw1, preferred_element_type=jnp.float32))
    spk1 = (pooled1 > THRESHOLD).astype(jnp.float32)       # (15, 180)

    # ---- Conv2d(12,32,5) ----
    acc2 = jnp.zeros((CONV2_O, CONV2_O * C2), jnp.float32)
    for kh in range(KSZ):
        acc2 = acc2 + jnp.dot(spk1[kh:kh + CONV2_O, :], m2_ref[kh],
                              preferred_element_type=jnp.float32)
    y2 = acc2 + b2_ref[...]                                # (11, 352)

    pw2 = jnp.maximum(
        jnp.dot(y2, s2w_ref[0], preferred_element_type=jnp.float32),
        jnp.dot(y2, s2w_ref[1], preferred_element_type=jnp.float32))
    pooled2 = jnp.maximum(
        jnp.dot(s2h_ref[0], pw2, preferred_element_type=jnp.float32),
        jnp.dot(s2h_ref[1], pw2, preferred_element_type=jnp.float32))
    spk2 = (pooled2 > THRESHOLD).astype(jnp.float32)       # (5, 160)

    # ---- Linear(800, 10) + output Leaky (flatten order folded into wfc layout) ----
    mem3 = bfc_ref[...]                                    # (1, 10)
    for h in range(POOL2_O):
        mem3 = mem3 + jnp.dot(spk2[h:h + 1, :], wfc_ref[h],
                              preferred_element_type=jnp.float32)
    mem_ref[0] = mem3
    spk_ref[0] = (mem3 > THRESHOLD).astype(jnp.float32)


def net_forward(x_nchw, params):
    w1, b1, w2, b2, wfc, bfc = params
    f32 = jnp.float32
    B = x_nchw.shape[0]

    # Activation layout: rows = image row, lanes = (image col, channel), batch leading.
    x3d = x_nchw.astype(f32).transpose(0, 2, 3, 1).reshape(B, IN_H, IN_W * IN_C)

    m1 = _conv_band_mats(w1.astype(f32), IN_W)        # (5,  68, 360)
    m2 = _conv_band_mats(w2.astype(f32), POOL1_O)     # (5, 180, 352)
    b1row = jnp.tile(b1.astype(f32), CONV1_O).reshape(1, CONV1_O * C1)   # (1, 360)
    b2row = jnp.tile(b2.astype(f32), CONV2_O).reshape(1, CONV2_O * C2)   # (1, 352)
    s1w = _pool_w_mats(CONV1_O, C1)                   # (2, 360, 180)
    s1h = _pool_h_mats(CONV1_O)                       # (2,  15,  30)
    s2w = _pool_w_mats(CONV2_O, C2)                   # (2, 352, 160)
    s2h = _pool_h_mats(CONV2_O)                       # (2,   5,  11)
    # PyTorch flatten order (c, h, w) folded into the FC weight layout:
    # wfc3[h, w*32 + c, n] = wfc[n, c*25 + h*5 + w]
    wfc3 = (wfc.astype(f32).reshape(NCLS, C2, POOL2_O, POOL2_O)
            .transpose(2, 3, 1, 0).reshape(POOL2_O, POOL2_O * C2, NCLS))
    bfcrow = bfc.astype(f32).reshape(1, NCLS)

    weights = (m1, b1row, s1w, s1h, m2, b2row, s2w, s2h, wfc3, bfcrow)

    x_spec = pl.BlockSpec((1, IN_H, IN_W * IN_C), lambda b: (b, 0, 0))
    out_spec = pl.BlockSpec((1, 1, NCLS), lambda b: (b, 0, 0))

    spk, mem = pl.pallas_call(
        _net_kernel,
        grid=(B,),
        out_shape=(jax.ShapeDtypeStruct((B, 1, NCLS), f32),
                   jax.ShapeDtypeStruct((B, 1, NCLS), f32)),
        in_specs=[x_spec] + [_whole_array_spec(a) for a in weights],
        out_specs=(out_spec, out_spec),
        compiler_params=pltpu.CompilerParams(
            dimension_semantics=("parallel",)),
    )(x3d, *weights)
    return spk.reshape(B, NCLS), mem.reshape(B, NCLS)


# ---------------------- pure-JAX reference (for in-script verification) ----------------------

def _reference_forward(x, params):
    w1, b1, w2, b2, wfc, bfc = params
    hi = jax.lax.Precision.HIGHEST

    def conv(a, w, b):
        y = jax.lax.conv_general_dilated(
            a, w, window_strides=(1, 1), padding='VALID',
            dimension_numbers=('NCHW', 'OIHW', 'NCHW'), precision=hi)
        return y + b.reshape(1, -1, 1, 1)

    def pool(a):
        return jax.lax.reduce_window(a, -jnp.inf, jax.lax.max,
                                     (1, 1, 2, 2), (1, 1, 2, 2), 'VALID')

    s1 = (pool(conv(x, w1, b1)) > THRESHOLD).astype(jnp.float32)
    s2 = (pool(conv(s1, w2, b2)) > THRESHOLD).astype(jnp.float32)
    mem = jnp.dot(s2.reshape(x.shape[0], -1), wfc.T, precision=hi) + bfc
    spk = (mem > THRESHOLD).astype(jnp.float32)
    return spk, mem


if __name__ == "__main__":
    key = jax.random.PRNGKey(0)
    kx, kp = jax.random.split(key)

    # N-MNIST style input implied by Linear(32*5*5, 10): (B, 2, 34, 34)
    x = jax.random.bernoulli(kx, 0.3, (2, IN_C, IN_H, IN_W)).astype(jnp.float32)

    def uinit(k, shape, fan_in):
        bound = 1.0 / (fan_in ** 0.5)
        return jax.random.uniform(k, shape, jnp.float32, -bound, bound)

    ks = jax.random.split(kp, 6)
    w1 = uinit(ks[0], (C1, IN_C, KSZ, KSZ), IN_C * KSZ * KSZ)
    b1 = uinit(ks[1], (C1,), IN_C * KSZ * KSZ)
    w2 = uinit(ks[2], (C2, C1, KSZ, KSZ), C1 * KSZ * KSZ)
    b2 = uinit(ks[3], (C2,), C1 * KSZ * KSZ)
    wfc = uinit(ks[4], (NCLS, C2 * POOL2_O * POOL2_O), C2 * POOL2_O * POOL2_O)
    bfc = uinit(ks[5], (NCLS,), C2 * POOL2_O * POOL2_O)
    params = (w1, b1, w2, b2, wfc, bfc)

    spk, mem = jax.jit(net_forward)(x, params)
    jax.block_until_ready((spk, mem))

    assert spk.shape == (2, NCLS) and mem.shape == (2, NCLS)
    assert spk.dtype == jnp.float32 and mem.dtype == jnp.float32

    spk_want, mem_want = _reference_forward(x, params)
    assert bool(jnp.allclose(mem, mem_want, rtol=1e-4, atol=1e-4)), "membrane mismatch"
    assert bool(jnp.array_equal(spk, spk_want)), "spike mismatch"

    print("KERNEL_OK")
</pallas_src>

<mosaic_0001>
module attributes {stable_mosaic.version = 11 : i64} {
  func.func @_net_kernel(%arg0: i32, %arg1: memref<1x34x68xf32, #tpu.memory_space<vmem>>, %arg2: memref<5x68x360xf32, #tpu.memory_space<vmem>>, %arg3: memref<1x360xf32, #tpu.memory_space<vmem>>, %arg4: memref<2x360x180xf32, #tpu.memory_space<vmem>>, %arg5: memref<2x15x30xf32, #tpu.memory_space<vmem>>, %arg6: memref<5x180x352xf32, #tpu.memory_space<vmem>>, %arg7: memref<1x352xf32, #tpu.memory_space<vmem>>, %arg8: memref<2x352x160xf32, #tpu.memory_space<vmem>>, %arg9: memref<2x5x11xf32, #tpu.memory_space<vmem>>, %arg10: memref<5x160x10xf32, #tpu.memory_space<vmem>>, %arg11: memref<1x10xf32, #tpu.memory_space<vmem>>, %arg12: memref<1x1x10xf32, #tpu.memory_space<vmem>>, %arg13: memref<1x1x10xf32, #tpu.memory_space<vmem>>) attributes {dimension_semantics = [#tpu.dimension_semantics<parallel>], iteration_bounds = array<i64: 2>, scalar_prefetch = 0 : i64, scratch_operands = 0 : i64, tpu.core_type = #tpu.core_type<tc>, window_params = [{transform_indices = @transform_0, window_bounds = array<i64: 1, 34, 68>}, {pipeline_mode = #tpu.pipeline_mode<synchronous>, transform_indices = @transform_1, window_bounds = array<i64: 5, 68, 360>}, {pipeline_mode = #tpu.pipeline_mode<synchronous>, transform_indices = @transform_2, window_bounds = array<i64: 1, 360>}, {pipeline_mode = #tpu.pipeline_mode<synchronous>, transform_indices = @transform_3, window_bounds = array<i64: 2, 360, 180>}, {pipeline_mode = #tpu.pipeline_mode<synchronous>, transform_indices = @transform_4, window_bounds = array<i64: 2, 15, 30>}, {pipeline_mode = #tpu.pipeline_mode<synchronous>, transform_indices = @transform_5, window_bounds = array<i64: 5, 180, 352>}, {pipeline_mode = #tpu.pipeline_mode<synchronous>, transform_indices = @transform_6, window_bounds = array<i64: 1, 352>}, {pipeline_mode = #tpu.pipeline_mode<synchronous>, transform_indices = @transform_7, window_bounds = array<i64: 2, 352, 160>}, {pipeline_mode = #tpu.pipeline_mode<synchronous>, transform_indices = @transform_8, window_bounds = array<i64: 2, 5, 11>}, {pipeline_mode = #tpu.pipeline_mode<synchronous>, transform_indices = @transform_9, window_bounds = array<i64: 5, 160, 10>}, {pipeline_mode = #tpu.pipeline_mode<synchronous>, transform_indices = @transform_10, window_bounds = array<i64: 1, 10>}, {transform_indices = @transform_11, window_bounds = array<i64: 1, 1, 10>}, {transform_indices = @transform_12, window_bounds = array<i64: 1, 1, 10>}]} {
    %c0 = arith.constant 0 : index
    %c0_0 = arith.constant 0 : index
    %c0_1 = arith.constant 0 : index
    %0 = vector.load %arg1[%c0, %c0_0, %c0_1] : memref<1x34x68xf32, #tpu.memory_space<vmem>>, vector<1x34x68xf32>
    %1 = vector.shape_cast %0 : vector<1x34x68xf32> to vector<34x68xf32>
    %cst = arith.constant 0.000000e+00 : f32
    %2 = vector.broadcast %cst : f32 to vector<30x360xf32>
    %3 = vector.extract_strided_slice %1 {offsets = [0, 0], sizes = [30, 68], strides = [1, 1]} : vector<34x68xf32> to vector<30x68xf32>
    %c0_2 = arith.constant 0 : index
    %c0_3 = arith.constant 0 : index
    %c0_4 = arith.constant 0 : index
    %4 = vector.load %arg2[%c0_2, %c0_3, %c0_4] : memref<5x68x360xf32, #tpu.memory_space<vmem>>, vector<1x68x360xf32>
    %5 = vector.shape_cast %4 : vector<1x68x360xf32> to vector<68x360xf32>
    %cst_5 = arith.constant dense<0.000000e+00> : vector<30x360xf32>
    %6 = tpu.matmul %3, %5, %cst_5 {dimension_numbers = #tpu.dot_dimension_numbers<[1], [0], [0], [1], [0, 0, 1, 1], [], []>} : vector<30x68xf32>, vector<68x360xf32>, vector<30x360xf32> -> vector<30x360xf32>
    %7 = arith.addf %2, %6 : vector<30x360xf32>
    %8 = vector.extract_strided_slice %1 {offsets = [1, 0], sizes = [30, 68], strides = [1, 1]} : vector<34x68xf32> to vector<30x68xf32>
    %c1 = arith.constant 1 : index
    %c0_6 = arith.constant 0 : index
    %c0_7 = arith.constant 0 : index
    %9 = vector.load %arg2[%c1, %c0_6, %c0_7] : memref<5x68x360xf32, #tpu.memory_space<vmem>>, vector<1x68x360xf32>
    %10 = vector.shape_cast %9 : vector<1x68x360xf32> to vector<68x360xf32>
    %cst_8 = arith.constant dense<0.000000e+00> : vector<30x360xf32>
    %11 = tpu.matmul %8, %10, %cst_8 {dimension_numbers = #tpu.dot_dimension_numbers<[1], [0], [0], [1], [0, 0, 1, 1], [], []>} : vector<30x68xf32>, vector<68x360xf32>, vector<30x360xf32> -> vector<30x360xf32>
    %12 = arith.addf %7, %11 : vector<30x360xf32>
    %13 = vector.extract_strided_slice %1 {offsets = [2, 0], sizes = [30, 68], strides = [1, 1]} : vector<34x68xf32> to vector<30x68xf32>
    %c2 = arith.constant 2 : index
    %c0_9 = arith.constant 0 : index
    %c0_10 = arith.constant 0 : index
    %14 = vector.load %arg2[%c2, %c0_9, %c0_10] : memref<5x68x360xf32, #tpu.memory_space<vmem>>, vector<1x68x360xf32>
    %15 = vector.shape_cast %14 : vector<1x68x360xf32> to vector<68x360xf32>
    %cst_11 = arith.constant dense<0.000000e+00> : vector<30x360xf32>
    %16 = tpu.matmul %13, %15, %cst_11 {dimension_numbers = #tpu.dot_dimension_numbers<[1], [0], [0], [1], [0, 0, 1, 1], [], []>} : vector<30x68xf32>, vector<68x360xf32>, vector<30x360xf32> -> vector<30x360xf32>
    %17 = arith.addf %12, %16 : vector<30x360xf32>
    %18 = vector.extract_strided_slice %1 {offsets = [3, 0], sizes = [30, 68], strides = [1, 1]} : vector<34x68xf32> to vector<30x68xf32>
    %c3 = arith.constant 3 : index
    %c0_12 = arith.constant 0 : index
    %c0_13 = arith.constant 0 : index
    %19 = vector.load %arg2[%c3, %c0_12, %c0_13] : memref<5x68x360xf32, #tpu.memory_space<vmem>>, vector<1x68x360xf32>
    %20 = vector.shape_cast %19 : vector<1x68x360xf32> to vector<68x360xf32>
    %cst_14 = arith.constant dense<0.000000e+00> : vector<30x360xf32>
    %21 = tpu.matmul %18, %20, %cst_14 {dimension_numbers = #tpu.dot_dimension_numbers<[1], [0], [0], [1], [0, 0, 1, 1], [], []>} : vector<30x68xf32>, vector<68x360xf32>, vector<30x360xf32> -> vector<30x360xf32>
    %22 = arith.addf %17, %21 : vector<30x360xf32>
    %23 = vector.extract_strided_slice %1 {offsets = [4, 0], sizes = [30, 68], strides = [1, 1]} : vector<34x68xf32> to vector<30x68xf32>
    %c4 = arith.constant 4 : index
    %c0_15 = arith.constant 0 : index
    %c0_16 = arith.constant 0 : index
    %24 = vector.load %arg2[%c4, %c0_15, %c0_16] : memref<5x68x360xf32, #tpu.memory_space<vmem>>, vector<1x68x360xf32>
    %25 = vector.shape_cast %24 : vector<1x68x360xf32> to vector<68x360xf32>
    %cst_17 = arith.constant dense<0.000000e+00> : vector<30x360xf32>
    %26 = tpu.matmul %23, %25, %cst_17 {dimension_numbers = #tpu.dot_dimension_numbers<[1], [0], [0], [1], [0, 0, 1, 1], [], []>} : vector<30x68xf32>, vector<68x360xf32>, vector<30x360xf32> -> vector<30x360xf32>
    %27 = arith.addf %22, %26 : vector<30x360xf32>
    %c0_18 = arith.constant 0 : index
    %c0_19 = arith.constant 0 : index
    %28 = vector.load %arg3[%c0_18, %c0_19] : memref<1x360xf32, #tpu.memory_space<vmem>>, vector<1x360xf32>
    %29 = vector.broadcast %28 : vector<1x360xf32> to vector<30x360xf32>
    %30 = arith.addf %27, %29 : vector<30x360xf32>
    %c0_20 = arith.constant 0 : index
    %c0_21 = arith.constant 0 : index
    %c0_22 = arith.constant 0 : index
    %31 = vector.load %arg4[%c0_20, %c0_21, %c0_22] : memref<2x360x180xf32, #tpu.memory_space<vmem>>, vector<1x360x180xf32>
    %32 = vector.shape_cast %31 : vector<1x360x180xf32> to vector<360x180xf32>
    %cst_23 = arith.constant dense<0.000000e+00> : vector<30x180xf32>
    %33 = tpu.matmul %30, %32, %cst_23 {dimension_numbers = #tpu.dot_dimension_numbers<[1], [0], [0], [1], [0, 0, 1, 1], [], []>} : vector<30x360xf32>, vector<360x180xf32>, vector<30x180xf32> -> vector<30x180xf32>
    %c1_24 = arith.constant 1 : index
    %c0_25 = arith.constant 0 : index
    %c0_26 = arith.constant 0 : index
    %34 = vector.load %arg4[%c1_24, %c0_25, %c0_26] : memref<2x360x180xf32, #tpu.memory_space<vmem>>, vector<1x360x180xf32>
    %35 = vector.shape_cast %34 : vector<1x360x180xf32> to vector<360x180xf32>
    %cst_27 = arith.constant dense<0.000000e+00> : vector<30x180xf32>
    %36 = tpu.matmul %30, %35, %cst_27 {dimension_numbers = #tpu.dot_dimension_numbers<[1], [0], [0], [1], [0, 0, 1, 1], [], []>} : vector<30x360xf32>, vector<360x180xf32>, vector<30x180xf32> -> vector<30x180xf32>
    %37 = arith.maximumf %33, %36 : vector<30x180xf32>
    %c0_28 = arith.constant 0 : index
    %c0_29 = arith.constant 0 : index
    %c0_30 = arith.constant 0 : index
    %38 = vector.load %arg5[%c0_28, %c0_29, %c0_30] : memref<2x15x30xf32, #tpu.memory_space<vmem>>, vector<1x15x30xf32>
    %39 = vector.shape_cast %38 : vector<1x15x30xf32> to vector<15x30xf32>
    %cst_31 = arith.constant dense<0.000000e+00> : vector<15x180xf32>
    %40 = tpu.matmul %39, %37, %cst_31 {dimension_numbers = #tpu.dot_dimension_numbers<[1], [0], [0], [1], [0, 0, 1, 1], [], []>} : vector<15x30xf32>, vector<30x180xf32>, vector<15x180xf32> -> vector<15x180xf32>
    %c1_32 = arith.constant 1 : index
    %c0_33 = arith.constant 0 : index
    %c0_34 = arith.constant 0 : index
    %41 = vector.load %arg5[%c1_32, %c0_33, %c0_34] : memref<2x15x30xf32, #tpu.memory_space<vmem>>, vector<1x15x30xf32>
    %42 = vector.shape_cast %41 : vector<1x15x30xf32> to vector<15x30xf32>
    %cst_35 = arith.constant dense<0.000000e+00> : vector<15x180xf32>
    %43 = tpu.matmul %42, %37, %cst_35 {dimension_numbers = #tpu.dot_dimension_numbers<[1], [0], [0], [1], [0, 0, 1, 1], [], []>} : vector<15x30xf32>, vector<30x180xf32>, vector<15x180xf32> -> vector<15x180xf32>
    %44 = arith.maximumf %40, %43 : vector<15x180xf32>
    %cst_36 = arith.constant 1.000000e+00 : f32
    %45 = vector.broadcast %cst_36 : f32 to vector<15x180xf32>
    %46 = arith.cmpf ogt, %44, %45 : vector<15x180xf32>
    %47 = arith.extui %46 : vector<15x180xi1> to vector<15x180xi32>
    %48 = arith.sitofp %47 : vector<15x180xi32> to vector<15x180xf32>
    %cst_37 = arith.constant 0.000000e+00 : f32
    %49 = vector.broadcast %cst_37 : f32 to vector<11x352xf32>
    %50 = vector.extract_strided_slice %48 {offsets = [0, 0], sizes = [11, 180], strides = [1, 1]} : vector<15x180xf32> to vector<11x180xf32>
    %c0_38 = arith.constant 0 : index
    %c0_39 = arith.constant 0 : index
    %c0_40 = arith.constant 0 : index
    %51 = vector.load %arg6[%c0_38, %c0_39, %c0_40] : memref<5x180x352xf32, #tpu.memory_space<vmem>>, vector<1x180x352xf32>
    %52 = vector.shape_cast %51 : vector<1x180x352xf32> to vector<180x352xf32>
    %cst_41 = arith.constant dense<0.000000e+00> : vector<11x352xf32>
    %53 = tpu.matmul %50, %52, %cst_41 {dimension_numbers = #tpu.dot_dimension_numbers<[1], [0], [0], [1], [0, 0, 1, 1], [], []>} : vector<11x180xf32>, vector<180x352xf32>, vector<11x352xf32> -> vector<11x352xf32>
    %54 = arith.addf %49, %53 : vector<11x352xf32>
    %55 = vector.extract_strided_slice %48 {offsets = [1, 0], sizes = [11, 180], strides = [1, 1]} : vector<15x180xf32> to vector<11x180xf32>
    %c1_42 = arith.constant 1 : index
    %c0_43 = arith.constant 0 : index
    %c0_44 = arith.constant 0 : index
    %56 = vector.load %arg6[%c1_42, %c0_43, %c0_44] : memref<5x180x352xf32, #tpu.memory_space<vmem>>, vector<1x180x352xf32>
    %57 = vector.shape_cast %56 : vector<1x180x352xf32> to vector<180x352xf32>
    %cst_45 = arith.constant dense<0.000000e+00> : vector<11x352xf32>
    %58 = tpu.matmul %55, %57, %cst_45 {dimension_numbers = #tpu.dot_dimension_numbers<[1], [0], [0], [1], [0, 0, 1, 1], [], []>} : vector<11x180xf32>, vector<180x352xf32>, vector<11x352xf32> -> vector<11x352xf32>
    %59 = arith.addf %54, %58 : vector<11x352xf32>
    %60 = vector.extract_strided_slice %48 {offsets = [2, 0], sizes = [11, 180], strides = [1, 1]} : vector<15x180xf32> to vector<11x180xf32>
    %c2_46 = arith.constant 2 : index
    %c0_47 = arith.constant 0 : index
    %c0_48 = arith.constant 0 : index
    %61 = vector.load %arg6[%c2_46, %c0_47, %c0_48] : memref<5x180x352xf32, #tpu.memory_space<vmem>>, vector<1x180x352xf32>
    %62 = vector.shape_cast %61 : vector<1x180x352xf32> to vector<180x352xf32>
    %cst_49 = arith.constant dense<0.000000e+00> : vector<11x352xf32>
    %63 = tpu.matmul %60, %62, %cst_49 {dimension_numbers = #tpu.dot_dimension_numbers<[1], [0], [0], [1], [0, 0, 1, 1], [], []>} : vector<11x180xf32>, vector<180x352xf32>, vector<11x352xf32> -> vector<11x352xf32>
    %64 = arith.addf %59, %63 : vector<11x352xf32>
    %65 = vector.extract_strided_slice %48 {offsets = [3, 0], sizes = [11, 180], strides = [1, 1]} : vector<15x180xf32> to vector<11x180xf32>
    %c3_50 = arith.constant 3 : index
    %c0_51 = arith.constant 0 : index
    %c0_52 = arith.constant 0 : index
    %66 = vector.load %arg6[%c3_50, %c0_51, %c0_52] : memref<5x180x352xf32, #tpu.memory_space<vmem>>, vector<1x180x352xf32>
    %67 = vector.shape_cast %66 : vector<1x180x352xf32> to vector<180x352xf32>
    %cst_53 = arith.constant dense<0.000000e+00> : vector<11x352xf32>
    %68 = tpu.matmul %65, %67, %cst_53 {dimension_numbers = #tpu.dot_dimension_numbers<[1], [0], [0], [1], [0, 0, 1, 1], [], []>} : vector<11x180xf32>, vector<180x352xf32>, vector<11x352xf32> -> vector<11x352xf32>
    %69 = arith.addf %64, %68 : vector<11x352xf32>
    %70 = vector.extract_strided_slice %48 {offsets = [4, 0], sizes = [11, 180], strides = [1, 1]} : vector<15x180xf32> to vector<11x180xf32>
    %c4_54 = arith.constant 4 : index
    %c0_55 = arith.constant 0 : index
    %c0_56 = arith.constant 0 : index
    %71 = vector.load %arg6[%c4_54, %c0_55, %c0_56] : memref<5x180x352xf32, #tpu.memory_space<vmem>>, vector<1x180x352xf32>
    %72 = vector.shape_cast %71 : vector<1x180x352xf32> to vector<180x352xf32>
    %cst_57 = arith.constant dense<0.000000e+00> : vector<11x352xf32>
    %73 = tpu.matmul %70, %72, %cst_57 {dimension_numbers = #tpu.dot_dimension_numbers<[1], [0], [0], [1], [0, 0, 1, 1], [], []>} : vector<11x180xf32>, vector<180x352xf32>, vector<11x352xf32> -> vector<11x352xf32>
    %74 = arith.addf %69, %73 : vector<11x352xf32>
    %c0_58 = arith.constant 0 : index
    %c0_59 = arith.constant 0 : index
    %75 = vector.load %arg7[%c0_58, %c0_59] : memref<1x352xf32, #tpu.memory_space<vmem>>, vector<1x352xf32>
    %76 = vector.broadcast %75 : vector<1x352xf32> to vector<11x352xf32>
    %77 = arith.addf %74, %76 : vector<11x352xf32>
    %c0_60 = arith.constant 0 : index
    %c0_61 = arith.constant 0 : index
    %c0_62 = arith.constant 0 : index
    %78 = vector.load %arg8[%c0_60, %c0_61, %c0_62] : memref<2x352x160xf32, #tpu.memory_space<vmem>>, vector<1x352x160xf32>
    %79 = vector.shape_cast %78 : vector<1x352x160xf32> to vector<352x160xf32>
    %cst_63 = arith.constant dense<0.000000e+00> : vector<11x160xf32>
    %80 = tpu.matmul %77, %79, %cst_63 {dimension_numbers = #tpu.dot_dimension_numbers<[1], [0], [0], [1], [0, 0, 1, 1], [], []>} : vector<11x352xf32>, vector<352x160xf32>, vector<11x160xf32> -> vector<11x160xf32>
    %c1_64 = arith.constant 1 : index
    %c0_65 = arith.constant 0 : index
    %c0_66 = arith.constant 0 : index
    %81 = vector.load %arg8[%c1_64, %c0_65, %c0_66] : memref<2x352x160xf32, #tpu.memory_space<vmem>>, vector<1x352x160xf32>
    %82 = vector.shape_cast %81 : vector<1x352x160xf32> to vector<352x160xf32>
    %cst_67 = arith.constant dense<0.000000e+00> : vector<11x160xf32>
    %83 = tpu.matmul %77, %82, %cst_67 {dimension_numbers = #tpu.dot_dimension_numbers<[1], [0], [0], [1], [0, 0, 1, 1], [], []>} : vector<11x352xf32>, vector<352x160xf32>, vector<11x160xf32> -> vector<11x160xf32>
    %84 = arith.maximumf %80, %83 : vector<11x160xf32>
    %c0_68 = arith.constant 0 : index
    %c0_69 = arith.constant 0 : index
    %c0_70 = arith.constant 0 : index
    %85 = vector.load %arg9[%c0_68, %c0_69, %c0_70] : memref<2x5x11xf32, #tpu.memory_space<vmem>>, vector<1x5x11xf32>
    %86 = vector.shape_cast %85 : vector<1x5x11xf32> to vector<5x11xf32>
    %cst_71 = arith.constant dense<0.000000e+00> : vector<5x160xf32>
    %87 = tpu.matmul %86, %84, %cst_71 {dimension_numbers = #tpu.dot_dimension_numbers<[1], [0], [0], [1], [0, 0, 1, 1], [], []>} : vector<5x11xf32>, vector<11x160xf32>, vector<5x160xf32> -> vector<5x160xf32>
    %c1_72 = arith.constant 1 : index
    %c0_73 = arith.constant 0 : index
    %c0_74 = arith.constant 0 : index
    %88 = vector.load %arg9[%c1_72, %c0_73, %c0_74] : memref<2x5x11xf32, #tpu.memory_space<vmem>>, vector<1x5x11xf32>
    %89 = vector.shape_cast %88 : vector<1x5x11xf32> to vector<5x11xf32>
    %cst_75 = arith.constant dense<0.000000e+00> : vector<5x160xf32>
    %90 = tpu.matmul %89, %84, %cst_75 {dimension_numbers = #tpu.dot_dimension_numbers<[1], [0], [0], [1], [0, 0, 1, 1], [], []>} : vector<5x11xf32>, vector<11x160xf32>, vector<5x160xf32> -> vector<5x160xf32>
    %91 = arith.maximumf %87, %90 : vector<5x160xf32>
    %cst_76 = arith.constant 1.000000e+00 : f32
    %92 = vector.broadcast %cst_76 : f32 to vector<5x160xf32>
    %93 = arith.cmpf ogt, %91, %92 : vector<5x160xf32>
    %94 = arith.extui %93 : vector<5x160xi1> to vector<5x160xi32>
    %95 = arith.sitofp %94 : vector<5x160xi32> to vector<5x160xf32>
    %c0_77 = arith.constant 0 : index
    %c0_78 = arith.constant 0 : index
    %96 = vector.load %arg11[%c0_77, %c0_78] : memref<1x10xf32, #tpu.memory_space<vmem>>, vector<1x10xf32>
    %97 = vector.extract_strided_slice %95 {offsets = [0, 0], sizes = [1, 160], strides = [1, 1]} : vector<5x160xf32> to vector<1x160xf32>
    %c0_79 = arith.constant 0 : index
    %c0_80 = arith.constant 0 : index
    %c0_81 = arith.constant 0 : index
    %98 = vector.load %arg10[%c0_79, %c0_80, %c0_81] : memref<5x160x10xf32, #tpu.memory_space<vmem>>, vector<1x160x10xf32>
    %99 = vector.shape_cast %98 : vector<1x160x10xf32> to vector<160x10xf32>
    %cst_82 = arith.constant dense<0.000000e+00> : vector<1x10xf32>
    %100 = tpu.matmul %97, %99, %cst_82 {dimension_numbers = #tpu.dot_dimension_numbers<[1], [0], [0], [1], [0, 0, 1, 1], [], []>} : vector<1x160xf32>, vector<160x10xf32>, vector<1x10xf32> -> vector<1x10xf32>
    %101 = arith.addf %96, %100 : vector<1x10xf32>
    %102 = vector.extract_strided_slice %95 {offsets = [1, 0], sizes = [1, 160], strides = [1, 1]} : vector<5x160xf32> to vector<1x160xf32>
    %c1_83 = arith.constant 1 : index
    %c0_84 = arith.constant 0 : index
    %c0_85 = arith.constant 0 : index
    %103 = vector.load %arg10[%c1_83, %c0_84, %c0_85] : memref<5x160x10xf32, #tpu.memory_space<vmem>>, vector<1x160x10xf32>
    %104 = vector.shape_cast %103 : vector<1x160x10xf32> to vector<160x10xf32>
    %cst_86 = arith.constant dense<0.000000e+00> : vector<1x10xf32>
    %105 = tpu.matmul %102, %104, %cst_86 {dimension_numbers = #tpu.dot_dimension_numbers<[1], [0], [0], [1], [0, 0, 1, 1], [], []>} : vector<1x160xf32>, vector<160x10xf32>, vector<1x10xf32> -> vector<1x10xf32>
    %106 = arith.addf %101, %105 : vector<1x10xf32>
    %107 = vector.extract_strided_slice %95 {offsets = [2, 0], sizes = [1, 160], strides = [1, 1]} : vector<5x160xf32> to vector<1x160xf32>
    %c2_87 = arith.constant 2 : index
    %c0_88 = arith.constant 0 : index
    %c0_89 = arith.constant 0 : index
    %108 = vector.load %arg10[%c2_87, %c0_88, %c0_89] : memref<5x160x10xf32, #tpu.memory_space<vmem>>, vector<1x160x10xf32>
    %109 = vector.shape_cast %108 : vector<1x160x10xf32> to vector<160x10xf32>
    %cst_90 = arith.constant dense<0.000000e+00> : vector<1x10xf32>
    %110 = tpu.matmul %107, %109, %cst_90 {dimension_numbers = #tpu.dot_dimension_numbers<[1], [0], [0], [1], [0, 0, 1, 1], [], []>} : vector<1x160xf32>, vector<160x10xf32>, vector<1x10xf32> -> vector<1x10xf32>
    %111 = arith.addf %106, %110 : vector<1x10xf32>
    %112 = vector.extract_strided_slice %95 {offsets = [3, 0], sizes = [1, 160], strides = [1, 1]} : vector<5x160xf32> to vector<1x160xf32>
    %c3_91 = arith.constant 3 : index
    %c0_92 = arith.constant 0 : index
    %c0_93 = arith.constant 0 : index
    %113 = vector.load %arg10[%c3_91, %c0_92, %c0_93] : memref<5x160x10xf32, #tpu.memory_space<vmem>>, vector<1x160x10xf32>
    %114 = vector.shape_cast %113 : vector<1x160x10xf32> to vector<160x10xf32>
    %cst_94 = arith.constant dense<0.000000e+00> : vector<1x10xf32>
    %115 = tpu.matmul %112, %114, %cst_94 {dimension_numbers = #tpu.dot_dimension_numbers<[1], [0], [0], [1], [0, 0, 1, 1], [], []>} : vector<1x160xf32>, vector<160x10xf32>, vector<1x10xf32> -> vector<1x10xf32>
    %116 = arith.addf %111, %115 : vector<1x10xf32>
    %117 = vector.extract_strided_slice %95 {offsets = [4, 0], sizes = [1, 160], strides = [1, 1]} : vector<5x160xf32> to vector<1x160xf32>
    %c4_95 = arith.constant 4 : index
    %c0_96 = arith.constant 0 : index
    %c0_97 = arith.constant 0 : index
    %118 = vector.load %arg10[%c4_95, %c0_96, %c0_97] : memref<5x160x10xf32, #tpu.memory_space<vmem>>, vector<1x160x10xf32>
    %119 = vector.shape_cast %118 : vector<1x160x10xf32> to vector<160x10xf32>
    %cst_98 = arith.constant dense<0.000000e+00> : vector<1x10xf32>
    %120 = tpu.matmul %117, %119, %cst_98 {dimension_numbers = #tpu.dot_dimension_numbers<[1], [0], [0], [1], [0, 0, 1, 1], [], []>} : vector<1x160xf32>, vector<160x10xf32>, vector<1x10xf32> -> vector<1x10xf32>
    %121 = arith.addf %116, %120 : vector<1x10xf32>
    %c0_99 = arith.constant 0 : index
    %c0_100 = arith.constant 0 : index
    %c0_101 = arith.constant 0 : index
    %122 = vector.load %arg13[%c0_99, %c0_100, %c0_101] : memref<1x1x10xf32, #tpu.memory_space<vmem>>, vector<1x1x10xf32>
    %123 = vector.shape_cast %122 : vector<1x1x10xf32> to vector<1x10xf32>
    %124 = vector.shape_cast %121 : vector<1x10xf32> to vector<1x1x10xf32>
    tpu.vector_store %arg13[%c0_99, %c0_100, %c0_101], %124 {strides = array<i32>} : memref<1x1x10xf32, #tpu.memory_space<vmem>>, vector<1x1x10xf32>,
    %cst_102 = arith.constant 1.000000e+00 : f32
    %125 = vector.broadcast %cst_102 : f32 to vector<1x10xf32>
    %126 = arith.cmpf ogt, %121, %125 : vector<1x10xf32>
    %127 = arith.extui %126 : vector<1x10xi1> to vector<1x10xi32>
    %128 = arith.sitofp %127 : vector<1x10xi32> to vector<1x10xf32>
    %c0_103 = arith.constant 0 : index
    %c0_104 = arith.constant 0 : index
    %c0_105 = arith.constant 0 : index
    %129 = vector.load %arg12[%c0_103, %c0_104, %c0_105] : memref<1x1x10xf32, #tpu.memory_space<vmem>>, vector<1x1x10xf32>
    %130 = vector.shape_cast %129 : vector<1x1x10xf32> to vector<1x10xf32>
    %131 = vector.shape_cast %128 : vector<1x10xf32> to vector<1x1x10xf32>
    tpu.vector_store %arg12[%c0_103, %c0_104, %c0_105], %131 {strides = array<i32>} : memref<1x1x10xf32, #tpu.memory_space<vmem>>, vector<1x1x10xf32>,
    return
  }
  func.func @transform_0(%arg0: i32) -> (i32, i32, i32) {
    %c0_i32 = arith.constant 0 : i32
    %c0_i32_0 = arith.constant 0 : i32
    %c0_i32_1 = arith.constant 0 : i32
    return %arg0, %c0_i32, %c0_i32_0 : i32, i32, i32
  }
  func.func @transform_1(%arg0: i32) -> (i32, i32, i32) {
    %c0_i32 = arith.constant 0 : i32
    %c0_i32_0 = arith.constant 0 : i32
    %c0_i32_1 = arith.constant 0 : i32
    %c0_i32_2 = arith.constant 0 : i32
    return %c0_i32, %c0_i32_0, %c0_i32_1 : i32, i32, i32
  }
  func.func @transform_2(%arg0: i32) -> (i32, i32) {
    %c0_i32 = arith.constant 0 : i32
    %c0_i32_0 = arith.constant 0 : i32
    %c0_i32_1 = arith.constant 0 : i32
    return %c0_i32, %c0_i32_0 : i32, i32
  }
  func.func @transform_3(%arg0: i32) -> (i32, i32, i32) {
    %c0_i32 = arith.constant 0 : i32
    %c0_i32_0 = arith.constant 0 : i32
    %c0_i32_1 = arith.constant 0 : i32
    %c0_i32_2 = arith.constant 0 : i32
    return %c0_i32, %c0_i32_0, %c0_i32_1 : i32, i32, i32
  }
  func.func @transform_4(%arg0: i32) -> (i32, i32, i32) {
    %c0_i32 = arith.constant 0 : i32
    %c0_i32_0 = arith.constant 0 : i32
    %c0_i32_1 = arith.constant 0 : i32
    %c0_i32_2 = arith.constant 0 : i32
    return %c0_i32, %c0_i32_0, %c0_i32_1 : i32, i32, i32
  }
  func.func @transform_5(%arg0: i32) -> (i32, i32, i32) {
    %c0_i32 = arith.constant 0 : i32
    %c0_i32_0 = arith.constant 0 : i32
    %c0_i32_1 = arith.constant 0 : i32
    %c0_i32_2 = arith.constant 0 : i32
    return %c0_i32, %c0_i32_0, %c0_i32_1 : i32, i32, i32
  }
  func.func @transform_6(%arg0: i32) -> (i32, i32) {
    %c0_i32 = arith.constant 0 : i32
    %c0_i32_0 = arith.constant 0 : i32
    %c0_i32_1 = arith.constant 0 : i32
    return %c0_i32, %c0_i32_0 : i32, i32
  }
  func.func @transform_7(%arg0: i32) -> (i32, i32, i32) {
    %c0_i32 = arith.constant 0 : i32
    %c0_i32_0 = arith.constant 0 : i32
    %c0_i32_1 = arith.constant 0 : i32
    %c0_i32_2 = arith.constant 0 : i32
    return %c0_i32, %c0_i32_0, %c0_i32_1 : i32, i32, i32
  }
  func.func @transform_8(%arg0: i32) -> (i32, i32, i32) {
    %c0_i32 = arith.constant 0 : i32
    %c0_i32_0 = arith.constant 0 : i32
    %c0_i32_1 = arith.constant 0 : i32
    %c0_i32_2 = arith.constant 0 : i32
    return %c0_i32, %c0_i32_0, %c0_i32_1 : i32, i32, i32
  }
  func.func @transform_9(%arg0: i32) -> (i32, i32, i32) {
    %c0_i32 = arith.constant 0 : i32
    %c0_i32_0 = arith.constant 0 : i32
    %c0_i32_1 = arith.constant 0 : i32
    %c0_i32_2 = arith.constant 0 : i32
    return %c0_i32, %c0_i32_0, %c0_i32_1 : i32, i32, i32
  }
  func.func @transform_10(%arg0: i32) -> (i32, i32) {
    %c0_i32 = arith.constant 0 : i32
    %c0_i32_0 = arith.constant 0 : i32
    %c0_i32_1 = arith.constant 0 : i32
    return %c0_i32, %c0_i32_0 : i32, i32
  }
  func.func @transform_11(%arg0: i32) -> (i32, i32, i32) {
    %c0_i32 = arith.constant 0 : i32
    %c0_i32_0 = arith.constant 0 : i32
    %c0_i32_1 = arith.constant 0 : i32
    return %arg0, %c0_i32, %c0_i32_0 : i32, i32, i32
  }
  func.func @transform_12(%arg0: i32) -> (i32, i32, i32) {
    %c0_i32 = arith.constant 0 : i32
    %c0_i32_0 = arith.constant 0 : i32
    %c0_i32_1 = arith.constant 0 : i32
    return %arg0, %c0_i32, %c0_i32_0 : i32, i32, i32
  }
}

</mosaic_0001>

<bundles_post_ra>
// kernel: tile.13
= control target key start
LH: loop header
LB: loop body
LE: loop exit
PB: predicated region body
PF: predicated region fallthrough
CT: control target
= control target key end

     0   :  { %s40_s0 = inlined_call_operand.vmem [shape: f32[12], index: 0, kind: input, shape index: {}]   ;;  %s41_s1 = inlined_call_operand.vmem [shape: f32[30,12], index: 1, kind: output, shape index: {}]  }
   0x1   :  { %v4_v0 = vld [vmem:[%s40_s0] ss:$0 sm:$0xff] }
   0x2   :  { %5 = vst [vmem:[%s41_s1] sm:$0xff] %v4_v0 }
   0x3   :  { %12 = vst [vmem:[%s41_s1 + $0x8] sm:$0xff] %v4_v0 }
   0x4   :  { %13 = vst [vmem:[%s41_s1 + $0x10] sm:$0xff] %v4_v0 }
   0x5   :  { %14 = vst [vmem:[%s41_s1 + $0x18] sm:$0xff] %v4_v0 }

// kernel: tile.14
= control target key start
LH: loop header
LB: loop body
LE: loop exit
PB: predicated region body
PF: predicated region fallthrough
CT: control target
= control target key end

     0   :  { %vm9_vm0 = vcmask 31744   ;;  %s292_s10 = smov 112   ;;  %s293_s13 = smov 124   ;;  %vm13_vm1 = vcmask 64512   ;;  %vm3_vm2 = vcmask 97280   ;;  %vm16_vm3 = vcmask 1048544   ;;  %s440_s0 = inlined_call_operand.vmem [shape: f32[30,12], index: 0, kind: input, shape index: {}]   ;;  %s441_s1 = inlined_call_operand.vmem [shape: f32[1,360], index: 1, kind: output, shape index: {}]  }
   0x1   :  { %v234_v0 = vld [vmem:[%s440_s0 + $0x14] sm:$0x1]   ;;  %v230_v1 = vld [vmem:[%s440_s0 + $0x15] sm:$0x1]   ;;  %v232_v4 = vld [vmem:[%s440_s0 + $0xa] sm:$0x1]  }
   0x2   :  { %34 = vrot.lane.b32.xlu1 %v234_v0, %s292_s10  ;;  %v231_v2 = vld [vmem:[%s440_s0 + $0x15] sm:$0x1]   ;;  %v233_v5 = vld [vmem:[%s440_s0 + $0xa] sm:$0x1]   ;;  %v236_v6 = vld [vmem:[%s440_s0 + $0x13] sm:$0x1]  }
   0x3   :  { %v10_v3 = vsel %vm9_vm0, %v231_v2, %v230_v1  ;;  %v235_v7 = vld [vmem:[%s440_s0 + $0x9] sm:$0x1]   ;;  %s294_s22 = smov 100   ;;  %v24_v8 = vsel %vm13_vm1, %v233_v5, %v232_v4  ;;  %s295_s23 = smov 108   ;;  %v237_v9 = vld [vmem:[%s440_s0 + $0x8] sm:$0x1]  }
   0x4   :  { %11 = vrot.lane.b32.xlu0 %v10_v3, %s293_s13  ;;  %47 = vrot.lane.b32.xlu2 %v236_v6, %s294_s22  ;;  %s296_s24 = smov 120   ;;  %v239_v10 = vld [vmem:[%s440_s0 + $0x12] sm:$0x1]   ;;  %s297_s29 = smov 96   ;;  %v238_v11 = vld [vmem:[%s440_s0 + $0x1d] sm:$0x1]  }
   0x5   :  { %s298_s3 = smov 88   ;;  %s299_s4 = smov 92   ;;  %v240_v12 = vld [vmem:[%s440_s0 + $0x7] sm:$0x1]   ;;  %v242_v13 = vld [vmem:[%s440_s0 + $0x11] sm:$0x1]  }
   0x6   :  { %s300_s9 = smov 84   ;;  %v241_v14 = vld [vmem:[%s440_s0 + $0x1c] sm:$0x1]   ;;  %s301_s12 = smov 76   ;;  %v243_v15 = vld [vmem:[%s440_s0 + $0x6] sm:$0x1]  }
   0x7   :  { %s302_s13 = smov 80   ;;  %v245_v16 = vld [vmem:[%s440_s0 + $0x10] sm:$0x1]   ;;  %s303_s18 = smov 72   ;;  %v244_v17 = vld [vmem:[%s440_s0 + $0x1b] sm:$0x1]  }
   0x8   :  { %s304_s21 = smov 64   ;;  %s305_s22 = smov 68   ;;  %v246_v18 = vld [vmem:[%s440_s0 + $0x5] sm:$0x1]   ;;  %v248_v19 = vld [vmem:[%s440_s0 + $0xf] sm:$0x1]  }
   0x9   :  { %s306_s27 = smov 60   ;;  %v247_v20 = vld [vmem:[%s440_s0 + $0x1a] sm:$0x1]   ;;  %s307_s30 = smov 52   ;;  %v249_v21 = vld [vmem:[%s440_s0 + $0x4] sm:$0x1]  }
   0xa   :  { %41 = vrot.lane.b32.xlu1 %v235_v7, %s295_s23  ;;  %s308_s2 = smov 56   ;;  %v251_v22 = vld [vmem:[%s440_s0 + $0xe] sm:$0x1]   ;;  %s309_s7 = smov 48   ;;  %v250_v23 = vld [vmem:[%s440_s0 + $0x19] sm:$0x1]  }
   0xb   :  { %s310_s10 = smov 40   ;;  %s311_s11 = smov 44   ;;  %v252_v24 = vld [vmem:[%s440_s0 + $0x3] sm:$0x1]   ;;  %v254_v25 = vld [vmem:[%s440_s0 + $0xd] sm:$0x1]  }
   0xc   :  { %25 = vrot.lane.b32.xlu0 %v24_v8, %s296_s24  ;;  %54 = vrot.lane.b32.xlu2 %v237_v9, %s297_s29  ;;  %s312_s16 = smov 36   ;;  %v253_v26 = vld [vmem:[%s440_s0 + $0x18] sm:$0x1]   ;;  %s313_s19 = smov 28   ;;  %v255_v27 = vld [vmem:[%s440_s0 + $0x2] sm:$0x1]  }
   0xd   :  { %s314_s20 = smov 32   ;;  %v257_v28 = vld [vmem:[%s440_s0 + $0xc] sm:$0x1]   ;;  %s315_s25 = smov 24   ;;  %v256_v29 = vld [vmem:[%s440_s0 + $0x17] sm:$0x1]  }
   0xe   :  { %s316_s28 = smov 16   ;;  %s317_s29 = smov 20   ;;  %v258_v30 = vld [vmem:[%s440_s0 + $0x1] sm:$0x1]   ;;  %v260_v31 = vld [vmem:[%s440_s0 + $0xb] sm:$0x1]  }
   0xf   :  { %s318_s5 = smov 12   ;;  %v259_v32 = vld [vmem:[%s440_s0 + $0x16] sm:$0x1]   ;;  %s319_s8 = smov 4   ;;  %v2_v33 = vld [vmem:[%s440_s0] sm:$0x1]  }
  0x10   :  { %4 = vst.msk [vmem:[#allocation0] sm:$0x1] %vm3_vm2, %v2_v33   ;;  %vm30_vm4 = vcmask 1048512   ;;  %vm36_vm5 = vcmask 1015680   ;;  %vm43_vm6 = vcmask 982880   ;;  %vm56_vm7 = vcmask 884480  }
  0x11   :  { %vm49_vm8 = vcmask 917280   ;;  %vm69_vm9 = vcmask 818880   ;;  %vm76_vm10 = vcmask 786080   ;;  %vm62_vm11 = vcmask 851680  }
  0x12   :  { %67 = vrot.lane.b32.xlu1 %v239_v10, %s298_s3  ;;  %vm96_vm12 = vcmask 687680   ;;  %vm116_vm13 = vcmask 589280   ;;  %vm136_vm14 = vcmask 490880   ;;  %vm89_vm15 = vcmask 720480  }
  0x13   :  { %vm109_vm2 = vcmask 622080  }
  0x14   :  { %60 = vrot.lane.b32.xlu0 %v238_v11, %s299_s4  ;;  %74 = vrot.lane.b32.xlu2 %v240_v12, %s300_s9  ;;  %s320_s9 = smov 8  }
  0x1a   :  { %87 = vrot.lane.b32.xlu1 %v242_v13, %s301_s12 }
  0x1c   :  { %80 = vrot.lane.b32.xlu0 %v241_v14, %s302_s13  ;;  %94 = vrot.lane.b32.xlu2 %v243_v15, %s303_s18 }
  0x22   :  { %107 = vrot.lane.b32.xlu1 %v245_v16, %s304_s21 }
  0x24   :  { %100 = vrot.lane.b32.xlu0 %v244_v17, %s305_s22  ;;  %114 = vrot.lane.b32.xlu2 %v246_v18, %s306_s27 }
  0x2a   :  { %127 = vrot.lane.b32.xlu1 %v248_v19, %s307_s30 }
  0x2c   :  { %120 = vrot.lane.b32.xlu0 %v247_v20, %s308_s2  ;;  %134 = vrot.lane.b32.xlu2 %v249_v21, %s309_s7 }
  0x32   :  { %147 = vrot.lane.b32.xlu1 %v251_v22, %s310_s10 }
  0x34   :  { %140 = vrot.lane.b32.xlu0 %v250_v23, %s311_s11  ;;  %154 = vrot.lane.b32.xlu2 %v252_v24, %s312_s16 }
  0x3a   :  { %167 = vrot.lane.b32.xlu1 %v254_v25, %s313_s19 }
  0x3c   :  { %160 = vrot.lane.b32.xlu0 %v253_v26, %s314_s20  ;;  %174 = vrot.lane.b32.xlu2 %v255_v27, %s315_s25 }
  0x42   :  { %187 = vrot.lane.b32.xlu1 %v257_v28, %s316_s28 }
  0x44   :  { %180 = vrot.lane.b32.xlu0 %v256_v29, %s317_s29  ;;  %194 = vrot.lane.b32.xlu2 %v258_v30, %s318_s5 }
  0x4a   :  { %207 = vrot.lane.b32.xlu1 %v260_v31, %s319_s8 }
  0x4c   :  { %200 = vrot.lane.b32.xlu0 %v259_v32, %s320_s9 }
  0x5e   :  { %v48_v34 = vpop.permute.xlu2 %47  }
  0x66   :  { %v55_v35 = vpop.permute.xlu2 %54  }
  0x6e   :  { %v75_v36 = vpop.permute.xlu2 %74  }
  0x74   :  { %v35_v37 = vpop.permute.xlu1 %34  }
  0x76   :  { %v12_v38 = vpop.permute.xlu0 %11   ;;  %v95_v39 = vpop.permute.xlu2 %94  }
  0x77   :  { %15 = vst.msk [vmem:[#allocation0 + $0x10] sm:$0x1] %vm13_vm1, %v12_v38   ;;  %vm156_vm1 = vcmask 392480  }
  0x78   :  { %18 = vst.msk [vmem:[#allocation0 + $0x8] sm:$0x1] %vm16_vm3, %v12_v38   ;;  %vm102_vm3 = vcmask 654880  }
  0x7c   :  { %v42_v40 = vpop.permute.xlu1 %41  }
  0x7e   :  { %v26_v41 = vpop.permute.xlu0 %25   ;;  %v115_v42 = vpop.permute.xlu2 %114  }
  0x7f   :  { %29 = vst.msk [vmem:[#allocation0 + $0x8] sm:$0x1] %vm9_vm0, %v26_v41   ;;  %vm82_vm0 = vcmask 753280  }
  0x80   :  { %31 = vst.msk [vmem:[#allocation0] sm:$0x1] %vm30_vm4, %v26_v41   ;;  %vm176_vm4 = vcmask 294080  }
  0x81   :  { %38 = vst.msk [vmem:[#allocation0 + $0x8] sm:$0x1] %vm36_vm5, %v35_v37   ;;  %vm129_vm5 = vcmask 523680  }
  0x82   :  { %44 = vst.msk [vmem:[#allocation0] sm:$0x1] %vm43_vm6, %v42_v40   ;;  %vm122_vm6 = vcmask 556480  }
  0x83   :  { %57 = vst.msk [vmem:[#allocation0] sm:$0x1] %vm56_vm7, %v55_v35   ;;  %vm196_vm7 = vcmask 195680  }
  0x84   :  { %51 = vst.msk [vmem:[#allocation0 + $0x8] sm:$0x1] %vm49_vm8, %v48_v34   ;;  %v68_v43 = vpop.permute.xlu1 %67   ;;  %vm149_vm8 = vcmask 425280  }
  0x85   :  { %71 = vst.msk [vmem:[#allocation0 + $0x8] sm:$0x1] %vm69_vm9, %v68_v43   ;;  %vm142_vm9 = vcmask 458080  }
  0x86   :  { %v61_v44 = vpop.permute.xlu0 %60   ;;  %77 = vst.msk [vmem:[#allocation0] sm:$0x1] %vm76_vm10, %v75_v36   ;;  %v135_v45 = vpop.permute.xlu2 %134   ;;  %vm169_vm10 = vcmask 326880  }
  0x87   :  { %64 = vst.msk [vmem:[#allocation0 + $0x10] sm:$0x1] %vm62_vm11, %v61_v44   ;;  %vm162_vm11 = vcmask 359680  }
  0x88   :  { %97 = vst.msk [vmem:[#allocation0] sm:$0x1] %vm96_vm12, %v95_v39   ;;  %vm189_vm12 = vcmask 228480  }
  0x89   :  { %117 = vst.msk [vmem:[#allocation0] sm:$0x1] %vm116_vm13, %v115_v42   ;;  %vm182_vm13 = vcmask 261280  }
  0x8a   :  { %137 = vst.msk [vmem:[#allocation0] sm:$0x1] %vm136_vm14, %v135_v45   ;;  %vm209_vm14 = vcmask 130080  }
  0x8c   :  { %v88_v46 = vpop.permute.xlu1 %87  }
  0x8d   :  { %91 = vst.msk [vmem:[#allocation0 + $0x8] sm:$0x1] %vm89_vm15, %v88_v46   ;;  %vm202_vm15 = vcmask 162880  }
  0x8e   :  { %v81_v47 = vpop.permute.xlu0 %80   ;;  %v155_v48 = vpop.permute.xlu2 %154  }
  0x8f   :  { %84 = vst.msk [vmem:[#allocation0 + $0x10] sm:$0x1] %vm82_vm0, %v81_v47  }
  0x90   :  { %157 = vst.msk [vmem:[#allocation0] sm:$0x1] %vm156_vm1, %v155_v48  }
  0x94   :  { %v108_v49 = vpop.permute.xlu1 %107  }
  0x95   :  { %111 = vst.msk [vmem:[#allocation0 + $0x8] sm:$0x1] %vm109_vm2, %v108_v49  }
  0x96   :  { %v101_v50 = vpop.permute.xlu0 %100   ;;  %v175_v51 = vpop.permute.xlu2 %174  }
  0x97   :  { %104 = vst.msk [vmem:[#allocation0 + $0x10] sm:$0x1] %vm102_vm3, %v101_v50  }
  0x98   :  { %177 = vst.msk [vmem:[#allocation0] sm:$0x1] %vm176_vm4, %v175_v51  }
  0x9c   :  { %v128_v52 = vpop.permute.xlu1 %127  }
  0x9d   :  { %131 = vst.msk [vmem:[#allocation0 + $0x8] sm:$0x1] %vm129_vm5, %v128_v52  }
  0x9e   :  { %v121_v53 = vpop.permute.xlu0 %120   ;;  %v195_v54 = vpop.permute.xlu2 %194  }
  0x9f   :  { %124 = vst.msk [vmem:[#allocation0 + $0x10] sm:$0x1] %vm122_vm6, %v121_v53  }
  0xa0   :  { %197 = vst.msk [vmem:[#allocation0] sm:$0x1] %vm196_vm7, %v195_v54  }
  0xa4   :  { %v148_v55 = vpop.permute.xlu1 %147  }
  0xa5   :  { %151 = vst.msk [vmem:[#allocation0 + $0x8] sm:$0x1] %vm149_vm8, %v148_v55  }
  0xa6   :  { %v141_v56 = vpop.permute.xlu0 %140  }
  0xa7   :  { %144 = vst.msk [vmem:[#allocation0 + $0x10] sm:$0x1] %vm142_vm9, %v141_v56   ;;  %v214_v57 = vld [vmem:[#allocation0] sm:$0x1] }
  0xa8   :  { %217 = vst [vmem:[%s441_s1] sm:$0x1] %v214_v57 }
  0xac   :  { %v168_v58 = vpop.permute.xlu1 %167  }
  0xad   :  { %171 = vst.msk [vmem:[#allocation0 + $0x8] sm:$0x1] %vm169_vm10, %v168_v58  }
  0xae   :  { %v161_v59 = vpop.permute.xlu0 %160  }
  0xaf   :  { %164 = vst.msk [vmem:[#allocation0 + $0x10] sm:$0x1] %vm162_vm11, %v161_v59  }
  0xb4   :  { %v188_v60 = vpop.permute.xlu1 %187  }
  0xb5   :  { %191 = vst.msk [vmem:[#allocation0 + $0x8] sm:$0x1] %vm189_vm12, %v188_v60  }
  0xb6   :  { %v181_v61 = vpop.permute.xlu0 %180  }
  0xb7   :  { %184 = vst.msk [vmem:[#allocation0 + $0x10] sm:$0x1] %vm182_vm13, %v181_v61  }
  0xbc   :  { %v208_v62 = vpop.permute.xlu1 %207  }
  0xbd   :  { %211 = vst.msk [vmem:[#allocation0 + $0x8] sm:$0x1] %vm209_vm14, %v208_v62  }
  0xbe   :  { %v201_v63 = vpop.permute.xlu0 %200  }
  0xbf   :  { %204 = vst.msk [vmem:[#allocation0 + $0x10] sm:$0x1] %vm202_vm15, %v201_v63  }
  0xc4   :  { %v219_v0 = vld [vmem:[#allocation0 + $0x8] sm:$0x1] }
  0xc5   :  { %261 = vst [vmem:[%s441_s1 + $0x1] sm:$0x1] %v219_v0 }
  0xc6   :  { %v225_v1 = vld [vmem:[#allocation0 + $0x10] sm:$0x1] }
  0xc7   :  { %262 = vst [vmem:[%s441_s1 + $0x2] sm:$0x1] %v225_v1 }

// kernel: tile.18
= control target key start
LH: loop header
LB: loop body
LE: loop exit
PB: predicated region body
PF: predicated region fallthrough
CT: control target
= control target key end

     0   :  { %s28_s0 = inlined_call_operand.vmem [shape: f32[32], index: 0, kind: input, shape index: {}]   ;;  %s29_s1 = inlined_call_operand.vmem [shape: f32[11,32], index: 1, kind: output, shape index: {}]  }
   0x1   :  { %v4_v0 = vld [vmem:[%s28_s0] ss:$0 sm:$0xff] }
   0x2   :  { %5 = vst [vmem:[%s29_s1] sm:$0xff] %v4_v0 }
   0x3   :  { %8 = vst [vmem:[%s29_s1 + $0x8] sm:$0xff] %v4_v0 }

// kernel: tile.19
= control target key start
LH: loop header
LB: loop body
LE: loop exit
PB: predicated region body
PF: predicated region fallthrough
CT: control target
= control target key end

     0   :  { %s6_s6 = smov 3  ;;  %s50_s11 = smov 96   ;;  %vm3_vm0 = vcmask 261120   ;;  %vm10_vm1 = vcmask 1048320   ;;  %vm16_vm2 = vcmask 785920   ;;  %vm22_vm3 = vcmask 523520   ;;  %s84_s0 = inlined_call_operand.vmem [shape: f32[11,32], index: 0, kind: input, shape index: {}]   ;;  %s85_s1 = inlined_call_operand.vmem [shape: f32[1,352], index: 1, kind: output, shape index: {}]  }
   0x1   :  { %v42_v0 = vld [vmem:[%s84_s0 + $0x3] ss:$4 sm:%s6_s6]   ;;  %v44_v1 = vld [vmem:[%s84_s0 + $0x1] ss:$4 sm:$0x7]   ;;  %s51_s12 = smov 32  }
   0x2   :  { %8 = vrot.lane.b32.xlu0 %v42_v0, %s50_s11  ;;  %20 = vrot.lane.b32.xlu1 %v44_v1, %s51_s12  ;;  %v43_v2 = vld [vmem:[%s84_s0 + $0x2] ss:$4 sm:$0x7]   ;;  %s52_s15 = smov 64  }
   0x3   :  { %v2_v3 = vld [vmem:[%s84_s0] ss:$4 sm:$0x7]  }
   0x4   :  { %4 = vst.msk [vmem:[#allocation0] ss:$8 sm:$0x7] %vm3_vm0, %v2_v3  }
   0xa   :  { %14 = vrot.lane.b32.xlu0 %v43_v2, %s52_s15 }
  0x74   :  { %v9_v4 = vpop.permute.xlu0 %8   ;;  %v21_v5 = vpop.permute.xlu1 %20  }
  0x75   :  { %11 = vst.msk [vmem:[#allocation0] ss:$8 sm:$0x3] %vm10_vm1, %v9_v4  }
  0x7c   :  { %v15_v6 = vpop.permute.xlu0 %14  }
  0x7d   :  { %17 = vst.msk [vmem:[#allocation0] ss:$8 sm:$0x7] %vm16_vm2, %v15_v6  }
  0x7e   :  { %23 = vst.msk [vmem:[#allocation0] ss:$8 sm:$0x7] %vm22_vm3, %v21_v5  }
  0x85   :  { %v26_v7 = vld [vmem:[#allocation0] sm:$0x1]  ;;  %v31_v8 = vld [vmem:[#allocation0 + $0x8] sm:$0x1]  ;;  %v37_v9 = vld [vmem:[#allocation0 + $0x10] sm:$0x1] }
  0x86   :  { %29 = vst [vmem:[%s85_s1] sm:$0x1] %v26_v7 }
  0x87   :  { %45 = vst [vmem:[%s85_s1 + $0x1] sm:$0x1] %v31_v8 }
  0x88   :  { %46 = vst [vmem:[%s85_s1 + $0x2] sm:$0x1] %v37_v9 }

// kernel: net_forward.1
= control target key start
LH: loop header
LB: loop body
LE: loop exit
PB: predicated region body
PF: predicated region fallthrough
CT: control target
= control target key end

     0   :  { %s8864_s0 = inlined_call_operand.vmem [shape: f32[2,34,68], index: 0, kind: input, shape index: {}]   ;;  %s8865_s1 = inlined_call_operand.vmem [shape: f32[5,68,360], index: 1, kind: input, shape index: {}]   ;;  %s8866_s2 = inlined_call_operand.vmem [shape: f32[1,360], index: 2, kind: input, shape index: {}]   ;;  %s8867_s3 = inlined_call_operand.vmem [shape: f32[2,360,180], index: 3, kind: input, shape index: {}]   ;;  %s8868_s4 = inlined_call_operand.vmem [shape: f32[2,15,30], index: 4, kind: input, shape index: {}]   ;;  %s8869_s5 = inlined_call_operand.vmem [shape: f32[5,180,352], index: 5, kind: input, shape index: {}]   ;;  %s8870_s6 = inlined_call_operand.vmem [shape: f32[1,352], index: 6, kind: input, shape index: {}]   ;;  %s8871_s7 = inlined_call_operand.vmem [shape: f32[2,352,160], index: 7, kind: input, shape index: {}]   ;;  %s8872_s8 = inlined_call_operand.vmem [shape: f32[2,5,11], index: 8, kind: input, shape index: {}]   ;;  %s8873_s9 = inlined_call_operand.vmem [shape: f32[5,160,10], index: 9, kind: input, shape index: {}]   ;;  %s8874_s10 = inlined_call_operand.vmem [shape: f32[1,10], index: 10, kind: input, shape index: {}]   ;;  %s8875_s11 = inlined_call_operand.hbm [shape: f32[2,1,10], index: 11, kind: output, shape index: {0}]   ;;  %s8876_s12 = inlined_call_operand.hbm [shape: f32[2,1,10], index: 12, kind: output, shape index: {1}]  }
   0x1   :  { %8880 = sst [smem:[#allocation11_spill]] %s8864_s0 }
   0x2   :  { %8881 = sst [smem:[#allocation12_spill]] %s8865_s1 }
   0x3   :  { %18 = vsyncpa [#allocation3], 0 }
   0x4   :  { %20 = vsyncpa [#allocation3 + $0x1], 0 }
   0x5   :  { %21 = vsyncpa [#allocation5], 0 }
   0x6   :  { %23 = vsyncpa [#allocation5 + $0x1], 0  ;;  %s5106_s21 = smov 0   ;;  %s5108_s22 = smov 0  }
   0x7   :  { %s5110_s23 = smov 0   ;;  %s5112_s24 = smov 0  }
   0x8 LB: > { %8882 = sst [smem:[#allocation8_spill]] %s5033_s23  ;;  %s5127_s25 = sadd.s32 4294967295, %s5037_s24   ;;  %s5037_s24 = sphi %s5112_s24, %s8893_s24   ;;  %s5033_s23 = sphi %s5110_s23, %s8895_s23   ;;  %s5029_s22 = sphi %s5108_s22, %s8897_s22   ;;  %s5025_s21 = sphi %s5106_s21, %s8896_s21  }
   0x9   : > { %s4061_s26 = sadd.s32 4294967294, %s5037_s24   ;;  %s5131_s27 = sadd.s32 1, %s5037_s24  }
   0xa   : > { %8883 = sst [smem:[#allocation9_spill]] %s5131_s27  ;;  %s272_s28 = sadd.s32 1, %s5033_s23 }
   0xb   : > { %s269_s29 = ssub.s32 %s5037_s24, %s5131_s27  ;;  %p282_p0 = scmp.ne.s32.totalorder %s5033_s23, %s5029_s22 }
   0xc   : > { %p270_p1 = scmp.eq.s32.totalorder %s269_s29, 0  ;;  %p283_p2 = scmp.eq.s32.totalorder %s5127_s25, 1 }
   0xd   : > { %p288_p3 = scmp.ne.s32.totalorder %s5029_s22, %s5025_s21  ;;  %p289_p4 = scmp.eq.s32.totalorder %s4061_s26, 1 }
   0xe   : > { %s5142_s30 = scalar_select %p270_p1, %s5033_s23, %s272_s28  }
   0xf   : > { %p5144_p5 = por %p283_p2, %p282_p0  ;;  %p5148_p6 = por %p289_p4, %p288_p3 }
  0x10   : > { %8884 = sst [smem:[#allocation10_spill]] %s5142_s30  ;;  %p4064_p7 = scmp.ge.s32.totalorder %s5037_s24, 1 }
  0x11   : > { %p371_p8 = scmp.lt.s32.totalorder %s5037_s24, 3 }
  0x13   : > { %p372_p9 = pnand %p4064_p7, %p371_p8 }
  0x14   : > { %s8887_s1 = sld [smem:[#allocation12_spill]] (!%p372_p9)  ;;  %p416_p10 = scmp.lt.s32.totalorder (!%p372_p9), %s5127_s25, 1 }
  0x15   : > { %375 = sbr.rel (%p372_p9) target bundleno = 1482 (0x5ca), region = 64  ;;  %s8888_s0 = sld [smem:[#allocation11_spill]] (!%p372_p9) }
  0x16   : > { %s3974_s28 = scalar_lea.hbm (!%p372_p9), %s8876_s12, %s5127_s25  ;;  %s3961_s29 = scalar_lea.hbm (!%p372_p9), %s8875_s11, %s5127_s25 }
  0x17   : > { %s8805_s16 = sshll.u32 (!%p372_p9), %s3974_s28, 4  ;;  %s8810_s19 = sshll.u32 (!%p372_p9), %s3961_s29, 4  ;;  %s3979_s16 = int_to_ptr.hbm [resolvable:$true] %s8805_s16  ;;  %s3966_s19 = int_to_ptr.hbm [resolvable:$true] %s8810_s19 }
  0x18   : > { %s4957_s26 = sshra.s32 (!%p372_p9), %s3979_s16, 4  ;;  %s4963_s29 = scalar_lea.hbm (!%p372_p9), %s8876_s12, 2  ;;  %s4958_s26 = int_to_ptr.hbm [resolvable:$true] %s4957_s26 }
  0x19   : > { %s4959_s28 = scalar_lea.hbm (!%p372_p9), %s4958_s26, 1  ;;  %p4964_p0 = scmp.lt.s32.totalorder (!%p372_p9), %s4958_s26, %s8876_s12 }
  0x1a   : > { %v4090_v0 = vld [vmem:[%s8887_s1 + $0x198] sm:$0xf]  ;;  %vm502_vm0 = vcmask 1043456   ;;  %v4091_v1 = vld [vmem:[%s8887_s1 + $0x1a0] sm:$0xf]  ;;  %v4088_v5 = vld [vmem:[%s8887_s1 + $0x188] sm:$0xff]  ;;  %p4960_p11 = scmp.ne.s32.totalorder %s4958_s26, %s4959_s28  ;;  %p4965_p1 = scmp.lt.s32.totalorder %s4963_s29, %s4959_s28 }
  0x1b   : > { %v4087_v2 = vld [vmem:[%s8887_s1 + $0x180] sm:$0xff]  ;;  %4093 = vmatpush.msk.msra.mxu0 %vm502_vm0, %v4090_v0  ;;  %4098 = vmatpush.msk.msra.mxu1 %vm502_vm0, %v4091_v1  ;;  %v4092_v3 = vld [vmem:[%s8887_s1 + $0x1a8] sm:$0xf]  ;;  %v4089_v6 = vld [vmem:[%s8887_s1 + $0x190] sm:$0xff]  ;;  %s417_s20 = scalar_select %p416_p10, %s5127_s25, 1  ;;  %vm485_vm1 = vcmask 1046528  }
  0x1c   : > { %v450_v4 = vld [vmem:[%s8887_s1 + $0xc0] sm:$0xf]  ;;  %4103 = vmatpush.msk.msra.mxu2 %vm502_vm0, %v4092_v3  ;;  %v447_v7 = vld [vmem:[%s8887_s1 + $0xa8] sm:$0xff]  ;;  %v4085_v9 = vld [vmem:[%s8887_s1 + $0x170] sm:$0xff]  ;;  %vm493_vm2 = vcmask 556032   ;;  %vm731_vm3 = vcmask 1045504   ;;  %p4961_p12 = pnand %p4960_p11, %p5144_p5  ;;  %p4966_p2 = por %p4965_p1, %p4964_p0 }
  0x1d   : > { %4108 = vmatpush.msk.msra.mxu3 %vm502_vm0, %v450_v4  ;;  %v4084_v8 = vld [vmem:[%s8887_s1 + $0x168] sm:$0xff]  ;;  %520 = vmatpush.msra.mxu0 %v4087_v2  ;;  %v4086_v10 = vld [vmem:[%s8887_s1 + $0x178] sm:$0xff]  ;;  %v444_v11 = vld [vmem:[%s8887_s1 + $0x90] sm:$0xff]  ;;  %s4896_s18 = smul.u32 40, %s417_s20  ;;  %vm884_vm4 = vcmask 1044480   ;;  %vm1273_vm5 = vcmask 850944  }
  0x1e   : > { %549 = vmatpush.msra.mxu1 %v4088_v5  ;;  %578 = vmatpush.msra.mxu2 %v4089_v6  ;;  %v4081_v12 = vld [vmem:[%s8887_s1 + $0x150] sm:$0xff]  ;;  %v4082_v13 = vld [vmem:[%s8887_s1 + $0x158] sm:$0xff]  ;;  %v4083_v14 = vld [vmem:[%s8887_s1 + $0x160] sm:$0xff]  ;;  %vm1735_vm6 = vcmask 244736   ;;  %vm2016_vm11 = vcmask 424960   ;;  %vm3126_vm12 = vcmask 785408   ;;  %p4962_p13 = pneg %p4961_p12 }
  0x1f   : > { %624 = vmatpush.msra.mxu3 %v447_v7  ;;  %521 = vmatpush.msra.mxu0 %v4084_v8  ;;  %v441_v15 = vld [vmem:[%s8887_s1 + $0x78] sm:$0xff]  ;;  %v4079_v17 = vld [vmem:[%s8887_s1 + $0x140] sm:$0xff]  ;;  %v4080_v18 = vld [vmem:[%s8887_s1 + $0x148] sm:$0xff]  ;;  %s5235_s27 = scalar_lea.vmem %s8888_s0, %s4896_s18  ;;  %vm3507_vm13 = vcmask 1042432   ;;  %vm3503_vm14 = vcmask 89088  }
  0x20   : > { %550 = vmatpush.msra.mxu1 %v4085_v9  ;;  %579 = vmatpush.msra.mxu2 %v4086_v10  ;;  %v4078_v16 = vld [vmem:[%s8887_s1 + $0x138] sm:$0xff]  ;;  %v438_v19 = vld [vmem:[%s8887_s1 + $0x60] sm:$0xff]  ;;  %v4076_v21 = vld [vmem:[%s8887_s1 + $0x128] sm:$0xff]  ;;  %p4967_p3 = pnand %p4966_p2, %p4962_p13 }
  0x21   : > { %625 = vmatpush.msra.mxu3 %v444_v11  ;;  %522 = vmatpush.msra.mxu0 %v4081_v12  ;;  %v4075_v20 = vld [vmem:[%s8887_s1 + $0x120] sm:$0xff]  ;;  %v4077_v22 = vld [vmem:[%s8887_s1 + $0x130] sm:$0xff]  ;;  %v435_v23 = vld [vmem:[%s8887_s1 + $0x48] sm:$0xff] }
  0x22   : > { %551 = vmatpush.msra.mxu1 %v4082_v13  ;;  %580 = vmatpush.msra.mxu2 %v4083_v14  ;;  %v4072_v24 = vld [vmem:[%s8887_s1 + $0x108] sm:$0xff]  ;;  %v4073_v25 = vld [vmem:[%s8887_s1 + $0x110] sm:$0xff]  ;;  %v4074_v26 = vld [vmem:[%s8887_s1 + $0x118] sm:$0xff] }
  0x23   : > { %626 = vmatpush.msra.mxu3 %v441_v15  ;;  %523 = vmatpush.msra.mxu0 %v4078_v16  ;;  %v432_v27 = vld [vmem:[%s8887_s1 + $0x30] sm:$0xff]  ;;  %v4070_v29 = vld [vmem:[%s8887_s1 + $0xf8] sm:$0xff]  ;;  %v5256_v30 = vld [vmem:[%s5235_s27] sm:$0xff] }
  0x24   : > { %552 = vmatpush.msra.mxu1 %v4079_v17  ;;  %581 = vmatpush.msra.mxu2 %v4080_v18  ;;  %v4069_v28 = vld [vmem:[%s8887_s1 + $0xf0] sm:$0xff]  ;;  %v5259_v31 = vld [vmem:[%s5235_s27 + $0x8] sm:$0xff]  ;;  %v4071_v32 = vld [vmem:[%s8887_s1 + $0x100] sm:$0xff]  ;;  %v486_v34 = vrot.slane %v5256_v30, 1 }
  0x25   : > { %627 = vmatpush.msra.mxu3 %v438_v19  ;;  %524 = vmatpush.msra.mxu0 %v4075_v20  ;;  %v429_v33 = vld [vmem:[%s8887_s1 + $0x18] sm:$0xff]  ;;  %v487_v35 = vrot.slane %v5259_v31, 1  ;;  %v4067_v37 = vld [vmem:[%s8887_s1 + $0xe0] sm:$0xff]  ;;  %v4068_v38 = vld [vmem:[%s8887_s1 + $0xe8] sm:$0xff] }
  0x26   : > { %553 = vmatpush.msra.mxu1 %v4076_v21  ;;  %582 = vmatpush.msra.mxu2 %v4077_v22  ;;  %v4066_v36 = vld [vmem:[%s8887_s1 + $0xd8] sm:$0xff]  ;;  %v426_v39 = vld [vmem:[%s8887_s1] sm:$0xff]  ;;  %v5283_v41 = vld [vmem:[%s5235_s27 + $0x10] sm:$0xff] }
  0x27   : > { %628 = vmatpush.msra.mxu3 %v435_v23  ;;  %525 = vmatpush.msra.mxu0 %v4072_v24  ;;  %v488_v40 = vsel %vm485_vm1, %v486_v34, %v487_v35  ;;  %v451_v42 = vld [vmem:[%s8887_s1 + $0xc8] sm:$0xf]  ;;  %v452_v43 = vld [vmem:[%s8887_s1 + $0xd0] sm:$0xf]  ;;  %v4148_v45 = vld [vmem:[%s8887_s1 + $0x278] sm:$0xf] }
  0x28   : > { %554 = vmatpush.msra.mxu1 %v4073_v25  ;;  %583 = vmatpush.msra.mxu2 %v4074_v26  ;;  %v4147_v44 = vld [vmem:[%s8887_s1 + $0x270] sm:$0xf]  ;;  %v489_v46 = vrot.slane %v5283_v41, 1  ;;  %v449_v48 = vld [vmem:[%s8887_s1 + $0xb8] sm:$0xff]  ;;  %v4145_v50 = vld [vmem:[%s8887_s1 + $0x260] sm:$0xff]  ;;  %v732_v25 = vrot.slane %v5256_v30, 2 }
  0x29   : > { %629 = vmatpush.msra.mxu3 %v432_v27  ;;  %526 = vmatpush.msra.mxu0 %v4069_v28  ;;  %v448_v47 = vld [vmem:[%s8887_s1 + $0xb0] sm:$0xff]  ;;  %v4144_v49 = vld [vmem:[%s8887_s1 + $0x258] sm:$0xff]  ;;  %v446_v52 = vld [vmem:[%s8887_s1 + $0xa0] sm:$0xff]  ;;  %v733_v26 = vrot.slane %v5259_v31, 2 }
  0x2a   : > { %555 = vmatpush.msra.mxu1 %v4070_v29  ;;  %584 = vmatpush.msra.mxu2 %v4071_v32  ;;  %v445_v51 = vld [vmem:[%s8887_s1 + $0x98] sm:$0xff]  ;;  %v4141_v53 = vld [vmem:[%s8887_s1 + $0x240] sm:$0xff]  ;;  %v4142_v54 = vld [vmem:[%s8887_s1 + $0x248] sm:$0xff]  ;;  %v490_v55 = vsel %vm485_vm1, %v487_v35, %v489_v46 }
  0x2b   : > { %630 = vmatpush.msra.mxu3 %v429_v33  ;;  %527 = vmatpush.msra.mxu0 %v4066_v36  ;;  %v5333_v56 = vld [vmem:[%s5235_s27 + $0x18] sm:$0xff]  ;;  %v442_v57 = vld [vmem:[%s8887_s1 + $0x80] sm:$0xff]  ;;  %v443_v58 = vld [vmem:[%s8887_s1 + $0x88] sm:$0xff]  ;;  %v5467_v35 = vsel %vm731_vm3, %v732_v25, %v733_v26  ;;  %v885_v36 = vrot.slane %v5256_v30, 3 }
  0x2c   : > { %556 = vmatpush.msra.mxu1 %v4067_v37  ;;  %585 = vmatpush.msra.mxu2 %v4068_v38  ;;  %v4138_v59 = vld [vmem:[%s8887_s1 + $0x228] sm:$0xff]  ;;  %v4139_v60 = vld [vmem:[%s8887_s1 + $0x230] sm:$0xff]  ;;  %v491_v61 = vrot.slane %v5333_v56, 1  ;;  %v4136_v1 = vld [vmem:[%s8887_s1 + $0x218] sm:$0xff]  ;;  %v886_v37 = vrot.slane %v5259_v31, 3 }
  0x2d   : > { %631 = vmatpush.msra.mxu3 %v426_v39  ;;  %4094 = vmatmul.msk.f32.vlgmr.msra.gmra.mxu0 %vm493_vm2, %v488_v40  ;;  %v439_v62 = vld [vmem:[%s8887_s1 + $0x68] sm:$0xff]  ;;  %v440_v63 = vld [vmem:[%s8887_s1 + $0x70] sm:$0xff]  ;;  %v437_v3 = vld [vmem:[%s8887_s1 + $0x58] sm:$0xff] }
  0x2e   : > { %4099 = vmatmul.msk.f32.vlgmr.msra.gmra.mxu1 %vm493_vm2, %v488_v40  ;;  %4104 = vmatmul.msk.f32.vlgmr.msra.gmra.mxu2 %vm493_vm2, %v488_v40  ;;  %v4135_v0 = vld [vmem:[%s8887_s1 + $0x210] sm:$0xff]  ;;  %v4132_v4 = vld [vmem:[%s8887_s1 + $0x1f8] sm:$0xff]  ;;  %v4133_v5 = vld [vmem:[%s8887_s1 + $0x200] sm:$0xff]  ;;  %v492_v6 = vsel %vm485_vm1, %v489_v46, %v491_v61  ;;  %v735_v46 = vrot.slane %v5283_v41, 2 }
  0x2f   : > { %4109 = vmatmul.msk.f32.vlgmr.msra.gmra.mxu3 %vm493_vm2, %v5256_v30  ;;  %4113 = vmatpush.msk.msrb.mxu0 %vm502_vm0, %v451_v42  ;;  %v436_v2 = vld [vmem:[%s8887_s1 + $0x50] sm:$0xff]  ;;  %v433_v7 = vld [vmem:[%s8887_s1 + $0x38] sm:$0xff]  ;;  %v434_v8 = vld [vmem:[%s8887_s1 + $0x40] sm:$0xff] }
  0x30   : > { %4118 = vmatpush.msk.msrb.mxu1 %vm502_vm0, %v452_v43  ;;  %4150 = vmatpush.msk.msrb.mxu2 %vm502_vm0, %v4147_v44  ;;  %v4129_v9 = vld [vmem:[%s8887_s1 + $0x1e0] sm:$0xff]  ;;  %v4130_v10 = vld [vmem:[%s8887_s1 + $0x1e8] sm:$0xff]  ;;  %v4127_v14 = vld [vmem:[%s8887_s1 + $0x1d0] sm:$0xff]  ;;  %v5490_v43 = vsel %vm884_vm4, %v885_v36, %v886_v37 }
  0x31   : > { %4155 = vmatpush.msk.msrb.mxu3 %vm502_vm0, %v4148_v45  ;;  %653 = vmatpush.msrb.mxu0 %v448_v47  ;;  %v430_v11 = vld [vmem:[%s8887_s1 + $0x20] sm:$0xff]  ;;  %v431_v12 = vld [vmem:[%s8887_s1 + $0x28] sm:$0xff]  ;;  %v428_v16 = vld [vmem:[%s8887_s1 + $0x10] sm:$0xff] }
  0x32   : > { %682 = vmatpush.msrb.mxu1 %v449_v48  ;;  %764 = vmatpush.msrb.mxu2 %v4144_v49  ;;  %v4126_v13 = vld [vmem:[%s8887_s1 + $0x1c8] sm:$0xff]  ;;  %v4123_v17 = vld [vmem:[%s8887_s1 + $0x1b0] sm:$0xff]  ;;  %v4124_v18 = vld [vmem:[%s8887_s1 + $0x1b8] sm:$0xff] }
  0x33   : > { %793 = vmatpush.msrb.mxu3 %v4145_v50  ;;  %654 = vmatpush.msrb.mxu0 %v445_v51  ;;  %v427_v15 = vld [vmem:[%s8887_s1 + $0x8] sm:$0xff]  ;;  %v4149_v19 = vld [vmem:[%s8887_s1 + $0x280] sm:$0xf]  ;;  %v4190_v21 = vld [vmem:[%s8887_s1 + $0x350] sm:$0xf] }
  0x34   : > { %683 = vmatpush.msrb.mxu1 %v446_v52  ;;  %765 = vmatpush.msrb.mxu2 %v4141_v53  ;;  %v4189_v20 = vld [vmem:[%s8887_s1 + $0x348] sm:$0xf]  ;;  %v4191_v22 = vld [vmem:[%s8887_s1 + $0x358] sm:$0xf]  ;;  %v4186_v24 = vld [vmem:[%s8887_s1 + $0x330] sm:$0xff]  ;;  %v5522_v53 = vsel %vm731_vm3, %v733_v26, %v735_v46 }
  0x35   : > { %794 = vmatpush.msrb.mxu3 %v4142_v54  ;;  %4095 = vmatmul.msk.f32.gmra.mxu0 %vm493_vm2, %v490_v55  ;;  %v4146_v23 = vld [vmem:[%s8887_s1 + $0x268] sm:$0xff]  ;;  %v4187_v27 = vld [vmem:[%s8887_s1 + $0x338] sm:$0xff]  ;;  %v4188_v28 = vld [vmem:[%s8887_s1 + $0x340] sm:$0xff] }
  0x36   : > { %4100 = vmatmul.msk.f32.gmra.mxu1 %vm493_vm2, %v490_v55  ;;  %4105 = vmatmul.msk.f32.gmra.mxu2 %vm493_vm2, %v490_v55  ;;  %v4143_v29 = vld [vmem:[%s8887_s1 + $0x250] sm:$0xff]  ;;  %v4183_v32 = vld [vmem:[%s8887_s1 + $0x318] sm:$0xff]  ;;  %v4184_v33 = vld [vmem:[%s8887_s1 + $0x320] sm:$0xff] }
  0x37   : > { %4110 = vmatmul.msk.f32.gmra.mxu3 %vm493_vm2, %v5259_v31  ;;  %655 = vmatpush.msrb.mxu0 %v442_v57  ;;  %v4185_v34 = vld [vmem:[%s8887_s1 + $0x328] sm:$0xff]  ;;  %v4140_v38 = vld [vmem:[%s8887_s1 + $0x238] sm:$0xff]  ;;  %v4180_v39 = vld [vmem:[%s8887_s1 + $0x300] sm:$0xff] }
  0x38   : > { %684 = vmatpush.msrb.mxu1 %v443_v58  ;;  %766 = vmatpush.msrb.mxu2 %v4138_v59  ;;  %v4181_v40 = vld [vmem:[%s8887_s1 + $0x308] sm:$0xff]  ;;  %v4182_v42 = vld [vmem:[%s8887_s1 + $0x310] sm:$0xff]  ;;  %v4137_v44 = vld [vmem:[%s8887_s1 + $0x220] sm:$0xff] }
  0x39   : > { %795 = vmatpush.msrb.mxu3 %v4139_v60  ;;  %656 = vmatpush.msrb.mxu0 %v439_v62  ;;  %v4177_v45 = vld [vmem:[%s8887_s1 + $0x2e8] sm:$0xff]  ;;  %v4178_v47 = vld [vmem:[%s8887_s1 + $0x2f0] sm:$0xff]  ;;  %v4179_v48 = vld [vmem:[%s8887_s1 + $0x2f8] sm:$0xff] }
  0x3a   : > { %685 = vmatpush.msrb.mxu1 %v440_v63  ;;  %767 = vmatpush.msrb.mxu2 %v4135_v0  ;;  %v4134_v49 = vld [vmem:[%s8887_s1 + $0x208] sm:$0xff]  ;;  %v4174_v50 = vld [vmem:[%s8887_s1 + $0x2d0] sm:$0xff]  ;;  %v4175_v51 = vld [vmem:[%s8887_s1 + $0x2d8] sm:$0xff] }
  0x3b   : > { %796 = vmatpush.msrb.mxu3 %v4136_v1  ;;  %657 = vmatpush.msrb.mxu0 %v436_v2  ;;  %v4176_v52 = vld [vmem:[%s8887_s1 + $0x2e0] sm:$0xff]  ;;  %v4131_v54 = vld [vmem:[%s8887_s1 + $0x1f0] sm:$0xff]  ;;  %v4171_v55 = vld [vmem:[%s8887_s1 + $0x2b8] sm:$0xff] }
  0x3c   : > { %686 = vmatpush.msrb.mxu1 %v437_v3  ;;  %768 = vmatpush.msrb.mxu2 %v4132_v4  ;;  %v4172_v57 = vld [vmem:[%s8887_s1 + $0x2c0] sm:$0xff]  ;;  %v4173_v58 = vld [vmem:[%s8887_s1 + $0x2c8] sm:$0xff]  ;;  %v4128_v59 = vld [vmem:[%s8887_s1 + $0x1d8] sm:$0xff] }
  0x3d   : > { %797 = vmatpush.msrb.mxu3 %v4133_v5  ;;  %4096 = vmatmul.msk.f32.gmra.mxu0 %vm493_vm2, %v492_v6  ;;  %v4168_v60 = vld [vmem:[%s8887_s1 + $0x2a0] sm:$0xff]  ;;  %v4169_v62 = vld [vmem:[%s8887_s1 + $0x2a8] sm:$0xff]  ;;  %v4170_v63 = vld [vmem:[%s8887_s1 + $0x2b0] sm:$0xff] }
  0x3e   : > { %4101 = vmatmul.msk.f32.gmra.mxu1 %vm493_vm2, %v492_v6  ;;  %4106 = vmatmul.msk.f32.gmra.mxu2 %vm493_vm2, %v492_v6  ;;  %v4125_v0 = vld [vmem:[%s8887_s1 + $0x1c0] sm:$0xff]  ;;  %v4165_v1 = vld [vmem:[%s8887_s1 + $0x288] sm:$0xff]  ;;  %v4166_v2 = vld [vmem:[%s8887_s1 + $0x290] sm:$0xff] }
  0x3f   : > { %4111 = vmatmul.msk.f32.gmra.mxu3 %vm493_vm2, %v5283_v41  ;;  %658 = vmatpush.msrb.mxu0 %v433_v7  ;;  %v4167_v3 = vld [vmem:[%s8887_s1 + $0x298] sm:$0xff]  ;;  %v4231_v5 = vld [vmem:[%s8887_s1 + $0x420] sm:$0xf]  ;;  %v4232_v6 = vld [vmem:[%s8887_s1 + $0x428] sm:$0xf] }
  0x40   : > { %687 = vmatpush.msrb.mxu1 %v434_v8  ;;  %769 = vmatpush.msrb.mxu2 %v4129_v9  ;;  %v4233_v7 = vld [vmem:[%s8887_s1 + $0x430] sm:$0xf]  ;;  %v4228_v8 = vld [vmem:[%s8887_s1 + $0x408] sm:$0xff]  ;;  %v4214_v26 = vld [vmem:[%s8887_s1 + $0x398] sm:$0xff] }
  0x41   : > { %798 = vmatpush.msrb.mxu3 %v4130_v10  ;;  %659 = vmatpush.msrb.mxu0 %v430_v11  ;;  %v4229_v9 = vld [vmem:[%s8887_s1 + $0x410] sm:$0xff]  ;;  %v4230_v10 = vld [vmem:[%s8887_s1 + $0x418] sm:$0xff] }
  0x42   : > { %688 = vmatpush.msrb.mxu1 %v431_v12  ;;  %770 = vmatpush.msrb.mxu2 %v4126_v13  ;;  %v4225_v11 = vld [vmem:[%s8887_s1 + $0x3f0] sm:$0xff]  ;;  %v4226_v12 = vld [vmem:[%s8887_s1 + $0x3f8] sm:$0xff]  ;;  %v4227_v13 = vld [vmem:[%s8887_s1 + $0x400] sm:$0xff] }
  0x43   : > { %799 = vmatpush.msrb.mxu3 %v4127_v14  ;;  %660 = vmatpush.msrb.mxu0 %v427_v15  ;;  %v4222_v14 = vld [vmem:[%s8887_s1 + $0x3d8] sm:$0xff]  ;;  %v4223_v15 = vld [vmem:[%s8887_s1 + $0x3e0] sm:$0xff]  ;;  %v4213_v25 = vld [vmem:[%s8887_s1 + $0x390] sm:$0xff] }
  0x44   : > { %689 = vmatpush.msrb.mxu1 %v428_v16  ;;  %771 = vmatpush.msrb.mxu2 %v4123_v17  ;;  %v4224_v16 = vld [vmem:[%s8887_s1 + $0x3e8] sm:$0xff]  ;;  %v4219_v17 = vld [vmem:[%s8887_s1 + $0x3c0] sm:$0xff]  ;;  %v4209_v36 = vld [vmem:[%s8887_s1 + $0x370] sm:$0xff] }
  0x45   : > { %800 = vmatpush.msrb.mxu3 %v4124_v18  ;;  %4097 = vmatmul.msk.f32.gmra.mxu0 %vm493_vm2, %v491_v61  ;;  %v4220_v18 = vld [vmem:[%s8887_s1 + $0x3c8] sm:$0xff] }
  0x46   : > { %4102 = vmatmul.msk.f32.gmra.mxu1 %vm493_vm2, %v491_v61  ;;  %4107 = vmatmul.msk.f32.gmra.mxu2 %vm493_vm2, %v491_v61  ;;  %v5551_v61 = vrot.slane %v5333_v56, 2 }
  0x47   : > { %4112 = vmatmul.msk.f32.gmra.mxu3 %vm493_vm2, %v5333_v56  ;;  %4160 = vmatpush.msk.msra.mxu0 %vm502_vm0, %v4149_v19  ;;  %v1038_v19 = vrot.slane %v5256_v30, 4 }
  0x48   : > { %4192 = vmatpush.msk.msra.mxu1 %vm502_vm0, %v4189_v20  ;;  %4197 = vmatpush.msk.msra.mxu2 %vm502_vm0, %v4190_v21  ;;  %v5573_v4 = vsel %vm731_vm3, %v735_v46, %v5551_v61  ;;  %v1039_v20 = vrot.slane %v5259_v31, 4  ;;  %v4221_v21 = vld [vmem:[%s8887_s1 + $0x3d0] sm:$0xff] }
  0x49   : > { %4202 = vmatpush.msk.msra.mxu3 %vm502_vm0, %v4191_v22  ;;  %822 = vmatpush.msra.mxu0 %v4146_v23  ;;  %v4216_v22 = vld [vmem:[%s8887_s1 + $0x3a8] sm:$0xff]  ;;  %v4217_v23 = vld [vmem:[%s8887_s1 + $0x3b0] sm:$0xff] }
  0x4a   : > { %919 = vmatpush.msra.mxu1 %v4186_v24  ;;  %948 = vmatpush.msra.mxu2 %v4187_v27  ;;  %v1040_v24 = vsel %vm502_vm0, %v1038_v19, %v1039_v20  ;;  %v4215_v27 = vld [vmem:[%s8887_s1 + $0x3a0] sm:$0xff]  ;;  %v1206_v19 = vld [vmem:[%s8867_s3 + $0xb8] sm:$0xff] }
  0x4b   : > { %977 = vmatpush.msra.mxu3 %v4188_v28  ;;  %823 = vmatpush.msra.mxu0 %v4143_v29  ;;  %v888_v28 = vrot.slane %v5283_v41, 3  ;;  %v4210_v29 = vld [vmem:[%s8887_s1 + $0x378] sm:$0xff] }
  0x4c   : > { %920 = vmatpush.msra.mxu1 %v4183_v32  ;;  %949 = vmatpush.msra.mxu2 %v4184_v33  ;;  %v4211_v32 = vld [vmem:[%s8887_s1 + $0x380] sm:$0xff]  ;;  %v4212_v33 = vld [vmem:[%s8887_s1 + $0x388] sm:$0xff] }
  0x4d   : > { %978 = vmatpush.msra.mxu3 %v4185_v34  ;;  %4114 = vmatmul.msk.f32.vlgmr.msrb.gmra.mxu0 %vm493_vm2, %v5256_v30  ;;  %v4207_v34 = vld [vmem:[%s8887_s1 + $0x360] sm:$0xff] }
  0x4e   : > { %4119 = vmatmul.msk.f32.vlgmr.msrb.gmra.mxu1 %vm493_vm2, %v5256_v30  ;;  %4151 = vmatmul.msk.f32.vlgmr.msrb.gmra.mxu2 %vm493_vm2, %v5467_v35  ;;  %v4218_v30 = vld [vmem:[%s8887_s1 + $0x3b8] sm:$0xff] }
  0x4f   : > { %4156 = vmatmul.msk.f32.vlgmr.msrb.gmra.mxu3 %vm493_vm2, %v5467_v35  ;;  %824 = vmatpush.msra.mxu0 %v4140_v38  ;;  %v889_v38 = vsel %vm884_vm4, %v886_v37, %v888_v28 }
  0x50   : > { %921 = vmatpush.msra.mxu1 %v4180_v39  ;;  %950 = vmatpush.msra.mxu2 %v4181_v40  ;;  %v890_v39 = vrot.slane %v5333_v56, 3 }
  0x51   : > { %979 = vmatpush.msra.mxu3 %v4182_v42  ;;  %825 = vmatpush.msra.mxu0 %v4137_v44 }
  0x52   : > { %922 = vmatpush.msra.mxu1 %v4177_v45  ;;  %951 = vmatpush.msra.mxu2 %v4178_v47  ;;  %v891_v40 = vsel %vm884_vm4, %v888_v28, %v890_v39  ;;  %v1043_v45 = vrot.slane %v5333_v56, 4  ;;  %v1202_v28 = vld [vmem:[%s8867_s3 + $0x98] sm:$0xff] }
  0x53   : > { %980 = vmatpush.msra.mxu3 %v4179_v48  ;;  %826 = vmatpush.msra.mxu0 %v4134_v49 }
  0x54   : > { %923 = vmatpush.msra.mxu1 %v4174_v50  ;;  %952 = vmatpush.msra.mxu2 %v4175_v51 }
  0x55   : > { %981 = vmatpush.msra.mxu3 %v4176_v52  ;;  %4115 = vmatmul.msk.f32.gmra.mxu0 %vm493_vm2, %v5259_v31 }
  0x56   : > { %4120 = vmatmul.msk.f32.gmra.mxu1 %vm493_vm2, %v5259_v31  ;;  %4152 = vmatmul.msk.f32.gmra.mxu2 %vm493_vm2, %v5522_v53  ;;  %v425_v31 = vld [vmem:[%s5235_s27 + $0x20] sm:$0x3]  ;;  %s8792_s27 = sand.u32 1, %s5029_s22  }
  0x57   : > { %4157 = vmatmul.msk.f32.gmra.mxu3 %vm493_vm2, %v5522_v53  ;;  %827 = vmatpush.msra.mxu0 %v4131_v54  ;;  %v892_v37 = vrot.slane %v425_v31, 3  ;;  %v1045_v47 = vrot.slane %v425_v31, 4  ;;  %v1198_v31 = vld [vmem:[%s8867_s3 + $0x78] sm:$0xff]  ;;  %s415_s15 = scalar_lea.vmem [#allocation4], %s8792_s27  ;;  %s409_s20 = scalar_lea.vmem [#allocation2], %s8792_s27 }
  0x58   : > { %924 = vmatpush.msra.mxu1 %v4171_v55  ;;  %953 = vmatpush.msra.mxu2 %v4172_v57  ;;  %s8803_s30 = sshll.u32 %s415_s15, 4  ;;  %s8808_s17 = sshll.u32 %s409_s20, 4  ;;  %s3977_s30 = int_to_ptr.vmem [resolvable:$true] %s8803_s30  ;;  %s3964_s17 = int_to_ptr.vmem [resolvable:$true] %s8808_s17 }
  0x59   : > { %982 = vmatpush.msra.mxu3 %v4173_v58  ;;  %828 = vmatpush.msra.mxu0 %v4128_v59  ;;  %v893_v42 = vsel %vm884_vm4, %v890_v39, %v892_v37  ;;  %v1267_v39 = vld [vmem:[%s8867_s3 + $0x2a0] sm:$0xff]  ;;  %s3953_s25 = scalar_lea.sflag [#allocation5], %s8792_s27 }
  0x5a   : > { %925 = vmatpush.msra.mxu1 %v4168_v60  ;;  %954 = vmatpush.msra.mxu2 %v4169_v62 }
  0x5b   : > { %983 = vmatpush.msra.mxu3 %v4170_v63  ;;  %829 = vmatpush.msra.mxu0 %v4125_v0 }
  0x5c   : > { %926 = vmatpush.msra.mxu1 %v4165_v1  ;;  %955 = vmatpush.msra.mxu2 %v4166_v2  ;;  %v1213_v1 = vld [vmem:[%s8867_s3 + $0xf0] sm:$0xff] }
  0x5d   : > { %984 = vmatpush.msra.mxu3 %v4167_v3  ;;  %4116 = vmatmul.msk.f32.gmra.mxu0 %vm493_vm2, %v5283_v41  ;;  %v1245_v2 = vld [vmem:[%s8867_s3 + $0x1f0] sm:$0xff]  ;;  %v1214_v3 = vld [vmem:[%s8867_s3 + $0xf8] sm:$0xff] }
  0x5e   : > { %4121 = vmatmul.msk.f32.gmra.mxu1 %vm493_vm2, %v5283_v41  ;;  %4153 = vmatmul.msk.f32.gmra.mxu2 %vm493_vm2, %v5573_v4 }
  0x5f   : > { %4158 = vmatmul.msk.f32.gmra.mxu3 %vm493_vm2, %v5573_v4  ;;  %4234 = vmatpush.msk.msrb.mxu0 %vm502_vm0, %v4231_v5 }
  0x60   : > { %4239 = vmatpush.msk.msrb.mxu1 %vm502_vm0, %v4232_v6  ;;  %4244 = vmatpush.msk.msrb.mxu2 %vm502_vm0, %v4233_v7  ;;  %v1211_v7 = vld [vmem:[%s8867_s3 + $0xe0] sm:$0xff] }
  0x61   : > { %1072 = vmatpush.msrb.mxu0 %v4228_v8  ;;  %1286 = vmatpush.msrb.mxu3 %v1213_v1  ;;  %v1243_v8 = vld [vmem:[%s8867_s3 + $0x1e0] sm:$0xff] }
  0x62   : > { %1101 = vmatpush.msrb.mxu1 %v4229_v9  ;;  %1130 = vmatpush.msrb.mxu2 %v4230_v10  ;;  %v1212_v9 = vld [vmem:[%s8867_s3 + $0xe8] sm:$0xff]  ;;  %v1209_v10 = vld [vmem:[%s8867_s3 + $0xd0] sm:$0xff]  ;;  %v1263_v1 = vld [vmem:[%s8867_s3 + $0x280] sm:$0xff] }
  0x63   : > { %1073 = vmatpush.msrb.mxu0 %v4225_v11  ;;  %1287 = vmatpush.msrb.mxu3 %v1211_v7  ;;  %v1241_v11 = vld [vmem:[%s8867_s3 + $0x1d0] sm:$0xff]  ;;  %v1223_v7 = vld [vmem:[%s8867_s3 + $0x140] sm:$0xff] }
  0x64   : > { %1102 = vmatpush.msrb.mxu1 %v4226_v12  ;;  %1131 = vmatpush.msrb.mxu2 %v4227_v13  ;;  %v1210_v12 = vld [vmem:[%s8867_s3 + $0xd8] sm:$0xff]  ;;  %v1207_v13 = vld [vmem:[%s8867_s3 + $0xc0] sm:$0xff] }
  0x65   : > { %4117 = vmatmul.msk.f32.gmra.mxu0 %vm493_vm2, %v5333_v56  ;;  %1288 = vmatpush.msrb.mxu3 %v1209_v10  ;;  %v1189_v10 = vld [vmem:[%s8867_s3 + $0x30] sm:$0xff] }
  0x66   : > { %4122 = vmatmul.msk.f32.gmra.mxu1 %vm493_vm2, %v5333_v56  ;;  %4154 = vmatmul.msk.f32.gmra.mxu2 %vm493_vm2, %v5551_v61 }
  0x67   : > { %4159 = vmatmul.msk.f32.gmra.mxu3 %vm493_vm2, %v5551_v61  ;;  %1074 = vmatpush.msrb.mxu0 %v4222_v14  ;;  %v1239_v14 = vld [vmem:[%s8867_s3 + $0x1c0] sm:$0xff] }
  0x68   : > { %1103 = vmatpush.msrb.mxu1 %v4223_v15  ;;  %1132 = vmatpush.msrb.mxu2 %v4224_v16  ;;  %v1208_v16 = vld [vmem:[%s8867_s3 + $0xc8] sm:$0xff] }
  0x69   : > { %1075 = vmatpush.msrb.mxu0 %v4219_v17  ;;  %1289 = vmatpush.msrb.mxu3 %v1207_v13  ;;  %v1205_v17 = vld [vmem:[%s8867_s3 + $0xb0] sm:$0xff] }
  0x6a   : > { %1104 = vmatpush.msrb.mxu1 %v4220_v18  ;;  %1133 = vmatpush.msrb.mxu2 %v4221_v21  ;;  %v1237_v18 = vld [vmem:[%s8867_s3 + $0x1b0] sm:$0xff] }
  0x6b   : > { %1076 = vmatpush.msrb.mxu0 %v4216_v22  ;;  %1290 = vmatpush.msrb.mxu3 %v1205_v17 }
  0x6c   : > { %1105 = vmatpush.msrb.mxu1 %v4217_v23  ;;  %1134 = vmatpush.msrb.mxu2 %v4218_v30  ;;  %v1203_v23 = vld [vmem:[%s8867_s3 + $0xa0] sm:$0xff]  ;;  %v1204_v30 = vld [vmem:[%s8867_s3 + $0xa8] sm:$0xff] }
  0x6d   : > { %4161 = vmatmul.msk.f32.vlgmr.msra.gmra.mxu0 %vm493_vm2, %v5467_v35  ;;  %v4208_v35 = vld [vmem:[%s8887_s1 + $0x368] sm:$0xff]  ;;  %1291 = vmatpush.msrb.mxu3 %v1203_v23  ;;  %v1219_v23 = vld [vmem:[%s8867_s3 + $0x120] sm:$0xff] }
  0x6e   : > { %4193 = vmatmul.msk.f32.vlgmr.msra.gmra.mxu1 %vm493_vm2, %v5490_v43  ;;  %4198 = vmatmul.msk.f32.vlgmr.msra.gmra.mxu2 %vm493_vm2, %v5490_v43 }
  0x6f   : > { %4203 = vmatmul.msk.f32.vlgmr.msra.gmra.mxu3 %vm493_vm2, %v5490_v43  ;;  %1077 = vmatpush.msrb.mxu0 %v4213_v25  ;;  %v1041_v43 = vrot.slane %v5283_v41, 4  ;;  %v1046_v41 = vsel %vm502_vm0, %v1043_v45, %v1045_v47  ;;  %v1201_v25 = vld [vmem:[%s8867_s3 + $0x90] sm:$0xff] }
  0x70   : > { %1106 = vmatpush.msrb.mxu1 %v4214_v26  ;;  %1135 = vmatpush.msrb.mxu2 %v4215_v27  ;;  %v1233_v26 = vld [vmem:[%s8867_s3 + $0x190] sm:$0xff]  ;;  %v1271_v27 = vld [vmem:[%s8867_s3 + $0x2c0] sm:$0xff] }
  0x71   : > { %1078 = vmatpush.msrb.mxu0 %v4210_v29  ;;  %v1042_v44 = vsel %vm502_vm0, %v1039_v20, %v1041_v43  ;;  %v1044_v46 = vsel %vm502_vm0, %v1041_v43, %v1043_v45  ;;  %v1199_v29 = vld [vmem:[%s8867_s3 + $0x80] sm:$0xff]  ;;  %1292 = vmatpush.msrb.mxu3 %v1201_v25  ;;  %v1265_v45 = vld [vmem:[%s8867_s3 + $0x290] sm:$0xff] }
  0x72   : > { %1107 = vmatpush.msrb.mxu1 %v4211_v32  ;;  %1136 = vmatpush.msrb.mxu2 %v4212_v33  ;;  %v1231_v32 = vld [vmem:[%s8867_s3 + $0x180] sm:$0xff]  ;;  %v1269_v33 = vld [vmem:[%s8867_s3 + $0x2b0] sm:$0xff] }
  0x73   : > { %1079 = vmatpush.msrb.mxu0 %v4207_v34  ;;  %v1200_v34 = vld [vmem:[%s8867_s3 + $0x88] sm:$0xff]  ;;  %1293 = vmatpush.msrb.mxu3 %v1199_v29  ;;  %v1195_v43 = vld [vmem:[%s8867_s3 + $0x60] sm:$0xff]  ;;  %v1193_v47 = vld [vmem:[%s8867_s3 + $0x50] sm:$0xff] }
  0x74   : > { %1108 = vmatpush.msrb.mxu1 %v4208_v35  ;;  %1137 = vmatpush.msrb.mxu2 %v4209_v36  ;;  %v1197_v36 = vld [vmem:[%s8867_s3 + $0x70] sm:$0xff]  ;;  %v1183_v29 = vld [vmem:[%s8867_s3] sm:$0xff] }
  0x75   : > { %4162 = vmatmul.msk.f32.gmra.mxu0 %vm493_vm2, %v5522_v53  ;;  %1294 = vmatpush.msrb.mxu3 %v1197_v36  ;;  %v1185_v25 = vld [vmem:[%s8867_s3 + $0x10] sm:$0xff]  ;;  %v1251_v36 = vld [vmem:[%s8867_s3 + $0x220] sm:$0xff] }
  0x76   : > { %4194 = vmatmul.msk.f32.gmra.mxu1 %vm493_vm2, %v889_v38  ;;  %4199 = vmatmul.msk.f32.gmra.mxu2 %vm493_vm2, %v889_v38 }
  0x77   : > { %4204 = vmatmul.msk.f32.gmra.mxu3 %vm493_vm2, %v889_v38  ;;  %1315 = vmatpush.msra.mxu0 %v1245_v2  ;;  %v1229_v38 = vld [vmem:[%s8867_s3 + $0x170] sm:$0xff]  ;;  %v1194_v2 = vld [vmem:[%s8867_s3 + $0x58] sm:$0xff] }
  0x78   : > { %1373 = vmatpush.msra.mxu2 %v1214_v3  ;;  %1347 = vmatpush.msra.mxu1 %v1271_v27  ;;  %v1191_v3 = vld [vmem:[%s8867_s3 + $0x40] sm:$0xff] }
  0x79   : > { %1316 = vmatpush.msra.mxu0 %v1243_v8  ;;  %1295 = vmatpush.msrb.mxu3 %v1195_v43  ;;  %v1261_v8 = vld [vmem:[%s8867_s3 + $0x270] sm:$0xff]  ;;  %v1255_v27 = vld [vmem:[%s8867_s3 + $0x240] sm:$0xff] }
  0x7a   : > { %1374 = vmatpush.msra.mxu2 %v1212_v9  ;;  %1348 = vmatpush.msra.mxu1 %v1269_v33  ;;  %v1192_v9 = vld [vmem:[%s8867_s3 + $0x48] sm:$0xff]  ;;  %v1253_v33 = vld [vmem:[%s8867_s3 + $0x230] sm:$0xff] }
  0x7b   : > { %1317 = vmatpush.msra.mxu0 %v1241_v11  ;;  %1296 = vmatpush.msrb.mxu3 %v1193_v47  ;;  %v1221_v11 = vld [vmem:[%s8867_s3 + $0x130] sm:$0xff] }
  0x7c   : > { %1375 = vmatpush.msra.mxu2 %v1210_v12  ;;  %1349 = vmatpush.msra.mxu1 %v1267_v39  ;;  %v1259_v12 = vld [vmem:[%s8867_s3 + $0x260] sm:$0xff]  ;;  %v4317_v47 = vld [vmem:[%s8867_s3 + $0x4b0] sm:$0xff] }
  0x7d   : > { %4163 = vmatmul.msk.f32.gmra.mxu0 %vm493_vm2, %v5573_v4  ;;  %1297 = vmatpush.msrb.mxu3 %v1191_v3  ;;  %v4319_v39 = vld [vmem:[%s8867_s3 + $0x4c0] sm:$0xff] }
  0x7e   : > { %4195 = vmatmul.msk.f32.gmra.mxu1 %vm493_vm2, %v891_v40  ;;  %4200 = vmatmul.msk.f32.gmra.mxu2 %vm493_vm2, %v891_v40  ;;  %v4315_v3 = vld [vmem:[%s8867_s3 + $0x4a0] sm:$0xff] }
  0x7f   : > { %4205 = vmatmul.msk.f32.gmra.mxu3 %vm493_vm2, %v891_v40  ;;  %1318 = vmatpush.msra.mxu0 %v1239_v14 }
  0x80   : > { %1376 = vmatpush.msra.mxu2 %v1208_v16  ;;  %1350 = vmatpush.msra.mxu1 %v1265_v45  ;;  %v1190_v16 = vld [vmem:[%s8867_s3 + $0x38] sm:$0xff]  ;;  %v1249_v45 = vld [vmem:[%s8867_s3 + $0x210] sm:$0xff] }
  0x81   : > { %1319 = vmatpush.msra.mxu0 %v1237_v18  ;;  %1298 = vmatpush.msrb.mxu3 %v1189_v10  ;;  %v4313_v10 = vld [vmem:[%s8867_s3 + $0x490] sm:$0xff] }
  0x82   : > { %1377 = vmatpush.msra.mxu2 %v1206_v19  ;;  %1351 = vmatpush.msra.mxu1 %v1263_v1  ;;  %v1187_v19 = vld [vmem:[%s8867_s3 + $0x20] sm:$0xff] }
  0x83   : > { %1299 = vmatpush.msrb.mxu3 %v1187_v19  ;;  %v1247_v1 = vld [vmem:[%s8867_s3 + $0x200] sm:$0xff] }
  0x84   : > { %1378 = vmatpush.msra.mxu2 %v1204_v30  ;;  %1352 = vmatpush.msra.mxu1 %v1261_v8  ;;  %v1188_v30 = vld [vmem:[%s8867_s3 + $0x28] sm:$0xff] }
  0x85   : > { %4164 = vmatmul.msk.f32.gmra.mxu0 %vm493_vm2, %v5551_v61  ;;  %1300 = vmatpush.msrb.mxu3 %v1185_v25  ;;  %v1272_v8 = vld [vmem:[%s8867_s3 + $0x2c8] sm:$0xff] }
  0x86   : > { %4196 = vmatmul.msk.f32.gmra.mxu1 %vm493_vm2, %v893_v42  ;;  %4201 = vmatmul.msk.f32.gmra.mxu2 %vm493_vm2, %v893_v42  ;;  %v1236_v25 = vld [vmem:[%s8867_s3 + $0x1a8] sm:$0xff] }
  0x87   : > { %4206 = vmatmul.msk.f32.gmra.mxu3 %vm493_vm2, %v893_v42  ;;  %1379 = vmatpush.msra.mxu2 %v1202_v28  ;;  %v1186_v28 = vld [vmem:[%s8867_s3 + $0x18] sm:$0xff] }
  0x88   : > { %1353 = vmatpush.msra.mxu1 %v1259_v12  ;;  %1301 = vmatpush.msrb.mxu3 %v1183_v29  ;;  %v1270_v12 = vld [vmem:[%s8867_s3 + $0x2b8] sm:$0xff] }
  0x89   : > { %1380 = vmatpush.msra.mxu2 %v1200_v34  ;;  %v1184_v34 = vld [vmem:[%s8867_s3 + $0x8] sm:$0xff]  ;;  %v1234_v29 = vld [vmem:[%s8867_s3 + $0x198] sm:$0xff] }
  0x8b   : > { %1381 = vmatpush.msra.mxu2 %v1198_v31 }
  0x8d   : > { %4235 = vmatmul.msk.f32.vlgmr.msrb.gmra.mxu0 %vm493_vm2, %v1040_v24 }
  0x8e   : > { %4240 = vmatmul.msk.f32.vlgmr.msrb.gmra.mxu1 %vm493_vm2, %v1040_v24  ;;  %4245 = vmatmul.msk.f32.vlgmr.msrb.gmra.mxu2 %vm493_vm2, %v1040_v24  ;;  %v1235_v24 = vld [vmem:[%s8867_s3 + $0x1a0] sm:$0xff] }
  0x8f   : > { %1320 = vmatpush.msra.mxu0 %v1235_v24  ;;  %v1257_v24 = vld [vmem:[%s8867_s3 + $0x250] sm:$0xff] }
  0x90   : > { %1354 = vmatpush.msra.mxu1 %v1257_v24 }
  0x91   : > { %1321 = vmatpush.msra.mxu0 %v1233_v26  ;;  %v1217_v26 = vld [vmem:[%s8867_s3 + $0x110] sm:$0xff] }
  0x92   : > { %1355 = vmatpush.msra.mxu1 %v1255_v27  ;;  %v4283_v27 = vld [vmem:[%s8867_s3 + $0x3a0] sm:$0xff] }
  0x93   : > { %1322 = vmatpush.msra.mxu0 %v1231_v32  ;;  %v1215_v32 = vld [vmem:[%s8867_s3 + $0x100] sm:$0xff] }
  0x94   : > { %1356 = vmatpush.msra.mxu1 %v1253_v33  ;;  %v4281_v33 = vld [vmem:[%s8867_s3 + $0x390] sm:$0xff] }
  0x95   : > { %4236 = vmatmul.msk.f32.gmra.mxu0 %vm493_vm2, %v1042_v44 }
  0x96   : > { %4241 = vmatmul.msk.f32.gmra.mxu1 %vm493_vm2, %v1042_v44  ;;  %4246 = vmatmul.msk.f32.gmra.mxu2 %vm493_vm2, %v1042_v44  ;;  %v1227_v44 = vld [vmem:[%s8867_s3 + $0x160] sm:$0xff] }
  0x97   : > { %1323 = vmatpush.msra.mxu0 %v1229_v38  ;;  %v1246_v38 = vld [vmem:[%s8867_s3 + $0x1f8] sm:$0xff]  ;;  %1357 = vmatpush.msra.mxu1 %v1251_v36  ;;  %v4307_v36 = vld [vmem:[%s8867_s3 + $0x460] sm:$0xff] }
  0x98   : > { %1402 = vmatpush.msra.mxu3 %v1246_v38  ;;  %v1232_v38 = vld [vmem:[%s8867_s3 + $0x188] sm:$0xff] }
  0x99   : > { %1324 = vmatpush.msra.mxu0 %v1227_v44  ;;  %1358 = vmatpush.msra.mxu1 %v1249_v45  ;;  %v4279_v45 = vld [vmem:[%s8867_s3 + $0x380] sm:$0xff] }
  0x9b   : > { %1359 = vmatpush.msra.mxu1 %v1247_v1  ;;  %v1262_v1 = vld [vmem:[%s8867_s3 + $0x278] sm:$0xff] }
  0x9d   : > { %4237 = vmatmul.msk.f32.gmra.mxu0 %vm493_vm2, %v1044_v46 }
  0x9e   : > { %4242 = vmatmul.msk.f32.gmra.mxu1 %vm493_vm2, %v1044_v46  ;;  %4247 = vmatmul.msk.f32.gmra.mxu2 %vm493_vm2, %v1044_v46  ;;  %v1196_v46 = vld [vmem:[%s8867_s3 + $0x68] sm:$0xff] }
  0x9f   : > { %1382 = vmatpush.msra.mxu2 %v1196_v46  ;;  %v1244_v46 = vld [vmem:[%s8867_s3 + $0x1e8] sm:$0xff] }
  0xa0   : > { %1403 = vmatpush.msra.mxu3 %v1244_v46  ;;  %v4305_v46 = vld [vmem:[%s8867_s3 + $0x450] sm:$0xff] }
  0xa1   : > { %1383 = vmatpush.msra.mxu2 %v1194_v2  ;;  %v1242_v2 = vld [vmem:[%s8867_s3 + $0x1d8] sm:$0xff] }
  0xa2   : > { %1404 = vmatpush.msra.mxu3 %v1242_v2  ;;  %v4277_v2 = vld [vmem:[%s8867_s3 + $0x370] sm:$0xff] }
  0xa3   : > { %1384 = vmatpush.msra.mxu2 %v1192_v9  ;;  %v4287_v9 = vld [vmem:[%s8867_s3 + $0x3c0] sm:$0xff] }
  0xa4   : > { %1551 = vmatpush.msrb.mxu1 %v4287_v9 }
  0xa5   : > { %4238 = vmatmul.msk.f32.gmra.mxu0 %vm493_vm2, %v1046_v41  ;;  %1385 = vmatpush.msra.mxu2 %v1190_v16  ;;  %v4285_v16 = vld [vmem:[%s8867_s3 + $0x3b0] sm:$0xff] }
  0xa6   : > { %4243 = vmatmul.msk.f32.gmra.mxu1 %vm493_vm2, %v1046_v41  ;;  %4248 = vmatmul.msk.f32.gmra.mxu2 %vm493_vm2, %v1046_v41  ;;  %v1225_v41 = vld [vmem:[%s8867_s3 + $0x150] sm:$0xff]  ;;  %vm3942_vm2 = vcmask 73728  }
  0xa7   : > { %1325 = vmatpush.msra.mxu0 %v1225_v41  ;;  %1386 = vmatpush.msra.mxu2 %v1188_v30 }
  0xa8   : > { %1552 = vmatpush.msrb.mxu1 %v4285_v16  ;;  %v4301_v16 = vld [vmem:[%s8867_s3 + $0x430] sm:$0xff] }
  0xa9   : > { %1326 = vmatpush.msra.mxu0 %v1223_v7  ;;  %1387 = vmatpush.msra.mxu2 %v1186_v28  ;;  %v1240_v7 = vld [vmem:[%s8867_s3 + $0x1c8] sm:$0xff]  ;;  %v4309_v28 = vld [vmem:[%s8867_s3 + $0x470] sm:$0xff] }
  0xaa   : > { %v5726_v48 = vpop.f32.mrf.mxu0  ;;  %1405 = vmatpush.msra.mxu3 %v1240_v7  ;;  %1553 = vmatpush.msrb.mxu1 %v4283_v27  ;;  %v4303_v7 = vld [vmem:[%s8867_s3 + $0x440] sm:$0xff] }
  0xab   : > { %v5728_v56 = vpop.f32.mrf.mxu1  ;;  %1327 = vmatpush.msra.mxu0 %v1221_v11  ;;  %1388 = vmatpush.msra.mxu2 %v1184_v34  ;;  %v1238_v11 = vld [vmem:[%s8867_s3 + $0x1b8] sm:$0xff] }
  0xac   : > { %1406 = vmatpush.msra.mxu3 %v1238_v11  ;;  %1554 = vmatpush.msrb.mxu1 %v4281_v33  ;;  %v1260_v11 = vld [vmem:[%s8867_s3 + $0x268] sm:$0xff] }
  0xad   : > { %1328 = vmatpush.msra.mxu0 %v1219_v23  ;;  %1580 = vmatpush.msrb.mxu2 %v4319_v39  ;;  %v4311_v23 = vld [vmem:[%s8867_s3 + $0x480] sm:$0xff]  ;;  %v1264_v39 = vld [vmem:[%s8867_s3 + $0x288] sm:$0xff] }
  0xae   : > { %1407 = vmatpush.msra.mxu3 %v1236_v25  ;;  %1555 = vmatpush.msrb.mxu1 %v4279_v45  ;;  %v1258_v25 = vld [vmem:[%s8867_s3 + $0x258] sm:$0xff] }
  0xaf   : > { %1329 = vmatpush.msra.mxu0 %v1217_v26  ;;  %1581 = vmatpush.msrb.mxu2 %v4317_v47  ;;  %v1268_v26 = vld [vmem:[%s8867_s3 + $0x2a8] sm:$0xff]  ;;  %v1230_v47 = vld [vmem:[%s8867_s3 + $0x178] sm:$0xff] }
  0xb0   : > { %1408 = vmatpush.msra.mxu3 %v1234_v29  ;;  %1556 = vmatpush.msrb.mxu1 %v4277_v2  ;;  %v6113_v29 = vld [vmem:[%s8866_s2] sm:$0x7]  ;;  %v1254_v45 = vld [vmem:[%s8867_s3 + $0x238] sm:$0xff] }
  0xb1   : > { %v5730_v49 = vpop.f32.mrf.mxu2  ;;  %1330 = vmatpush.msra.mxu0 %v1215_v32  ;;  %1582 = vmatpush.msrb.mxu2 %v4315_v3  ;;  %v1266_v32 = vld [vmem:[%s8867_s3 + $0x298] sm:$0xff]  ;;  %v6149_v2 = vperm.slane %v6113_v29, 1 }
  0xb2   : > { %v5732_v50 = vpop.f32.mrf.mxu0  ;;  %v5736_v52 = vpop.f32.mrf.mxu3  ;;  %1409 = vmatpush.msra.mxu3 %v1232_v38  ;;  %v4297_v38 = vld [vmem:[%s8867_s3 + $0x410] sm:$0xff] }
  0xb3   : > { %v5734_v51 = vpop.f32.mrf.mxu1  ;;  %1434 = vmatpush.msrb.mxu0 %v1272_v8  ;;  %1583 = vmatpush.msrb.mxu2 %v4313_v10  ;;  %v1228_v10 = vld [vmem:[%s8867_s3 + $0x168] sm:$0xff]  ;;  %v634_v27 = vadd.f32 %v5736_v52, %v5726_v48  ;;  %v4271_v52 = vld [vmem:[%s8867_s3 + $0x340] sm:$0xff] }
  0xb4   : > { %1410 = vmatpush.msra.mxu3 %v1230_v47  ;;  %v1224_v48 = vld [vmem:[%s8867_s3 + $0x148] sm:$0xff] }
  0xb5   : > { %1435 = vmatpush.msrb.mxu0 %v1270_v12  ;;  %1584 = vmatpush.msrb.mxu2 %v4311_v23  ;;  %v4275_v12 = vld [vmem:[%s8867_s3 + $0x360] sm:$0xff]  ;;  %v1226_v23 = vld [vmem:[%s8867_s3 + $0x158] sm:$0xff] }
  0xb6   : > { %1411 = vmatpush.msra.mxu3 %v1228_v10  ;;  %1557 = vmatpush.msrb.mxu1 %v4275_v12  ;;  %v4267_v12 = vld [vmem:[%s8867_s3 + $0x320] sm:$0xff] }
  0xb7   : > { %1436 = vmatpush.msrb.mxu0 %v1268_v26  ;;  %1585 = vmatpush.msrb.mxu2 %v4309_v28  ;;  %v4273_v26 = vld [vmem:[%s8867_s3 + $0x350] sm:$0xff] }
  0xb8   : > { %1412 = vmatpush.msra.mxu3 %v1226_v23  ;;  %1558 = vmatpush.msrb.mxu1 %v4273_v26 }
  0xb9   : > { %v5738_v53 = vpop.f32.mrf.mxu2  ;;  %1437 = vmatpush.msrb.mxu0 %v1266_v32  ;;  %1586 = vmatpush.msrb.mxu2 %v4307_v36  ;;  %v4299_v32 = vld [vmem:[%s8867_s3 + $0x420] sm:$0xff] }
  0xba   : > { %v5740_v54 = vpop.f32.mrf.mxu0  ;;  %v5744_v57 = vpop.f32.mrf.mxu3  ;;  %1413 = vmatpush.msra.mxu3 %v1224_v48  ;;  %1559 = vmatpush.msrb.mxu1 %v4271_v52  ;;  %v4265_v48 = vld [vmem:[%s8867_s3 + $0x310] sm:$0xff]  ;;  %v4263_v52 = vld [vmem:[%s8867_s3 + $0x300] sm:$0xff] }
  0xbb   : > { %v5742_v55 = vpop.f32.mrf.mxu1  ;;  %1438 = vmatpush.msrb.mxu0 %v1264_v39  ;;  %1587 = vmatpush.msrb.mxu2 %v4305_v46  ;;  %v1222_v39 = vld [vmem:[%s8867_s3 + $0x138] sm:$0xff]  ;;  %v637_v26 = vadd.f32 %v5744_v57, %v5732_v50 }
  0xbc   : > { %1414 = vmatpush.msra.mxu3 %v1222_v39  ;;  %v6209_v39 = vperm.slane %v6113_v29, 2 }
  0xbd   : > { %1439 = vmatpush.msrb.mxu0 %v1262_v1  ;;  %1588 = vmatpush.msrb.mxu2 %v4303_v7  ;;  %v6146_v1 = vperm.slane %v6113_v29, 0  ;;  %v4295_v7 = vld [vmem:[%s8867_s3 + $0x400] sm:$0xff]  ;;  %v4286_v29 = vld [vmem:[%s8867_s3 + $0x3b8] sm:$0xff] }
  0xbf   : > { %1440 = vmatpush.msrb.mxu0 %v1260_v11  ;;  %1589 = vmatpush.msrb.mxu2 %v4301_v16 }
  0xc1   : > { %v5746_v58 = vpop.f32.mrf.mxu2  ;;  %1441 = vmatpush.msrb.mxu0 %v1258_v25  ;;  %1590 = vmatpush.msrb.mxu2 %v4299_v32  ;;  %v4293_v25 = vld [vmem:[%s8867_s3 + $0x3f0] sm:$0xff]  ;;  %v1250_v32 = vld [vmem:[%s8867_s3 + $0x218] sm:$0xff] }
  0xc2   : > { %v5748_v59 = vpop.f32.mrf.mxu0  ;;  %v5758_v0 = vpop.f32.mrf.mxu3 }
  0xc3   : > { %v5750_v60 = vpop.f32.mrf.mxu1  ;;  %1591 = vmatpush.msrb.mxu2 %v4297_v38 }
  0xc5   : > { %1592 = vmatpush.msrb.mxu2 %v4295_v7 }
  0xc7   : > { %1593 = vmatpush.msrb.mxu2 %v4293_v25 }
  0xc9   : > { %v5752_v61 = vpop.f32.mrf.mxu2 }
  0xca   : > { %v5754_v62 = vpop.f32.mrf.mxu0  ;;  %v5799_v15 = vpop.f32.mrf.mxu3 }
  0xcb   : > { %v5756_v63 = vpop.f32.mrf.mxu1  ;;  %v663_v28 = vadd.f32 %v5754_v62, %v5728_v56  ;;  %v1256_v56 = vld [vmem:[%s8867_s3 + $0x248] sm:$0xff] }
  0xcc   : > { %1442 = vmatpush.msrb.mxu0 %v1256_v56 }
  0xce   : > { %1443 = vmatpush.msrb.mxu0 %v1254_v45 }
  0xd1   : > { %v5769_v4 = vpop.f32.mrf.mxu2 }
  0xd2   : > { %v5771_v5 = vpop.f32.mrf.mxu0  ;;  %v5852_v35 = vpop.f32.mrf.mxu3  ;;  %v843_v62 = vadd.f32 %v5769_v4, %v634_v27  ;;  %v4269_v4 = vld [vmem:[%s8867_s3 + $0x330] sm:$0xff]  ;;  %v692_v27 = vadd.f32 %v5756_v63, %v5730_v49  ;;  %v4291_v63 = vld [vmem:[%s8867_s3 + $0x3e0] sm:$0xff] }
  0xd3   : > { %v5773_v6 = vpop.f32.mrf.mxu1  ;;  %v844_v33 = vadd.f32 %v5852_v35, %v663_v28  ;;  %1560 = vmatpush.msrb.mxu1 %v4269_v4  ;;  %v1218_v28 = vld [vmem:[%s8867_s3 + $0x118] sm:$0xff]  ;;  %v666_v50 = vadd.f32 %v5771_v5, %v5734_v51  ;;  %1594 = vmatpush.msrb.mxu2 %v4291_v63  ;;  %v1216_v51 = vld [vmem:[%s8867_s3 + $0x108] sm:$0xff] }
  0xd4   : > { %v1248_v5 = vld [vmem:[%s8867_s3 + $0x208] sm:$0xff]  ;;  %v4318_v63 = vld [vmem:[%s8867_s3 + $0x4b8] sm:$0xff] }
  0xd5   : > { %1561 = vmatpush.msrb.mxu1 %v4267_v12 }
  0xd7   : > { %1562 = vmatpush.msrb.mxu1 %v4265_v48 }
  0xd9   : > { %v5813_v20 = vpop.f32.mrf.mxu2  ;;  %1563 = vmatpush.msrb.mxu1 %v4263_v52 }
  0xda   : > { %v5815_v21 = vpop.f32.mrf.mxu0  ;;  %v5917_v13 = vpop.f32.mrf.mxu3 }
  0xdb   : > { %v5817_v22 = vpop.f32.mrf.mxu1 }
  0xe1   : > { %v5863_v40 = vpop.f32.mrf.mxu2 }
  0xe2   : > { %v5868_v37 = vpop.f32.mrf.mxu0  ;;  %v5988_v41 = vpop.f32.mrf.mxu3 }
  0xe3   : > { %v5870_v42 = vpop.f32.mrf.mxu1 }
  0xe9   : > { %v5919_v14 = vpop.f32.mrf.mxu2 }
  0xea   : > { %v5924_v17 = vpop.f32.mrf.mxu0  ;;  %v6050_v34 = vpop.f32.mrf.mxu3 }
  0xeb   : > { %v5926_v18 = vpop.f32.mrf.mxu1  ;;  %v845_v56 = vadd.f32 %v5924_v17, %v692_v27  ;;  %v4289_v17 = vld [vmem:[%s8867_s3 + $0x3d0] sm:$0xff]  ;;  %v4346_v27 = vld [vmem:[%s8867_s3 + $0x598] sm:$0xff] }
  0xec   : > { %v998_v35 = vadd.f32 %v5926_v18, %v843_v62  ;;  %v1220_v18 = vld [vmem:[%s8867_s3 + $0x128] sm:$0xff]  ;;  %v846_v62 = vadd.f32 %v5813_v20, %v637_v26  ;;  %v4261_v20 = vld [vmem:[%s8867_s3 + $0x2f0] sm:$0xff]  ;;  %1595 = vmatpush.msrb.mxu2 %v4289_v17 }
  0xed   : > { %1415 = vmatpush.msra.mxu3 %v1220_v18  ;;  %1564 = vmatpush.msrb.mxu1 %v4261_v20  ;;  %v643_v20 = vadd.f32 %v5799_v15, %v5748_v59  ;;  %v4276_v15 = vld [vmem:[%s8867_s3 + $0x368] sm:$0xff] }
  0xef   : > { %1416 = vmatpush.msra.mxu3 %v1218_v28 }
  0xf1   : > { %v5973_v31 = vpop.f32.mrf.mxu2  ;;  %1417 = vmatpush.msra.mxu3 %v1216_v51 }
  0xf2   : > { %v5975_v43 = vpop.f32.mrf.mxu0  ;;  %v986_v36 = vpop.f32.mrf.mxu3  ;;  %v999_v46 = vadd.f32 %v5973_v31, %v844_v33  ;;  %v1252_v31 = vld [vmem:[%s8867_s3 + $0x228] sm:$0xff]  ;;  %v847_v33 = vadd.f32 %v5917_v13, %v666_v50 }
  0xf3   : > { %v5977_v44 = vpop.f32.mrf.mxu1  ;;  %1444 = vmatpush.msrb.mxu0 %v1252_v31  ;;  %v1000_v38 = vadd.f32 %v986_v36, %v845_v56  ;;  %v4288_v13 = vld [vmem:[%s8867_s3 + $0x3c8] sm:$0xff]  ;;  %v695_v31 = vadd.f32 %v5773_v6, %v5738_v53  ;;  %v4257_v53 = vld [vmem:[%s8867_s3 + $0x2d0] sm:$0xff] }
  0xf4   : > { %v1001_v45 = vadd.f32 %v5977_v44, %v846_v62  ;;  %v4344_v56 = vld [vmem:[%s8867_s3 + $0x588] sm:$0xff] }
  0xf5   : > { %1445 = vmatpush.msrb.mxu0 %v1250_v32  ;;  %v848_v6 = vadd.f32 %v5975_v43, %v695_v31  ;;  %v4320_v43 = vld [vmem:[%s8867_s3 + $0x4c8] sm:$0xff] }
  0xf7   : > { %1446 = vmatpush.msrb.mxu0 %v1248_v5 }
  0xf9   : > { %v6020_v19 = vpop.f32.mrf.mxu2 }
  0xfa   : > { %v6025_v24 = vpop.f32.mrf.mxu0  ;;  %v1002_v4 = vadd.f32 %v6020_v19, %v847_v33  ;;  %v4284_v19 = vld [vmem:[%s8867_s3 + $0x3a8] sm:$0xff] }
  0xfb   : > { %v6027_v30 = vpop.f32.mrf.mxu1 }
 0x101   : > { %v6076_v3 = vpop.f32.mrf.mxu2 }
 0x102   : > { %v6081_v8 = vpop.f32.mrf.mxu0 }
 0x103   : > { %v6083_v9 = vpop.f32.mrf.mxu1 }
 0x109   : > { %v6143_v47 = vpop.f32.mrf.mxu2 }
 0x10a   : > { %v1081_v10 = vpop.f32.mrf.mxu0 }
 0x10b   : > { %v1110_v11 = vpop.f32.mrf.mxu1  ;;  %v1151_v16 = vadd.f32 %v1081_v10, %v998_v35  ;;  %v989_v35 = vpop.f32.mrf.mxu3 }
 0x10c   : > { %v1152_v23 = vadd.f32 %v1110_v11, %v999_v46  ;;  %v4259_v11 = vld [vmem:[%s8867_s3 + $0x2e0] sm:$0xff]  ;;  %v1003_v28 = vadd.f32 %v989_v35, %v848_v6  ;;  %v4336_v6 = vld [vmem:[%s8867_s3 + $0x548] sm:$0xff] }
 0x10d   : > { %v6182_v57 = vadd.f32 %v6146_v1, %v1151_v16  ;;  %v640_v16 = vadd.f32 %v5758_v0, %v5740_v54  ;;  %1565 = vmatpush.msrb.mxu1 %v4259_v11  ;;  %v4345_v54 = vld [vmem:[%s8867_s3 + $0x590] sm:$0xff] }
 0x10e   : > { %v6185_v49 = vadd.f32 %v6149_v2, %v1152_v23  ;;  %v669_v23 = vadd.f32 %v5815_v21, %v5742_v55  ;;  %v4282_v55 = vld [vmem:[%s8867_s3 + $0x398] sm:$0xff] }
 0x10f   : > { %1302 = vmatmul.f32.vlgmr.msrb.gmra.mxu3 %v6182_v57  ;;  %1389 = vmatmul.f32.vlgmr.msra.gmra.mxu2 %v6182_v57  ;;  %v849_v0 = vadd.f32 %v5863_v40, %v640_v16  ;;  %v4343_v40 = vld [vmem:[%s8867_s3 + $0x580] sm:$0xff] }
 0x110   : > { %1331 = vmatmul.f32.vlgmr.msra.gmra.mxu0 %v6185_v49  ;;  %v850_v21 = vadd.f32 %v5988_v41, %v669_v23  ;;  %1566 = vmatpush.msrb.mxu1 %v4257_v53  ;;  %v4280_v41 = vld [vmem:[%s8867_s3 + $0x388] sm:$0xff] }
 0x111   : > { %v1139_v36 = vpop.f32.mrf.mxu2  ;;  %1638 = vmatpush.msra.mxu0 %v4288_v13  ;;  %v1004_v32 = vadd.f32 %v6027_v30, %v849_v0  ;;  %1612 = vmatpush.msrb.mxu3 %v4345_v54  ;;  %v4341_v30 = vld [vmem:[%s8867_s3 + $0x570] sm:$0xff]  ;;  %v698_v13 = vadd.f32 %v5817_v22, %v5746_v58  ;;  %v4316_v58 = vld [vmem:[%s8867_s3 + $0x4a8] sm:$0xff]  ;;  %v852_v22 = vadd.f32 %v5919_v14, %v643_v20 }
 0x112   : > { %v1153_v46 = vadd.f32 %v1139_v36, %v1000_v38  ;;  %v1084_v7 = vpop.f32.mrf.mxu0  ;;  %v1005_v48 = vadd.f32 %v6076_v3, %v850_v21  ;;  %1699 = vmatpush.msra.mxu2 %v4346_v27  ;;  %v4278_v3 = vld [vmem:[%s8867_s3 + $0x378] sm:$0xff]  ;;  %v4337_v14 = vld [vmem:[%s8867_s3 + $0x550] sm:$0xff]  ;;  %v701_v54 = vadd.f32 %v5870_v42, %v5752_v61  ;;  %v4300_v20 = vld [vmem:[%s8867_s3 + $0x428] sm:$0xff] }
 0x113   : > { %v1113_v10 = vpop.f32.mrf.mxu1  ;;  %v1154_v44 = vadd.f32 %v1084_v7, %v1001_v45  ;;  %1639 = vmatpush.msra.mxu0 %v4286_v29  ;;  %v992_v62 = vpop.f32.mrf.mxu3  ;;  %1613 = vmatpush.msrb.mxu3 %v4343_v40  ;;  %v4342_v38 = vld [vmem:[%s8867_s3 + $0x578] sm:$0xff]  ;;  %v851_v59 = vadd.f32 %v6025_v24, %v698_v13  ;;  %v4340_v29 = vld [vmem:[%s8867_s3 + $0x568] sm:$0xff]  ;;  %v1007_v7 = vadd.f32 %v6083_v9, %v852_v22  ;;  %v4335_v9 = vld [vmem:[%s8867_s3 + $0x540] sm:$0xff] }
 0x114   : > { %v1155_v18 = vadd.f32 %v1113_v10, %v1002_v4  ;;  %v6231_v12 = vadd.f32 %v6209_v39, %v1153_v46  ;;  %1700 = vmatpush.msra.mxu2 %v4344_v56  ;;  %v672_v4 = vadd.f32 %v5868_v37, %v5750_v60  ;;  %v4339_v60 = vld [vmem:[%s8867_s3 + $0x560] sm:$0xff]  ;;  %v4314_v24 = vld [vmem:[%s8867_s3 + $0x498] sm:$0xff]  ;;  %v854_v61 = vadd.f32 %v6081_v8, %v701_v54  ;;  %v4333_v42 = vld [vmem:[%s8867_s3 + $0x530] sm:$0xff] }
 0x115   : > { %v6238_v25 = vadd.f32 %v6146_v1, %v1154_v44  ;;  %1640 = vmatpush.msra.mxu0 %v4284_v19  ;;  %1614 = vmatpush.msrb.mxu3 %v4341_v30  ;;  %v1006_v46 = vadd.f32 %v992_v62, %v851_v59  ;;  %v4312_v44 = vld [vmem:[%s8867_s3 + $0x488] sm:$0xff]  ;;  %v4310_v27 = vld [vmem:[%s8867_s3 + $0x478] sm:$0xff]  ;;  %v4331_v40 = vld [vmem:[%s8867_s3 + $0x520] sm:$0xff] }
 0x116   : > { %v6241_v26 = vadd.f32 %v6149_v2, %v1155_v18  ;;  %4249 = vmatmul.msk.f32.vlgmr.msra.gmra.mxu1 %vm1273_vm5, %v6231_v12  ;;  %1701 = vmatpush.msra.mxu2 %v4342_v38  ;;  %v853_v37 = vadd.f32 %v6050_v34, %v672_v4  ;;  %v4274_v34 = vld [vmem:[%s8867_s3 + $0x358] sm:$0xff]  ;;  %v4308_v8 = vld [vmem:[%s8867_s3 + $0x468] sm:$0xff]  ;;  %v4329_v56 = vld [vmem:[%s8867_s3 + $0x510] sm:$0xff] }
 0x117   : > { %1305 = vmatmul.f32.gmra.mxu3 %v6238_v25  ;;  %1392 = vmatmul.f32.gmra.mxu2 %v6238_v25  ;;  %v4338_v18 = vld [vmem:[%s8867_s3 + $0x558] sm:$0xff]  ;;  %v4304_v30 = vld [vmem:[%s8867_s3 + $0x448] sm:$0xff]  ;;  %v4323_v4 = vld [vmem:[%s8867_s3 + $0x4e0] sm:$0xff] }
 0x118   : > { %1334 = vmatmul.f32.gmra.mxu0 %v6241_v26  ;;  %1667 = vmatpush.msra.mxu1 %v4320_v43  ;;  %v1008_v10 = vadd.f32 %v6143_v47, %v853_v37  ;;  %v4272_v47 = vld [vmem:[%s8867_s3 + $0x348] sm:$0xff]  ;;  %v4302_v62 = vld [vmem:[%s8867_s3 + $0x438] sm:$0xff] }
 0x119   : > { %v1142_v50 = vpop.f32.mrf.mxu2  ;;  %1641 = vmatpush.msra.mxu0 %v4282_v55  ;;  %1615 = vmatpush.msrb.mxu3 %v4339_v60  ;;  %v4262_v38 = vld [vmem:[%s8867_s3 + $0x2f8] sm:$0xff]  ;;  %v4324_v59 = vld [vmem:[%s8867_s3 + $0x4e8] sm:$0xff] }
 0x11a   : > { %v1156_v51 = vadd.f32 %v1142_v50, %v1003_v28  ;;  %v1087_v5 = vpop.f32.mrf.mxu0  ;;  %1668 = vmatpush.msra.mxu1 %v4318_v63  ;;  %1702 = vmatpush.msra.mxu2 %v4340_v29  ;;  %v4332_v50 = vld [vmem:[%s8867_s3 + $0x528] sm:$0xff]  ;;  %v4326_v13 = vld [vmem:[%s8867_s3 + $0x4f8] sm:$0xff] }
 0x11b   : > { %v1116_v52 = vpop.f32.mrf.mxu1  ;;  %v1157_v33 = vadd.f32 %v1087_v5, %v1004_v32  ;;  %1642 = vmatpush.msra.mxu0 %v4280_v41  ;;  %1616 = vmatpush.msrb.mxu3 %v4337_v14  ;;  %v995_v0 = vpop.f32.mrf.mxu3  ;;  %v4268_v41 = vld [vmem:[%s8867_s3 + $0x328] sm:$0xff]  ;;  %v4330_v5 = vld [vmem:[%s8867_s3 + $0x518] sm:$0xff] }
 0x11c   : > { %v1158_v17 = vadd.f32 %v1116_v52, %v1005_v48  ;;  %v6294_v45 = vadd.f32 %v6209_v39, %v1156_v51  ;;  %1669 = vmatpush.msra.mxu1 %v4316_v58  ;;  %1703 = vmatpush.msra.mxu2 %v4338_v18  ;;  %v1009_v28 = vadd.f32 %v995_v0, %v854_v61  ;;  %v4306_v48 = vld [vmem:[%s8867_s3 + $0x458] sm:$0xff]  ;;  %v4260_v58 = vld [vmem:[%s8867_s3 + $0x2e8] sm:$0xff] }
 0x11d   : > { %v6299_v35 = vadd.f32 %v6146_v1, %v1157_v33  ;;  %1643 = vmatpush.msra.mxu0 %v4278_v3  ;;  %1617 = vmatpush.msrb.mxu3 %v4335_v9  ;;  %v4266_v51 = vld [vmem:[%s8867_s3 + $0x318] sm:$0xff]  ;;  %v4327_v3 = vld [vmem:[%s8867_s3 + $0x500] sm:$0xff]  ;;  %v4328_v33 = vld [vmem:[%s8867_s3 + $0x508] sm:$0xff] }
 0x11e   : > { %v6302_v36 = vadd.f32 %v6149_v2, %v1158_v17  ;;  %4250 = vmatmul.msk.f32.gmra.mxu1 %vm1273_vm5, %v6294_v45  ;;  %1704 = vmatpush.msra.mxu2 %v4336_v6  ;;  %v4325_v17 = vld [vmem:[%s8867_s3 + $0x4f0] sm:$0xff]  ;;  %v4298_v60 = vld [vmem:[%s8867_s3 + $0x418] sm:$0xff]  ;;  %v4296_v37 = vld [vmem:[%s8867_s3 + $0x408] sm:$0xff] }
 0x11f   : > { %1308 = vmatmul.f32.gmra.mxu3 %v6299_v35  ;;  %1395 = vmatmul.f32.gmra.mxu2 %v6299_v35  ;;  %v4258_v22 = vld [vmem:[%s8867_s3 + $0x2d8] sm:$0xff] }
 0x120   : > { %1337 = vmatmul.f32.gmra.mxu0 %v6302_v36  ;;  %1670 = vmatpush.msra.mxu1 %v4314_v24  ;;  %v4322_v24 = vld [vmem:[%s8867_s3 + $0x4d8] sm:$0xff] }
 0x121   : > { %v1145_v11 = vpop.f32.mrf.mxu2  ;;  %1644 = vmatpush.msra.mxu0 %v4276_v15  ;;  %1618 = vmatpush.msrb.mxu3 %v4333_v42  ;;  %v4321_v15 = vld [vmem:[%s8867_s3 + $0x4d0] sm:$0xff]  ;;  %v4294_v29 = vld [vmem:[%s8867_s3 + $0x3f8] sm:$0xff] }
 0x122   : > { %v1159_v19 = vadd.f32 %v1145_v11, %v1006_v46  ;;  %v1090_v31 = vpop.f32.mrf.mxu0  ;;  %1671 = vmatpush.msra.mxu1 %v4312_v44  ;;  %v4292_v46 = vld [vmem:[%s8867_s3 + $0x3e8] sm:$0xff]  ;;  %v4290_v14 = vld [vmem:[%s8867_s3 + $0x3d8] sm:$0xff] }
 0x123   : > { %v1119_v16 = vpop.f32.mrf.mxu1  ;;  %v1160_v23 = vadd.f32 %v1090_v31, %v1007_v7  ;;  %1645 = vmatpush.msra.mxu0 %v4274_v34  ;;  %1619 = vmatpush.msrb.mxu3 %v4331_v40 }
 0x124   : > { %v1161_v53 = vadd.f32 %v1119_v16, %v1008_v10  ;;  %v6353_v55 = vadd.f32 %v6209_v39, %v1159_v19  ;;  %1672 = vmatpush.msra.mxu1 %v4310_v27 }
 0x125   : > { %v6356_v21 = vadd.f32 %v6146_v1, %v1160_v23  ;;  %1646 = vmatpush.msra.mxu0 %v4272_v47  ;;  %v4270_v1 = vld [vmem:[%s8867_s3 + $0x338] sm:$0xff]  ;;  %1620 = vmatpush.msrb.mxu3 %v4329_v56 }
 0x126   : > { %v6359_v43 = vadd.f32 %v6149_v2, %v1161_v53  ;;  %4251 = vmatmul.msk.f32.gmra.mxu1 %vm1273_vm5, %v6353_v55  ;;  %v4334_v2 = vld [vmem:[%s8867_s3 + $0x538] sm:$0xff] }
 0x127   : > { %1311 = vmatmul.f32.gmra.mxu3 %v6356_v21  ;;  %1398 = vmatmul.f32.gmra.mxu2 %v6356_v21 }
 0x128   : > { %1340 = vmatmul.f32.gmra.mxu0 %v6359_v43  ;;  %1673 = vmatpush.msra.mxu1 %v4308_v8 }
 0x129   : > { %v1148_v32 = vpop.f32.mrf.mxu2  ;;  %1647 = vmatpush.msra.mxu0 %v4270_v1  ;;  %1705 = vmatpush.msra.mxu2 %v4334_v2 }
 0x12a   : > { %v1162_v63 = vadd.f32 %v1148_v32, %v1009_v28  ;;  %1674 = vmatpush.msra.mxu1 %v4306_v48  ;;  %1621 = vmatpush.msrb.mxu3 %v4327_v3 }
 0x12b   : > { %1648 = vmatpush.msra.mxu0 %v4268_v41  ;;  %1706 = vmatpush.msra.mxu2 %v4332_v50 }
 0x12c   : > { %v6404_v52 = vadd.f32 %v6209_v39, %v1162_v63  ;;  %v4264_v39 = vld [vmem:[%s8867_s3 + $0x308] sm:$0xff]  ;;  %1675 = vmatpush.msra.mxu1 %v4304_v30  ;;  %1622 = vmatpush.msrb.mxu3 %v4325_v17 }
 0x12d   : > { %1649 = vmatpush.msra.mxu0 %v4266_v51  ;;  %1707 = vmatpush.msra.mxu2 %v4330_v5 }
 0x12e   : > { %4252 = vmatmul.msk.f32.gmra.mxu1 %vm1273_vm5, %v6404_v52  ;;  %1623 = vmatpush.msrb.mxu3 %v4323_v4 }
 0x12f   : > { %1418 = vmatmul.f32.vlgmr.msra.gmra.mxu3 %v6185_v49  ;;  %1596 = vmatmul.f32.vlgmr.msrb.gmra.mxu2 %v6185_v49 }
 0x130   : > { %4253 = vmatmul.msk.f32.vlgmr.msrb.gmra.mxu0 %vm1273_vm5, %v6231_v12  ;;  %1676 = vmatpush.msra.mxu1 %v4302_v62 }
 0x131   : > { %1650 = vmatpush.msra.mxu0 %v4264_v39  ;;  %1708 = vmatpush.msra.mxu2 %v4328_v33 }
 0x132   : > { %1677 = vmatpush.msra.mxu1 %v4300_v20  ;;  %1624 = vmatpush.msrb.mxu3 %v4321_v15 }
 0x133   : > { %1651 = vmatpush.msra.mxu0 %v4262_v38  ;;  %1709 = vmatpush.msra.mxu2 %v4326_v13 }
 0x134   : > { %1678 = vmatpush.msra.mxu1 %v4298_v60 }
 0x135   : > { %1652 = vmatpush.msra.mxu0 %v4260_v58  ;;  %1710 = vmatpush.msra.mxu2 %v4324_v59 }
 0x136   : > { %1567 = vmatmul.f32.vlgmr.msrb.gmra.mxu1 %v6182_v57 }
 0x137   : > { %1421 = vmatmul.f32.gmra.mxu3 %v6241_v26  ;;  %1599 = vmatmul.f32.gmra.mxu2 %v6241_v26 }
 0x138   : > { %4254 = vmatmul.msk.f32.gmra.mxu0 %vm1273_vm5, %v6294_v45  ;;  %1679 = vmatpush.msra.mxu1 %v4296_v37 }
 0x139   : > { %1653 = vmatpush.msra.mxu0 %v4258_v22  ;;  %1711 = vmatpush.msra.mxu2 %v4322_v24 }
 0x13a   : > { %1680 = vmatpush.msra.mxu1 %v4294_v29 }
 0x13c   : > { %1681 = vmatpush.msra.mxu1 %v4292_v46 }
 0x13e   : > { %1570 = vmatmul.f32.gmra.mxu1 %v6238_v25 }
 0x13f   : > { %1424 = vmatmul.f32.gmra.mxu3 %v6302_v36  ;;  %1602 = vmatmul.f32.gmra.mxu2 %v6302_v36 }
 0x140   : > { %4255 = vmatmul.msk.f32.gmra.mxu0 %vm1273_vm5, %v6353_v55  ;;  %1682 = vmatpush.msra.mxu1 %v4290_v14 }
 0x146   : > { %1573 = vmatmul.f32.gmra.mxu1 %v6299_v35 }
 0x147   : > { %1427 = vmatmul.f32.gmra.mxu3 %v6359_v43  ;;  %1605 = vmatmul.f32.gmra.mxu2 %v6359_v43 }
 0x148   : > { %4256 = vmatmul.msk.f32.gmra.mxu0 %vm1273_vm5, %v6404_v52 }
 0x14e   : > { %1576 = vmatmul.f32.gmra.mxu1 %v6356_v21 }
 0x14f   : > { %4347 = vmatmul.msk.f32.vlgmr.msrb.gmra.mxu3 %vm1273_vm5, %v6231_v12  ;;  %4351 = vmatmul.msk.f32.vlgmr.msra.gmra.mxu2 %vm1273_vm5, %v6231_v12 }
 0x150   : > { %1654 = vmatmul.f32.vlgmr.msra.gmra.mxu0 %v6182_v57 }
 0x156   : > { %1683 = vmatmul.f32.vlgmr.msra.gmra.mxu1 %v6185_v49 }
 0x157   : > { %4348 = vmatmul.msk.f32.gmra.mxu3 %vm1273_vm5, %v6294_v45  ;;  %4352 = vmatmul.msk.f32.gmra.mxu2 %vm1273_vm5, %v6294_v45 }
 0x158   : > { %1657 = vmatmul.f32.gmra.mxu0 %v6238_v25 }
 0x15e   : > { %1686 = vmatmul.f32.gmra.mxu1 %v6241_v26 }
 0x15f   : > { %4349 = vmatmul.msk.f32.gmra.mxu3 %vm1273_vm5, %v6353_v55  ;;  %4353 = vmatmul.msk.f32.gmra.mxu2 %vm1273_vm5, %v6353_v55 }
 0x160   : > { %1660 = vmatmul.f32.gmra.mxu0 %v6299_v35 }
 0x166   : > { %1689 = vmatmul.f32.gmra.mxu1 %v6302_v36 }
 0x167   : > { %4350 = vmatmul.msk.f32.gmra.mxu3 %vm1273_vm5, %v6404_v52  ;;  %4354 = vmatmul.msk.f32.gmra.mxu2 %vm1273_vm5, %v6404_v52 }
 0x168   : > { %1663 = vmatmul.f32.gmra.mxu0 %v6356_v21 }
 0x16e   : > { %1692 = vmatmul.f32.gmra.mxu1 %v6359_v43 }
 0x18d   : > { %v1332_v57 = vpop.f32.mrf.mxu0 }
 0x192   : > { %v1303_v49 = vpop.f32.mrf.mxu3  ;;  %v6514_v25 = vpop.f32.mrf.mxu2 }
 0x193   : > { %v6512_v12 = vpop.f32.mrf.mxu1  ;;  %v1333_v33 = vadd.f32 %v1332_v57, %v1303_v49 }
 0x195   : > { %v1335_v26 = vpop.f32.mrf.mxu0 }
 0x19a   : > { %v1306_v45 = vpop.f32.mrf.mxu3  ;;  %v1393_v36 = vpop.f32.mrf.mxu2 }
 0x19b   : > { %v6516_v35 = vpop.f32.mrf.mxu1  ;;  %v1336_v17 = vadd.f32 %v1335_v26, %v1306_v45 }
 0x19d   : > { %v1338_v34 = vpop.f32.mrf.mxu0 }
 0x1a2   : > { %v1309_v7 = vpop.f32.mrf.mxu3  ;;  %v1396_v11 = vpop.f32.mrf.mxu2 }
 0x1a3   : > { %v1367_v10 = vpop.f32.mrf.mxu1  ;;  %v1339_v3 = vadd.f32 %v1338_v34, %v1309_v7 }
 0x1a5   : > { %v1341_v44 = vpop.f32.mrf.mxu0  ;;  %v1368_v37 = vadd.f32 %v1367_v10, %v1339_v3  ;;  %v4397_v3 = vld [vmem:[%s8869_s5 + $0x2e8] sm:$0xff] }
 0x1aa   : > { %v1312_v18 = vpop.f32.mrf.mxu3  ;;  %v1399_v31 = vpop.f32.mrf.mxu2 }
 0x1ab   : > { %v1370_v19 = vpop.f32.mrf.mxu1  ;;  %v1342_v30 = vadd.f32 %v1341_v44, %v1312_v18 }
 0x1ad   : > { %v6518_v16 = vpop.f32.mrf.mxu0  ;;  %v1371_v4 = vadd.f32 %v1370_v19, %v1342_v30  ;;  %v4418_v19 = vld [vmem:[%s8869_s5 + $0x390] sm:$0xff]  ;;  %v4431_v30 = vld [vmem:[%s8869_s5 + $0x3f8] sm:$0xff] }
 0x1ae   : > { %2030 = vmatpush.msrb.mxu2 %v4418_v19  ;;  %v4408_v19 = vld [vmem:[%s8869_s5 + $0x340] sm:$0xff] }
 0x1b2   : > { %v1419_v9 = vpop.f32.mrf.mxu3  ;;  %v1597_v23 = vpop.f32.mrf.mxu2 }
 0x1b3   : > { %v1568_v47 = vpop.f32.mrf.mxu1 }
 0x1b4   : > { %v1598_v14 = vadd.f32 %v1597_v23, %v1568_v47 }
 0x1b5   : > { %v6520_v53 = vpop.f32.mrf.mxu0 }
 0x1ba   : > { %v1422_v6 = vpop.f32.mrf.mxu3  ;;  %v1600_v55 = vpop.f32.mrf.mxu2 }
 0x1bb   : > { %v1571_v54 = vpop.f32.mrf.mxu1  ;;  %v1423_v44 = vadd.f32 %v1422_v6, %v1393_v36  ;;  %v4415_v36 = vld [vmem:[%s8869_s5 + $0x378] sm:$0xff] }
 0x1bc   : > { %v1601_v58 = vadd.f32 %v1600_v55, %v1571_v54  ;;  %v1362_v55 = vadd.f32 %v6512_v12, %v1333_v33  ;;  %2031 = vmatpush.msrb.mxu2 %v4415_v36  ;;  %v6541_v12 = vld [vmem:[%s8868_s4] sm:$0xff]  ;;  %v4394_v33 = vld [vmem:[%s8869_s5 + $0x2d0] sm:$0xff]  ;;  %v1896_v36 = vld [vmem:[%s8869_s5 + $0xf8] sm:$0xff] }
 0x1bd   : > { %v1454_v0 = vpop.f32.mrf.mxu0 }
 0x1c2   : > { %v1425_v21 = vpop.f32.mrf.mxu3  ;;  %v1603_v27 = vpop.f32.mrf.mxu2 }
 0x1c3   : > { %v1574_v43 = vpop.f32.mrf.mxu1  ;;  %v1426_v24 = vadd.f32 %v1425_v21, %v1396_v11  ;;  %v1420_v11 = vadd.f32 %v1419_v9, %v6514_v25 }
 0x1c4   : > { %v1604_v39 = vadd.f32 %v1603_v27, %v1574_v43  ;;  %v1452_v43 = vadd.f32 %v6520_v53, %v1423_v44  ;;  %v4361_v53 = vld [vmem:[%s8868_s4 + $0x10] sm:$0xff]  ;;  %v4420_v44 = vld [vmem:[%s8869_s5 + $0x3a0] sm:$0xff] }
 0x1c5   : > { %v1457_v61 = vpop.f32.mrf.mxu0  ;;  %v1455_v47 = vadd.f32 %v1454_v0, %v1426_v24  ;;  %v1449_v9 = vadd.f32 %v6518_v16, %v1420_v11  ;;  %v4416_v16 = vld [vmem:[%s8869_s5 + $0x380] sm:$0xff]  ;;  %v4402_v11 = vld [vmem:[%s8869_s5 + $0x310] sm:$0xff] }
 0x1c6   : > { %v4376_v24 = vld [vmem:[%s8869_s5 + $0x240] sm:$0xff] }
 0x1ca   : > { %v1428_v42 = vpop.f32.mrf.mxu3  ;;  %v1606_v8 = vpop.f32.mrf.mxu2 }
 0x1cb   : > { %v1577_v1 = vpop.f32.mrf.mxu1  ;;  %v1429_v38 = vadd.f32 %v1428_v42, %v1399_v31  ;;  %v1365_v31 = vadd.f32 %v6516_v35, %v1336_v17  ;;  %v4412_v35 = vld [vmem:[%s8869_s5 + $0x360] sm:$0xff]  ;;  %v4419_v42 = vld [vmem:[%s8869_s5 + $0x398] sm:$0xff]  ;;  %v4398_v17 = vld [vmem:[%s8869_s5 + $0x2f0] sm:$0xff] }
 0x1cc   : > { %v1607_v62 = vadd.f32 %v1606_v8, %v1577_v1  ;;  %2032 = vmatpush.msrb.mxu2 %v4412_v35  ;;  %v4409_v8 = vld [vmem:[%s8869_s5 + $0x348] sm:$0xff]  ;;  %v4396_v35 = vld [vmem:[%s8869_s5 + $0x2e0] sm:$0xff] }
 0x1cd   : > { %v1655_v2 = vpop.f32.mrf.mxu0  ;;  %v1458_v57 = vadd.f32 %v1457_v61, %v1429_v38  ;;  %v4391_v38 = vld [vmem:[%s8869_s5 + $0x2b8] sm:$0xff] }
 0x1ce   : > { %2033 = vmatpush.msrb.mxu2 %v4409_v8  ;;  %v1878_v8 = vld [vmem:[%s8869_s5 + $0x68] sm:$0xff] }
 0x1d2   : > { %v1626_v28 = vpop.f32.mrf.mxu3  ;;  %v1713_v41 = vpop.f32.mrf.mxu2 }
 0x1d3   : > { %v1684_v40 = vpop.f32.mrf.mxu1  ;;  %v1627_v54 = vadd.f32 %v1626_v28, %v1598_v14  ;;  %v4406_v28 = vld [vmem:[%s8869_s5 + $0x330] sm:$0xff]  ;;  %v4377_v14 = vld [vmem:[%s8869_s5 + $0x248] sm:$0xff] }
 0x1d4   : > { %v1685_v49 = vadd.f32 %v1684_v40, %v1655_v2  ;;  %v4413_v2 = vld [vmem:[%s8869_s5 + $0x368] sm:$0xff]  ;;  %v4440_v40 = vld [vmem:[%s8869_s5 + $0x440] sm:$0xf]  ;;  %2034 = vmatpush.msrb.mxu2 %v4406_v28 }
 0x1d5   : > { %v1658_v32 = vpop.f32.mrf.mxu0  ;;  %v1725_v25 = vmax.f32 %v1362_v55, %v1627_v54  ;;  %v4405_v54 = vld [vmem:[%s8869_s5 + $0x328] sm:$0xff]  ;;  %v4384_v28 = vld [vmem:[%s8869_s5 + $0x280] sm:$0xff] }
 0x1d6   : > { %v1714_v27 = vadd.f32 %v1713_v41, %v1685_v49  ;;  %v1734_v41 = vld [vmem:[%s8868_s4 + $0x8] sm:$0x7f]  ;;  %v1908_v49 = vld [vmem:[%s8869_s5 + $0x158] sm:$0xff] }
 0x1d7   : > { %v1890_v55 = vld [vmem:[%s8869_s5 + $0xc8] sm:$0xff] }
 0x1d8   : > { %v1726_v1 = vmax.f32 %v1449_v9, %v1714_v27  ;;  %v1887_v27 = vld [vmem:[%s8869_s5 + $0xb0] sm:$0xff] }
 0x1d9   : > { %v4390_v9 = vld [vmem:[%s8869_s5 + $0x2b0] sm:$0xff] }
 0x1da   : > { %v1629_v48 = vpop.f32.mrf.mxu3  ;;  %v1716_v63 = vpop.f32.mrf.mxu2 }
 0x1db   : > { %v1687_v50 = vpop.f32.mrf.mxu1  ;;  %v1630_v34 = vadd.f32 %v1629_v48, %v1601_v58  ;;  %v4437_v48 = vld [vmem:[%s8869_s5 + $0x428] sm:$0xff] }
 0x1dc   : > { %v1688_v29 = vadd.f32 %v1687_v50, %v1658_v32  ;;  %v4410_v32 = vld [vmem:[%s8869_s5 + $0x350] sm:$0xff]  ;;  %v4362_v50 = vld [vmem:[%s8868_s4 + $0x18] sm:$0x7f]  ;;  %v4385_v58 = vld [vmem:[%s8869_s5 + $0x288] sm:$0xff] }
 0x1dd   : > { %v1661_v56 = vpop.f32.mrf.mxu0  ;;  %v1727_v21 = vmax.f32 %v1365_v31, %v1630_v34  ;;  %v4374_v34 = vld [vmem:[%s8869_s5 + $0x230] sm:$0xff]  ;;  %v1902_v31 = vld [vmem:[%s8869_s5 + $0x128] sm:$0xff] }
 0x1de   : > { %v1717_v23 = vadd.f32 %v1716_v63, %v1688_v29  ;;  %v4403_v63 = vld [vmem:[%s8869_s5 + $0x318] sm:$0xff]  ;;  %v4380_v29 = vld [vmem:[%s8869_s5 + $0x260] sm:$0xff] }
 0x1df   : > { %2035 = vmatpush.msrb.mxu2 %v4403_v63  ;;  %v1872_v63 = vld [vmem:[%s8869_s5 + $0x38] sm:$0xff] }
 0x1e0   : > { %v1728_v0 = vmax.f32 %v1452_v43, %v1717_v23  ;;  %v4425_v23 = vld [vmem:[%s8869_s5 + $0x3c8] sm:$0xff] }
 0x1e1   : > { %v1910_v43 = vld [vmem:[%s8869_s5 + $0x168] sm:$0xff] }
 0x1e2   : > { %v1632_v51 = vpop.f32.mrf.mxu3  ;;  %v1719_v52 = vpop.f32.mrf.mxu2 }
 0x1e3   : > { %v1690_v5 = vpop.f32.mrf.mxu1  ;;  %v1633_v59 = vadd.f32 %v1632_v51, %v1604_v39  ;;  %v4434_v51 = vld [vmem:[%s8869_s5 + $0x410] sm:$0xff]  ;;  %v4401_v39 = vld [vmem:[%s8869_s5 + $0x308] sm:$0xff] }
 0x1e4   : > { %v1691_v20 = vadd.f32 %v1690_v5, %v1661_v56  ;;  %v4407_v56 = vld [vmem:[%s8869_s5 + $0x338] sm:$0xff]  ;;  %v4400_v5 = vld [vmem:[%s8869_s5 + $0x300] sm:$0xff] }
 0x1e5   : > { %v1664_v60 = vpop.f32.mrf.mxu0  ;;  %v1729_v10 = vmax.f32 %v1368_v37, %v1633_v59  ;;  %2036 = vmatpush.msrb.mxu2 %v4400_v5  ;;  %v4389_v59 = vld [vmem:[%s8869_s5 + $0x2a8] sm:$0xff]  ;;  %v4383_v37 = vld [vmem:[%s8869_s5 + $0x278] sm:$0xff] }
 0x1e6   : > { %v1720_v26 = vadd.f32 %v1719_v52, %v1691_v20  ;;  %v4404_v52 = vld [vmem:[%s8869_s5 + $0x320] sm:$0xff]  ;;  %v4395_v20 = vld [vmem:[%s8869_s5 + $0x2d8] sm:$0xff] }
 0x1e7   : > { %2037 = vmatpush.msrb.mxu2 %v4397_v3  ;;  %v1892_v5 = vld [vmem:[%s8869_s5 + $0xd8] sm:$0xff] }
 0x1e8   : > { %v1730_v61 = vmax.f32 %v1455_v47, %v1720_v26  ;;  %v4411_v26 = vld [vmem:[%s8869_s5 + $0x358] sm:$0xff]  ;;  %v1893_v47 = vld [vmem:[%s8869_s5 + $0xe0] sm:$0xff] }
 0x1e9   : > { %2038 = vmatpush.msrb.mxu2 %v4394_v33  ;;  %v4375_v3 = vld [vmem:[%s8869_s5 + $0x238] sm:$0xff]  ;;  %v4424_v33 = vld [vmem:[%s8869_s5 + $0x3c0] sm:$0xff] }
 0x1ea   : > { %v1635_v13 = vpop.f32.mrf.mxu3  ;;  %v1722_v18 = vpop.f32.mrf.mxu2 }
 0x1eb   : > { %v1636_v15 = vadd.f32 %v1635_v13, %v1607_v62  ;;  %v1693_v22 = vpop.f32.mrf.mxu1  ;;  %v4428_v62 = vld [vmem:[%s8869_s5 + $0x3e0] sm:$0xff]  ;;  %2039 = vmatpush.msrb.mxu2 %v4391_v38  ;;  %v4421_v38 = vld [vmem:[%s8869_s5 + $0x3a8] sm:$0xff] }
 0x1ec   : > { %v1694_v46 = vadd.f32 %v1693_v22, %v1664_v60  ;;  %v4388_v13 = vld [vmem:[%s8869_s5 + $0x2a0] sm:$0xff]  ;;  %v4382_v60 = vld [vmem:[%s8869_s5 + $0x270] sm:$0xff]  ;;  %v4379_v22 = vld [vmem:[%s8869_s5 + $0x258] sm:$0xff] }
 0x1ed   : > { %v1731_v7 = vmax.f32 %v1371_v4, %v1636_v15  ;;  %v4392_v4 = vld [vmem:[%s8869_s5 + $0x2c0] sm:$0xff]  ;;  %2040 = vmatpush.msrb.mxu2 %v4388_v13  ;;  %v4386_v15 = vld [vmem:[%s8869_s5 + $0x290] sm:$0xff] }
 0x1ee   : > { %v1723_v45 = vadd.f32 %v1722_v18, %v1694_v46  ;;  %v4373_v46 = vld [vmem:[%s8869_s5 + $0x228] sm:$0xff]  ;;  %v1911_v18 = vld [vmem:[%s8869_s5 + $0x170] sm:$0xff] }
 0x1ef   : > { %4355 = vmatpush.msk.msra.mxu3 %vm731_vm3, %v1731_v7  ;;  %4363 = vmatpush.msk.msrb.mxu0 %vm731_vm3, %v1731_v7  ;;  %v4417_v7 = vld [vmem:[%s8869_s5 + $0x388] sm:$0xff]  ;;  %v1883_v13 = vld [vmem:[%s8869_s5 + $0x90] sm:$0xff] }
 0x1f0   : > { %v1732_v6 = vmax.f32 %v1458_v57, %v1723_v45  ;;  %2041 = vmatpush.msrb.mxu2 %v4385_v58  ;;  %v4414_v57 = vld [vmem:[%s8869_s5 + $0x370] sm:$0xff]  ;;  %v1905_v45 = vld [vmem:[%s8869_s5 + $0x140] sm:$0xff]  ;;  %v1880_v58 = vld [vmem:[%s8869_s5 + $0x78] sm:$0xff] }
 0x1f1   : > { %1761 = vmatpush.msra.mxu3 %v1729_v10  ;;  %1816 = vmatpush.msrb.mxu0 %v1729_v10  ;;  %v1899_v10 = vld [vmem:[%s8869_s5 + $0x110] sm:$0xff] }
 0x1f2   : > { %4366 = vmatpush.msk.msrb.mxu1 %vm731_vm3, %v1732_v6  ;;  %2042 = vmatpush.msrb.mxu2 %v4382_v60  ;;  %v1877_v60 = vld [vmem:[%s8869_s5 + $0x60] sm:$0xff] }
 0x1f3   : > { %1762 = vmatpush.msra.mxu3 %v1727_v21  ;;  %1817 = vmatpush.msrb.mxu0 %v1727_v21  ;;  %v4422_v21 = vld [vmem:[%s8869_s5 + $0x3b0] sm:$0xff] }
 0x1f4   : > { %1839 = vmatpush.msrb.mxu1 %v1730_v61  ;;  %2043 = vmatpush.msrb.mxu2 %v4379_v22  ;;  %v4432_v22 = vld [vmem:[%s8869_s5 + $0x400] sm:$0xff] }
 0x1f5   : > { %1763 = vmatpush.msra.mxu3 %v1725_v25  ;;  %1818 = vmatpush.msrb.mxu0 %v1725_v25  ;;  %v1907_v25 = vld [vmem:[%s8869_s5 + $0x150] sm:$0xff] }
 0x1f6   : > { %1840 = vmatpush.msrb.mxu1 %v1728_v0  ;;  %4356 = vmatmul.msk.f32.vlgmr.msra.gmra.mxu3 %vm1735_vm6, %v6541_v12 }
 0x1f7   : > { %4358 = vmatpush.msk.msrb.mxu3 %vm731_vm3, %v1732_v6  ;;  %4364 = vmatmul.msk.f32.vlgmr.msrb.gmra.mxu0 %vm1735_vm6, %v4361_v53  ;;  %v4399_v6 = vld [vmem:[%s8869_s5 + $0x2f8] sm:$0xff] }
 0x1f8   : > { %1841 = vmatpush.msrb.mxu1 %v1726_v1  ;;  %2076 = vmatpush.msra.mxu0 %v4419_v42  ;;  %v4439_v42 = vld [vmem:[%s8869_s5 + $0x438] sm:$0xf] }
 0x1f9   : > { %1784 = vmatpush.msrb.mxu3 %v1730_v61  ;;  %4367 = vmatmul.msk.f32.vlgmr.msrb.gmra.mxu1 %vm1735_vm6, %v4361_v53  ;;  %v4393_v61 = vld [vmem:[%s8869_s5 + $0x2c8] sm:$0xff]  ;;  %v1881_v53 = vld [vmem:[%s8869_s5 + $0x80] sm:$0xff] }
 0x1fa   : > { %2077 = vmatpush.msra.mxu0 %v4416_v16  ;;  %4445 = vmatpush.msk.msra.mxu1 %vm502_vm0, %v4440_v40  ;;  %v1901_v16 = vld [vmem:[%s8869_s5 + $0x120] sm:$0xff]  ;;  %v1898_v40 = vld [vmem:[%s8869_s5 + $0x108] sm:$0xff] }
 0x1fb   : > { %1785 = vmatpush.msrb.mxu3 %v1728_v0  ;;  %2044 = vmatpush.msrb.mxu2 %v4376_v24  ;;  %v1904_v0 = vld [vmem:[%s8869_s5 + $0x138] sm:$0xff]  ;;  %v4429_v24 = vld [vmem:[%s8869_s5 + $0x3e8] sm:$0xff] }
 0x1fc   : > { %2078 = vmatpush.msra.mxu0 %v4413_v2  ;;  %2109 = vmatpush.msra.mxu1 %v4437_v48  ;;  %v4436_v2 = vld [vmem:[%s8869_s5 + $0x420] sm:$0xff]  ;;  %v4381_v48 = vld [vmem:[%s8869_s5 + $0x268] sm:$0xff] }
 0x1fd   : > { %1786 = vmatpush.msrb.mxu3 %v1726_v1  ;;  %2045 = vmatpush.msrb.mxu2 %v4373_v46  ;;  %v4387_v1 = vld [vmem:[%s8869_s5 + $0x298] sm:$0xff] }
 0x1fe   : > { %4357 = vmatmul.msk.f32.gmra.mxu3 %vm1735_vm6, %v1734_v41  ;;  %2079 = vmatpush.msra.mxu0 %v4410_v32  ;;  %v4433_v32 = vld [vmem:[%s8869_s5 + $0x408] sm:$0xff] }
 0x1ff   : > { %4365 = vmatmul.msk.f32.gmra.mxu0 %vm1735_vm6, %v4362_v50  ;;  %2110 = vmatpush.msra.mxu1 %v4434_v51  ;;  %v4378_v51 = vld [vmem:[%s8869_s5 + $0x250] sm:$0xff] }
 0x200   : > { %2080 = vmatpush.msra.mxu0 %v4407_v56  ;;  %2122 = vmatpush.msra.mxu2 %v4420_v44  ;;  %v4430_v56 = vld [vmem:[%s8869_s5 + $0x3f0] sm:$0xff]  ;;  %v1868_v44 = vld [vmem:[%s8869_s5 + $0x18] sm:$0xff] }
 0x201   : > { %4368 = vmatmul.msk.f32.gmra.mxu1 %vm1735_vm6, %v4362_v50  ;;  %4442 = vmatpush.msk.msra.mxu3 %vm502_vm0, %v4439_v42  ;;  %v1895_v50 = vld [vmem:[%s8869_s5 + $0xf0] sm:$0xff]  ;;  %v4523_v42 = vld [vmem:[%s8869_s5 + $0x618] sm:$0xff] }
 0x202   : > { %2081 = vmatpush.msra.mxu0 %v4404_v52  ;;  %2111 = vmatpush.msra.mxu1 %v4431_v30  ;;  %v1869_v52 = vld [vmem:[%s8869_s5 + $0x20] sm:$0xff]  ;;  %v4427_v30 = vld [vmem:[%s8869_s5 + $0x3d8] sm:$0xff] }
 0x203   : > { %2123 = vmatpush.msra.mxu2 %v4417_v7  ;;  %2063 = vmatpush.msra.mxu3 %v4436_v2  ;;  %v1865_v7 = vld [vmem:[%s8869_s5] sm:$0xff] }
 0x204   : > { %2082 = vmatpush.msra.mxu0 %v4401_v39  ;;  %2112 = vmatpush.msra.mxu1 %v4428_v62  ;;  %v1889_v39 = vld [vmem:[%s8869_s5 + $0xc0] sm:$0xff]  ;;  %v1866_v62 = vld [vmem:[%s8869_s5 + $0x8] sm:$0xff] }
 0x205   : > { %2124 = vmatpush.msra.mxu2 %v4414_v57  ;;  %2064 = vmatpush.msra.mxu3 %v4433_v32 }
 0x206   : > { %4359 = vmatmul.msk.f32.vlgmr.msrb.gmra.mxu3 %vm1735_vm6, %v6541_v12  ;;  %2083 = vmatpush.msra.mxu0 %v4398_v17  ;;  %v1884_v12 = vld [vmem:[%s8869_s5 + $0x98] sm:$0xff]  ;;  %v1886_v17 = vld [vmem:[%s8869_s5 + $0xa8] sm:$0xff] }
 0x207   : > { %2125 = vmatpush.msra.mxu2 %v4411_v26  ;;  %2113 = vmatpush.msra.mxu1 %v4425_v23 }
 0x208   : > { %2084 = vmatpush.msra.mxu0 %v4395_v20  ;;  %2065 = vmatpush.msra.mxu3 %v4430_v56  ;;  %v4441_v20 = vld [vmem:[%s8869_s5 + $0x448] sm:$0xf] }
 0x209   : > { %2126 = vmatpush.msra.mxu2 %v4408_v19  ;;  %2114 = vmatpush.msra.mxu1 %v4422_v21  ;;  %v5039_v19 = vmov 0.0   ;;  %v4532_v21 = vld [vmem:[%s8869_s5 + $0x660] sm:$0xf] }
 0x20a   : > { %2085 = vmatpush.msra.mxu0 %v4392_v4  ;;  %2066 = vmatpush.msra.mxu3 %v4427_v30  ;;  %v4438_v4 = vld [vmem:[%s8869_s5 + $0x430] sm:$0xff] }
 0x20b   : > { %2127 = vmatpush.msra.mxu2 %v4405_v54  ;;  %2181 = vmatpush.msrb.mxu1 %v1910_v43  ;;  %v4569_v54 = vld [vmem:[%s8869_s5 + $0x740] sm:$0xff] }
 0x20c   : > { %2086 = vmatpush.msra.mxu0 %v4389_v59  ;;  %2067 = vmatpush.msra.mxu3 %v4424_v33  ;;  %v4435_v59 = vld [vmem:[%s8869_s5 + $0x418] sm:$0xff]  ;;  %v1931_v33 = vld [vmem:[%s8869_s5 + $0x210] sm:$0xf] }
 0x20d   : > { %2128 = vmatpush.msra.mxu2 %v4402_v11  ;;  %2182 = vmatpush.msrb.mxu1 %v1907_v25  ;;  %v4529_v25 = vld [vmem:[%s8869_s5 + $0x648] sm:$0xff] }
 0x20e   : > { %4360 = vmatmul.msk.f32.gmra.mxu3 %vm1735_vm6, %v1734_v41  ;;  %2087 = vmatpush.msra.mxu0 %v4386_v15  ;;  %v1875_v41 = vld [vmem:[%s8869_s5 + $0x50] sm:$0xff] }
 0x20f   : > { %2129 = vmatpush.msra.mxu2 %v4399_v6  ;;  %2183 = vmatpush.msrb.mxu1 %v1904_v0 }
 0x210   : > { %2088 = vmatpush.msra.mxu0 %v4383_v37  ;;  %2068 = vmatpush.msra.mxu3 %v4421_v38  ;;  %v1874_v37 = vld [vmem:[%s8869_s5 + $0x48] sm:$0xff]  ;;  %v5040_v38 = vmov 1.0  }
 0x211   : > { %2130 = vmatpush.msra.mxu2 %v4396_v35  ;;  %2184 = vmatpush.msrb.mxu1 %v1901_v16  ;;  %v1920_v16 = vld [vmem:[%s8869_s5 + $0x1b8] sm:$0xff] }
 0x212   : > { %2089 = vmatpush.msra.mxu0 %v4380_v29  ;;  %4448 = vmatpush.msk.msrb.mxu3 %vm502_vm0, %v4441_v20  ;;  %v1871_v29 = vld [vmem:[%s8869_s5 + $0x30] sm:$0xff]  ;;  %v4508_v20 = vld [vmem:[%s8869_s5 + $0x5a0] sm:$0xff] }
 0x213   : > { %2131 = vmatpush.msra.mxu2 %v4393_v61  ;;  %2185 = vmatpush.msrb.mxu1 %v1898_v40  ;;  %v1929_v61 = vld [vmem:[%s8869_s5 + $0x200] sm:$0xff]  ;;  %v4517_v40 = vld [vmem:[%s8869_s5 + $0x5e8] sm:$0xff] }
 0x214   : > { %2090 = vmatpush.msra.mxu0 %v4377_v14  ;;  %2155 = vmatpush.msrb.mxu3 %v4438_v4  ;;  %v4426_v14 = vld [vmem:[%s8869_s5 + $0x3d0] sm:$0xff]  ;;  %v1928_v4 = vld [vmem:[%s8869_s5 + $0x1f8] sm:$0xff] }
 0x215   : > { %2132 = vmatpush.msra.mxu2 %v4390_v9  ;;  %2186 = vmatpush.msrb.mxu1 %v1895_v50  ;;  %v4526_v9 = vld [vmem:[%s8869_s5 + $0x630] sm:$0xff] }
 0x216   : > { %2091 = vmatpush.msra.mxu0 %v4374_v34  ;;  %2156 = vmatpush.msrb.mxu3 %v4435_v59  ;;  %v4423_v34 = vld [vmem:[%s8869_s5 + $0x3b8] sm:$0xff]  ;;  %v4514_v50 = vld [vmem:[%s8869_s5 + $0x5d0] sm:$0xff]  ;;  %v4505_v59 = vld [vmem:[%s8869_s5 + $0x588] sm:$0xff] }
 0x217   : > { %2133 = vmatpush.msra.mxu2 %v4387_v1  ;;  %2187 = vmatpush.msrb.mxu1 %v1892_v5 }
 0x218   : > { %2227 = vmatpush.msrb.mxu0 %v1911_v18  ;;  %2157 = vmatpush.msrb.mxu3 %v4432_v22  ;;  %v1927_v22 = vld [vmem:[%s8869_s5 + $0x1f0] sm:$0xff] }
 0x219   : > { %2134 = vmatpush.msra.mxu2 %v4384_v28  ;;  %2188 = vmatpush.msrb.mxu1 %v1889_v39  ;;  %v1917_v28 = vld [vmem:[%s8869_s5 + $0x1a0] sm:$0xff]  ;;  %v4513_v39 = vld [vmem:[%s8869_s5 + $0x5c8] sm:$0xff] }
 0x21a   : > { %2228 = vmatpush.msrb.mxu0 %v1908_v49  ;;  %2158 = vmatpush.msrb.mxu3 %v4429_v24  ;;  %v4504_v24 = vld [vmem:[%s8869_s5 + $0x580] sm:$0xff] }
 0x21b   : > { %2135 = vmatpush.msra.mxu2 %v4381_v48  ;;  %2189 = vmatpush.msrb.mxu1 %v1886_v17  ;;  %v1914_v48 = vld [vmem:[%s8869_s5 + $0x188] sm:$0xff]  ;;  %v1933_v17 = vld [vmem:[%s8869_s5 + $0x220] sm:$0xf] }
 0x21c   : > { %2229 = vmatpush.msrb.mxu0 %v1905_v45  ;;  %2159 = vmatpush.msrb.mxu3 %v4426_v14  ;;  %v1922_v14 = vld [vmem:[%s8869_s5 + $0x1c8] sm:$0xff]  ;;  %v4581_v49 = vld [vmem:[%s8869_s5 + $0x7a0] sm:$0xff] }
 0x21d   : > { %2136 = vmatpush.msra.mxu2 %v4378_v51  ;;  %2190 = vmatpush.msrb.mxu1 %v1883_v13  ;;  %v4510_v13 = vld [vmem:[%s8869_s5 + $0x5b0] sm:$0xff] }
 0x21e   : > { %2230 = vmatpush.msrb.mxu0 %v1902_v31  ;;  %2160 = vmatpush.msrb.mxu3 %v4423_v34  ;;  %v4496_v34 = vld [vmem:[%s8869_s5 + $0x540] sm:$0xff] }
 0x21f   : > { %2137 = vmatpush.msra.mxu2 %v4375_v3  ;;  %2191 = vmatpush.msrb.mxu1 %v1880_v58  ;;  %v4511_v3 = vld [vmem:[%s8869_s5 + $0x5b8] sm:$0xff]  ;;  %v1930_v58 = vld [vmem:[%s8869_s5 + $0x208] sm:$0xff] }
 0x220   : > { %2231 = vmatpush.msrb.mxu0 %v1899_v10 }
 0x221   : > { %2192 = vmatpush.msrb.mxu1 %v1877_v60  ;;  %v4507_v60 = vld [vmem:[%s8869_s5 + $0x598] sm:$0xff] }
 0x222   : > { %2232 = vmatpush.msrb.mxu0 %v1896_v36 }
 0x223   : > { %2193 = vmatpush.msrb.mxu1 %v1874_v37  ;;  %v4502_v37 = vld [vmem:[%s8869_s5 + $0x570] sm:$0xff] }
 0x224   : > { %2233 = vmatpush.msrb.mxu0 %v1893_v47 }
 0x225   : > { %2194 = vmatpush.msrb.mxu1 %v1871_v29  ;;  %v4499_v29 = vld [vmem:[%s8869_s5 + $0x558] sm:$0xff] }
 0x226   : > { %2234 = vmatpush.msrb.mxu0 %v1890_v55  ;;  %v1932_v55 = vld [vmem:[%s8869_s5 + $0x218] sm:$0xf] }
 0x227   : > { %2195 = vmatpush.msrb.mxu1 %v1868_v44  ;;  %v1924_v44 = vld [vmem:[%s8869_s5 + $0x1d8] sm:$0xff] }
 0x228   : > { %2235 = vmatpush.msrb.mxu0 %v1887_v27 }
 0x229   : > { %2196 = vmatpush.msrb.mxu1 %v1865_v7  ;;  %v4498_v7 = vld [vmem:[%s8869_s5 + $0x550] sm:$0xff] }
 0x22a   : > { %2236 = vmatpush.msrb.mxu0 %v1884_v12  ;;  %v1926_v12 = vld [vmem:[%s8869_s5 + $0x1e8] sm:$0xff] }
 0x22c   : > { %2237 = vmatpush.msrb.mxu0 %v1881_v53  ;;  %v1923_v53 = vld [vmem:[%s8869_s5 + $0x1d0] sm:$0xff] }
 0x22e   : > { %2238 = vmatpush.msrb.mxu0 %v1878_v8  ;;  %v4520_v8 = vld [vmem:[%s8869_s5 + $0x600] sm:$0xff] }
 0x230   : > { %2239 = vmatpush.msrb.mxu0 %v1875_v41 }
 0x232   : > { %2240 = vmatpush.msrb.mxu0 %v1872_v63 }
 0x234   : > { %2241 = vmatpush.msrb.mxu0 %v1869_v52 }
 0x236   : > { %2242 = vmatpush.msrb.mxu0 %v1866_v62 }
 0x274   : > { %v1820_v15 = vpop.f32.mrf.mxu0 }
 0x276   : > { %v1843_v36 = vpop.f32.mrf.mxu1 }
 0x279   : > { %v1765_v46 = vpop.f32.mrf.mxu3 }
 0x27a   : > { %v1849_v18 = vmax.f32 %v1765_v46, %v1820_v15  ;;  %v1925_v15 = vld [vmem:[%s8869_s5 + $0x1e0] sm:$0xff]  ;;  %v4501_v46 = vld [vmem:[%s8869_s5 + $0x568] sm:$0xff] }
 0x27c   : > { %v1823_v57 = vpop.f32.mrf.mxu0  ;;  %vm6861_vm7 = vcmp.gt.f32.partialorder %v1849_v18, 1.0  ;;  %v1919_v18 = vld [vmem:[%s8869_s5 + $0x1b0] sm:$0xff] }
 0x27d   : > { %v6868_v31 = vsel %vm6861_vm7, 1.0, %v5039_v19 }
 0x27e   : > { %v2008_v23 = vrot.slane %v6868_v31, 1  ;;  %v2624_v6 = vrot.slane %v6868_v31, 3  ;;  %v1846_v1 = vpop.f32.mrf.mxu1 }
 0x281   : > { %v1768_v26 = vpop.f32.mrf.mxu3 }
 0x282   : > { %v1851_v45 = vmax.f32 %v1768_v26, %v1823_v57  ;;  %v1921_v57 = vld [vmem:[%s8869_s5 + $0x1c0] sm:$0xff]  ;;  %v4493_v26 = vld [vmem:[%s8869_s5 + $0x528] sm:$0xff] }
 0x284   : > { %vm6870_vm8 = vcmp.gt.f32.partialorder %v1851_v45, 1.0  ;;  %v4495_v45 = vld [vmem:[%s8869_s5 + $0x538] sm:$0xff] }
 0x285   : > { %v6877_v10 = vsel %vm6870_vm8, 1.0, %v5039_v19 }
 0x286   : > { %v6880_v11 = vrot.slane %v6877_v10, 1  ;;  %v6883_v47 = vrot.slane %v6877_v10, 3 }
 0x288   : > { %v2010_v35 = vsel %vm485_vm1, %v2008_v23, %v6880_v11  ;;  %v6897_v43 = vsel %vm884_vm4, %v2624_v6, %v6883_v47  ;;  %v4490_v23 = vld [vmem:[%s8869_s5 + $0x510] sm:$0xff]  ;;  %v4492_v6 = vld [vmem:[%s8869_s5 + $0x520] sm:$0xff] }
 0x289   : > { %v1788_v27 = vpop.f32.mrf.mxu3  ;;  %2046 = vmatmul.f32.vlgmr.msrb.gmra.mxu2 %v2010_v35  ;;  %2092 = vmatmul.f32.vlgmr.msra.gmra.mxu0 %v2010_v35 }
 0x28a   : > { %4458 = vmatpush.msk.msrb.mxu2 %vm502_vm0, %v1932_v55  ;;  %4535 = vmatpush.msk.msra.mxu0 %vm502_vm0, %v4532_v21  ;;  %v1850_v0 = vmax.f32 %v1788_v27, %v1843_v36  ;;  %v1916_v36 = vld [vmem:[%s8869_s5 + $0x198] sm:$0xff]  ;;  %v1913_v55 = vld [vmem:[%s8869_s5 + $0x180] sm:$0xff]  ;;  %v1915_v21 = vld [vmem:[%s8869_s5 + $0x190] sm:$0xff] }
 0x28b   : > { %v1912_v27 = vld [vmem:[%s8869_s5 + $0x178] sm:$0xff] }
 0x28c   : > { %2260 = vmatpush.msrb.mxu2 %v1929_v61  ;;  %2443 = vmatpush.msra.mxu0 %v4529_v25  ;;  %vm1854_vm9 = vcmp.gt.f32.partialorder %v1850_v0, 1.0  ;;  %v4487_v61 = vld [vmem:[%s8869_s5 + $0x4f8] sm:$0xff] }
 0x28d   : > { %v6934_v32 = vsel %vm1854_vm9, 1.0, %v5039_v19 }
 0x28e   : > { %2261 = vmatpush.msrb.mxu2 %v1926_v12  ;;  %2444 = vmatpush.msra.mxu0 %v4526_v9  ;;  %v2011_v5 = vrot.slane %v6934_v32, 1  ;;  %v2862_v52 = vrot.slane %v6934_v32, 4  ;;  %v2392_v25 = vrot.slane %v6934_v32, 2  ;;  %v4512_v12 = vld [vmem:[%s8869_s5 + $0x5c0] sm:$0xff]  ;;  %v4489_v9 = vld [vmem:[%s8869_s5 + $0x508] sm:$0xff] }
 0x290   : > { %2262 = vmatpush.msrb.mxu2 %v1923_v53  ;;  %2445 = vmatpush.msra.mxu0 %v4523_v42  ;;  %v1909_v53 = vld [vmem:[%s8869_s5 + $0x160] sm:$0xff] }
 0x291   : > { %v1791_v2 = vpop.f32.mrf.mxu3  ;;  %2049 = vmatmul.f32.gmra.mxu2 %v6880_v11  ;;  %2095 = vmatmul.f32.gmra.mxu0 %v6880_v11  ;;  %v4484_v42 = vld [vmem:[%s8869_s5 + $0x4e0] sm:$0xff] }
 0x292   : > { %v1852_v41 = vmax.f32 %v1791_v2, %v1846_v1  ;;  %2263 = vmatpush.msrb.mxu2 %v1920_v16  ;;  %2446 = vmatpush.msra.mxu0 %v4520_v8  ;;  %v4509_v1 = vld [vmem:[%s8869_s5 + $0x5a8] sm:$0xff]  ;;  %v4486_v16 = vld [vmem:[%s8869_s5 + $0x4f0] sm:$0xff] }
 0x293   : > { %v1906_v8 = vld [vmem:[%s8869_s5 + $0x148] sm:$0xff] }
 0x294   : > { %vm1856_vm10 = vcmp.gt.f32.partialorder %v1852_v41, 1.0  ;;  %2264 = vmatpush.msrb.mxu2 %v1917_v28  ;;  %2447 = vmatpush.msra.mxu0 %v4517_v40  ;;  %v4481_v2 = vld [vmem:[%s8869_s5 + $0x4c8] sm:$0xff]  ;;  %v4506_v28 = vld [vmem:[%s8869_s5 + $0x590] sm:$0xff]  ;;  %v4483_v40 = vld [vmem:[%s8869_s5 + $0x4d8] sm:$0xff] }
 0x295   : > { %v6943_v63 = vsel %vm1856_vm10, 1.0, %v5039_v19  ;;  %v1903_v41 = vld [vmem:[%s8869_s5 + $0x130] sm:$0xff] }
 0x296   : > { %v6946_v56 = vrot.slane %v6943_v63, 1  ;;  %v6949_v51 = vrot.slane %v6943_v63, 4  ;;  %2265 = vmatpush.msrb.mxu2 %v1914_v48  ;;  %2448 = vmatpush.msra.mxu0 %v4514_v50  ;;  %v4478_v48 = vld [vmem:[%s8869_s5 + $0x4b0] sm:$0xff]  ;;  %v4503_v50 = vld [vmem:[%s8869_s5 + $0x578] sm:$0xff] }
 0x298   : > { %v6955_v30 = vsel %vm485_vm1, %v2011_v5, %v6946_v56  ;;  %v6965_v62 = vsel %vm502_vm0, %v2862_v52, %v6949_v51  ;;  %v4480_v5 = vld [vmem:[%s8869_s5 + $0x4c0] sm:$0xff]  ;;  %v1900_v52 = vld [vmem:[%s8869_s5 + $0x118] sm:$0xff] }
 0x299   : > { %4443 = vmatmul.msk.f32.vlgmr.msra.gmra.mxu3 %vm2016_vm11, %v6955_v30  ;;  %4446 = vmatmul.msk.f32.vlgmr.msra.gmra.mxu1 %vm2016_vm11, %v6955_v30 }
 0x29a   : > { %2138 = vmatmul.f32.vlgmr.msra.gmra.mxu2 %v2010_v35  ;;  %4456 = vmatmul.msk.f32.vlgmr.msrb.gmra.mxu0 %vm6861_vm7, %v5040_v38  ;;  %v7069_v35 = vrot.slane %v6943_v63, 2 }
 0x29b   : > { %2410 = vmatpush.msra.mxu2 %v4511_v3  ;;  %2502 = vmatpush.msrb.mxu0 %v4513_v39  ;;  %v4500_v3 = vld [vmem:[%s8869_s5 + $0x560] sm:$0xff]  ;;  %v4477_v39 = vld [vmem:[%s8869_s5 + $0x4a8] sm:$0xff] }
 0x29c   : > { %4453 = vmatpush.msk.msra.mxu3 %vm502_vm0, %v1931_v33  ;;  %4463 = vmatpush.msk.msra.mxu1 %vm502_vm0, %v1933_v17  ;;  %v7093_v0 = vsel %vm731_vm3, %v2392_v25, %v7069_v35  ;;  %v4472_v33 = vld [vmem:[%s8869_s5 + $0x480] sm:$0xff]  ;;  %v4497_v17 = vld [vmem:[%s8869_s5 + $0x548] sm:$0xff]  ;;  %v4522_v25 = vld [vmem:[%s8869_s5 + $0x610] sm:$0xff] }
 0x29d   : > { %2411 = vmatpush.msra.mxu2 %v4508_v20  ;;  %2503 = vmatpush.msrb.mxu0 %v4510_v13  ;;  %v4474_v20 = vld [vmem:[%s8869_s5 + $0x490] sm:$0xff]  ;;  %v1894_v13 = vld [vmem:[%s8869_s5 + $0xe8] sm:$0xff] }
 0x29e   : > { %2214 = vmatpush.msra.mxu3 %v1928_v4  ;;  %2306 = vmatpush.msra.mxu1 %v1930_v58  ;;  %v4469_v4 = vld [vmem:[%s8869_s5 + $0x468] sm:$0xff]  ;;  %v4494_v58 = vld [vmem:[%s8869_s5 + $0x530] sm:$0xff] }
 0x29f   : > { %2412 = vmatpush.msra.mxu2 %v4505_v59  ;;  %2504 = vmatpush.msrb.mxu0 %v4507_v60  ;;  %v4471_v59 = vld [vmem:[%s8869_s5 + $0x478] sm:$0xff]  ;;  %v1891_v60 = vld [vmem:[%s8869_s5 + $0xd0] sm:$0xff] }
 0x2a0   : > { %2215 = vmatpush.msra.mxu3 %v1925_v15  ;;  %2307 = vmatpush.msra.mxu1 %v1927_v22  ;;  %v4466_v15 = vld [vmem:[%s8869_s5 + $0x450] sm:$0xff]  ;;  %v4491_v22 = vld [vmem:[%s8869_s5 + $0x518] sm:$0xff] }
 0x2a1   : > { %2413 = vmatpush.msra.mxu2 %v4502_v37  ;;  %2505 = vmatpush.msrb.mxu0 %v4504_v24  ;;  %v4468_v37 = vld [vmem:[%s8869_s5 + $0x460] sm:$0xff]  ;;  %v7191_v24 = vrot.slane %v6877_v10, 2 }
 0x2a2   : > { %4444 = vmatmul.msk.f32.gmra.mxu3 %vm2016_vm11, %v6946_v56  ;;  %4447 = vmatmul.msk.f32.gmra.mxu1 %vm2016_vm11, %v6946_v56 }
 0x2a3   : > { %2141 = vmatmul.f32.gmra.mxu2 %v6880_v11  ;;  %4457 = vmatmul.msk.f32.gmra.mxu0 %vm6870_vm8, %v5040_v38  ;;  %v1918_v11 = vld [vmem:[%s8869_s5 + $0x1a8] sm:$0xff] }
 0x2a4   : > { %2414 = vmatpush.msra.mxu2 %v4499_v29  ;;  %2506 = vmatpush.msrb.mxu0 %v4501_v46  ;;  %v4534_v29 = vld [vmem:[%s8869_s5 + $0x670] sm:$0xf] }
 0x2a5   : > { %2216 = vmatpush.msra.mxu3 %v1922_v14  ;;  %2308 = vmatpush.msra.mxu1 %v1924_v44  ;;  %v4611_v46 = vld [vmem:[%s8869_s5 + $0x890] sm:$0xf]  ;;  %v1888_v14 = vld [vmem:[%s8869_s5 + $0xb8] sm:$0xff]  ;;  %v2389_v44 = vrot.slane %v6868_v31, 2 }
 0x2a6   : > { %2415 = vmatpush.msra.mxu2 %v4496_v34  ;;  %2507 = vmatpush.msrb.mxu0 %v4498_v7  ;;  %v4488_v34 = vld [vmem:[%s8869_s5 + $0x500] sm:$0xff] }
 0x2a7   : > { %2217 = vmatpush.msra.mxu3 %v1919_v18  ;;  %2309 = vmatpush.msra.mxu1 %v1921_v57  ;;  %v7214_v7 = vsel %vm731_vm3, %v2389_v44, %v7191_v24  ;;  %v4531_v18 = vld [vmem:[%s8869_s5 + $0x658] sm:$0xff]  ;;  %v4521_v44 = vld [vmem:[%s8869_s5 + $0x608] sm:$0xff] }
 0x2a8   : > { %2416 = vmatpush.msra.mxu2 %v4493_v26  ;;  %2508 = vmatpush.msrb.mxu0 %v4495_v45  ;;  %v4608_v57 = vld [vmem:[%s8869_s5 + $0x878] sm:$0xff]  ;;  %v1885_v26 = vld [vmem:[%s8869_s5 + $0xa0] sm:$0xff]  ;;  %v4485_v45 = vld [vmem:[%s8869_s5 + $0x4e8] sm:$0xff] }
 0x2a9   : > { %2218 = vmatpush.msra.mxu3 %v1916_v36  ;;  %2310 = vmatpush.msra.mxu1 %v1918_v11  ;;  %v4528_v36 = vld [vmem:[%s8869_s5 + $0x640] sm:$0xff] }
 0x2aa   : > { %2417 = vmatpush.msra.mxu2 %v4490_v23  ;;  %2509 = vmatpush.msrb.mxu0 %v4492_v6  ;;  %v4605_v11 = vld [vmem:[%s8869_s5 + $0x860] sm:$0xff]  ;;  %v1882_v23 = vld [vmem:[%s8869_s5 + $0x88] sm:$0xff]  ;;  %v4482_v6 = vld [vmem:[%s8869_s5 + $0x4d0] sm:$0xff] }
 0x2ab   : > { %2219 = vmatpush.msra.mxu3 %v1913_v55  ;;  %2311 = vmatpush.msra.mxu1 %v1915_v21  ;;  %v4525_v55 = vld [vmem:[%s8869_s5 + $0x628] sm:$0xff] }
 0x2ac   : > { %4449 = vmatmul.msk.f32.vlgmr.msrb.gmra.mxu3 %vm2016_vm11, %v6955_v30  ;;  %4451 = vmatmul.msk.f32.vlgmr.msrb.gmra.mxu1 %vm6861_vm7, %v5040_v38  ;;  %v4475_v30 = vld [vmem:[%s8869_s5 + $0x498] sm:$0xff]  ;;  %v4602_v21 = vld [vmem:[%s8869_s5 + $0x848] sm:$0xff] }
 0x2ad   : > { %4459 = vmatmul.msk.f32.vlgmr.msrb.gmra.mxu2 %vm2016_vm11, %v6934_v32  ;;  %2273 = vmatpush.msrb.mxu3 %v1912_v27  ;;  %v1879_v27 = vld [vmem:[%s8869_s5 + $0x70] sm:$0xff] }
 0x2ae   : > { %2418 = vmatpush.msra.mxu2 %v4487_v61  ;;  %4536 = vmatmul.msk.f32.vlgmr.msra.gmra.mxu0 %vm2016_vm11, %v7093_v0  ;;  %v4479_v61 = vld [vmem:[%s8869_s5 + $0x4b8] sm:$0xff] }
 0x2af   : > { %2456 = vmatpush.msrb.mxu1 %v4512_v12  ;;  %2510 = vmatpush.msrb.mxu0 %v4489_v9  ;;  %v4599_v12 = vld [vmem:[%s8869_s5 + $0x830] sm:$0xff]  ;;  %v1876_v9 = vld [vmem:[%s8869_s5 + $0x58] sm:$0xff] }
 0x2b0   : > { %2274 = vmatpush.msrb.mxu3 %v1909_v53  ;;  %2419 = vmatpush.msra.mxu2 %v4484_v42  ;;  %v4476_v53 = vld [vmem:[%s8869_s5 + $0x4a0] sm:$0xff]  ;;  %v4519_v42 = vld [vmem:[%s8869_s5 + $0x5f8] sm:$0xff] }
 0x2b1   : > { %2457 = vmatpush.msrb.mxu1 %v4509_v1  ;;  %2511 = vmatpush.msrb.mxu0 %v4486_v16  ;;  %v4596_v1 = vld [vmem:[%s8869_s5 + $0x818] sm:$0xff]  ;;  %v1873_v16 = vld [vmem:[%s8869_s5 + $0x40] sm:$0xff] }
 0x2b2   : > { %2275 = vmatpush.msrb.mxu3 %v1906_v8  ;;  %2420 = vmatpush.msra.mxu2 %v4481_v2  ;;  %v4473_v8 = vld [vmem:[%s8869_s5 + $0x488] sm:$0xff]  ;;  %v4516_v2 = vld [vmem:[%s8869_s5 + $0x5e0] sm:$0xff] }
 0x2b3   : > { %2458 = vmatpush.msrb.mxu1 %v4506_v28  ;;  %2512 = vmatpush.msrb.mxu0 %v4483_v40  ;;  %v4593_v28 = vld [vmem:[%s8869_s5 + $0x800] sm:$0xff]  ;;  %v1870_v40 = vld [vmem:[%s8869_s5 + $0x28] sm:$0xff] }
 0x2b4   : > { %2276 = vmatpush.msrb.mxu3 %v1903_v41  ;;  %2421 = vmatpush.msra.mxu2 %v4478_v48  ;;  %v4470_v41 = vld [vmem:[%s8869_s5 + $0x470] sm:$0xff]  ;;  %v4590_v48 = vld [vmem:[%s8869_s5 + $0x7e8] sm:$0xff] }
 0x2b5   : > { %2459 = vmatpush.msrb.mxu1 %v4503_v50  ;;  %2513 = vmatpush.msrb.mxu0 %v4480_v5  ;;  %v4667_v50 = vld [vmem:[%s8869_s5 + $0xa08] sm:$0xff]  ;;  %v1867_v5 = vld [vmem:[%s8869_s5 + $0x10] sm:$0xff] }
 0x2b6   : > { %4450 = vmatmul.msk.f32.gmra.mxu3 %vm2016_vm11, %v6946_v56  ;;  %4452 = vmatmul.msk.f32.gmra.mxu1 %vm6870_vm8, %v5040_v38  ;;  %v1897_v56 = vld [vmem:[%s8869_s5 + $0x100] sm:$0xff] }
 0x2b7   : > { %4460 = vmatmul.msk.f32.gmra.mxu2 %vm2016_vm11, %v6943_v63  ;;  %2277 = vmatpush.msrb.mxu3 %v1900_v52  ;;  %v4467_v52 = vld [vmem:[%s8869_s5 + $0x458] sm:$0xff] }
 0x2b8   : > { %2422 = vmatpush.msra.mxu2 %v4475_v30  ;;  %4537 = vmatmul.msk.f32.gmra.mxu0 %vm2016_vm11, %v7069_v35  ;;  %v4587_v30 = vld [vmem:[%s8869_s5 + $0x7d0] sm:$0xff] }
 0x2b9   : > { %2460 = vmatpush.msrb.mxu1 %v4500_v3  ;;  %2514 = vmatpush.msrb.mxu0 %v4477_v39  ;;  %v4664_v3 = vld [vmem:[%s8869_s5 + $0x9f0] sm:$0xff]  ;;  %v7315_v39 = vrot.slane %v6943_v63, 3 }
 0x2ba   : > { %2278 = vmatpush.msrb.mxu3 %v1897_v56  ;;  %2423 = vmatpush.msra.mxu2 %v4472_v33  ;;  %v4533_v56 = vld [vmem:[%s8869_s5 + $0x668] sm:$0xf] }
 0x2bb   : > { %2461 = vmatpush.msrb.mxu1 %v4497_v17  ;;  %2515 = vmatpush.msrb.mxu0 %v4474_v20  ;;  %v4610_v33 = vld [vmem:[%s8869_s5 + $0x888] sm:$0xf]  ;;  %v2627_v17 = vrot.slane %v6934_v32, 3  ;;  %v4661_v20 = vld [vmem:[%s8869_s5 + $0x9d8] sm:$0xff] }
 0x2bc   : > { %2279 = vmatpush.msrb.mxu3 %v1894_v13  ;;  %2424 = vmatpush.msra.mxu2 %v4469_v4  ;;  %v4530_v13 = vld [vmem:[%s8869_s5 + $0x650] sm:$0xff] }
 0x2bd   : > { %2462 = vmatpush.msrb.mxu1 %v4494_v58  ;;  %2516 = vmatpush.msrb.mxu0 %v4471_v59  ;;  %v4607_v4 = vld [vmem:[%s8869_s5 + $0x870] sm:$0xff]  ;;  %v4658_v58 = vld [vmem:[%s8869_s5 + $0x9c0] sm:$0xff]  ;;  %v4527_v59 = vld [vmem:[%s8869_s5 + $0x638] sm:$0xff] }
 0x2be   : > { %2280 = vmatpush.msrb.mxu3 %v1891_v60  ;;  %2425 = vmatpush.msra.mxu2 %v4466_v15  ;;  %v4604_v60 = vld [vmem:[%s8869_s5 + $0x858] sm:$0xff]  ;;  %v4578_v15 = vld [vmem:[%s8869_s5 + $0x788] sm:$0xff] }
 0x2bf   : > { %2463 = vmatpush.msrb.mxu1 %v4491_v22  ;;  %2517 = vmatpush.msrb.mxu0 %v4468_v37  ;;  %v4655_v22 = vld [vmem:[%s8869_s5 + $0x9a8] sm:$0xff]  ;;  %v4524_v37 = vld [vmem:[%s8869_s5 + $0x620] sm:$0xff] }
 0x2c0   : > { %4541 = vmatpush.msk.msrb.mxu2 %vm502_vm0, %v4534_v29  ;;  %4454 = vmatmul.msk.f32.vlgmr.msra.gmra.mxu3 %vm2016_vm11, %v6934_v32  ;;  %v4601_v29 = vld [vmem:[%s8869_s5 + $0x840] sm:$0xff] }
 0x2c1   : > { %4616 = vmatpush.msk.msra.mxu0 %vm502_vm0, %v4611_v46  ;;  %4464 = vmatmul.msk.f32.vlgmr.msra.gmra.mxu1 %vm2016_vm11, %v6934_v32  ;;  %v7338_v32 = vsel %vm884_vm4, %v2627_v17, %v7315_v39  ;;  %v4575_v46 = vld [vmem:[%s8869_s5 + $0x770] sm:$0xff]  ;;  %v7507_v17 = vrot.slane %v6877_v10, 4  ;;  %v4570_v10 = vld [vmem:[%s8869_s5 + $0x748] sm:$0xff] }
 0x2c2   : > { %2281 = vmatpush.msrb.mxu3 %v1888_v14  ;;  %2426 = vmatmul.f32.vlgmr.msra.gmra.mxu2 %v7214_v7  ;;  %v4652_v14 = vld [vmem:[%s8869_s5 + $0x990] sm:$0xff] }
 0x2c3   : > { %2464 = vmatpush.msrb.mxu1 %v4488_v34  ;;  %2518 = vmatmul.f32.vlgmr.msrb.gmra.mxu0 %v7214_v7  ;;  %v4598_v34 = vld [vmem:[%s8869_s5 + $0x828] sm:$0xff] }
 0x2c4   : > { %2535 = vmatpush.msrb.mxu2 %v4531_v18  ;;  %2724 = vmatpush.msra.mxu0 %v4608_v57  ;;  %v4649_v18 = vld [vmem:[%s8869_s5 + $0x978] sm:$0xff]  ;;  %v4518_v57 = vld [vmem:[%s8869_s5 + $0x5f0] sm:$0xff] }
 0x2c5   : > { %2282 = vmatpush.msrb.mxu3 %v1885_v26  ;;  %2465 = vmatpush.msrb.mxu1 %v4485_v45  ;;  %v4595_v26 = vld [vmem:[%s8869_s5 + $0x810] sm:$0xff]  ;;  %v4515_v45 = vld [vmem:[%s8869_s5 + $0x5d8] sm:$0xff] }
 0x2c6   : > { %2536 = vmatpush.msrb.mxu2 %v4528_v36  ;;  %2725 = vmatpush.msra.mxu0 %v4605_v11  ;;  %v4592_v36 = vld [vmem:[%s8869_s5 + $0x7f8] sm:$0xff]  ;;  %v4589_v11 = vld [vmem:[%s8869_s5 + $0x7e0] sm:$0xff] }
 0x2c7   : > { %2283 = vmatpush.msrb.mxu3 %v1882_v23  ;;  %2466 = vmatpush.msrb.mxu1 %v4482_v6  ;;  %v4566_v23 = vld [vmem:[%s8869_s5 + $0x728] sm:$0xff]  ;;  %v4591_v6 = vld [vmem:[%s8869_s5 + $0x7f0] sm:$0xff] }
 0x2c8   : > { %2537 = vmatpush.msrb.mxu2 %v4525_v55  ;;  %2726 = vmatpush.msra.mxu0 %v4602_v21  ;;  %v4643_v55 = vld [vmem:[%s8869_s5 + $0x948] sm:$0xff] }
 0x2c9   : > { %2284 = vmatpush.msrb.mxu3 %v1879_v27  ;;  %2467 = vmatpush.msrb.mxu1 %v4479_v61  ;;  %v4586_v21 = vld [vmem:[%s8869_s5 + $0x7c8] sm:$0xff]  ;;  %v4563_v27 = vld [vmem:[%s8869_s5 + $0x710] sm:$0xff]  ;;  %v4588_v61 = vld [vmem:[%s8869_s5 + $0x7d8] sm:$0xff] }
 0x2ca   : > { %2538 = vmatpush.msrb.mxu2 %v4522_v25  ;;  %2727 = vmatpush.msra.mxu0 %v4599_v12  ;;  %v4640_v25 = vld [vmem:[%s8869_s5 + $0x930] sm:$0xff] }
 0x2cb   : > { %4455 = vmatmul.msk.f32.gmra.mxu3 %vm2016_vm11, %v6943_v63  ;;  %4465 = vmatmul.msk.f32.gmra.mxu1 %vm2016_vm11, %v6943_v63  ;;  %v4584_v63 = vld [vmem:[%s8869_s5 + $0x7b8] sm:$0xff]  ;;  %v4583_v12 = vld [vmem:[%s8869_s5 + $0x7b0] sm:$0xff] }
 0x2cc   : > { %2285 = vmatpush.msrb.mxu3 %v1876_v9  ;;  %2429 = vmatmul.f32.gmra.mxu2 %v7191_v24  ;;  %v4560_v9 = vld [vmem:[%s8869_s5 + $0x6f8] sm:$0xff] }
 0x2cd   : > { %2468 = vmatpush.msrb.mxu1 %v4476_v53  ;;  %2521 = vmatmul.f32.gmra.mxu0 %v7191_v24  ;;  %v4585_v53 = vld [vmem:[%s8869_s5 + $0x7c0] sm:$0xff] }
 0x2ce   : > { %2539 = vmatpush.msrb.mxu2 %v4519_v42  ;;  %2728 = vmatpush.msra.mxu0 %v4596_v1  ;;  %v4637_v42 = vld [vmem:[%s8869_s5 + $0x918] sm:$0xff] }
 0x2cf   : > { %2286 = vmatpush.msrb.mxu3 %v1873_v16  ;;  %2469 = vmatpush.msrb.mxu1 %v4473_v8  ;;  %v4580_v1 = vld [vmem:[%s8869_s5 + $0x798] sm:$0xff]  ;;  %v4557_v16 = vld [vmem:[%s8869_s5 + $0x6e0] sm:$0xff]  ;;  %v4582_v8 = vld [vmem:[%s8869_s5 + $0x7a8] sm:$0xff] }
 0x2d0   : > { %2540 = vmatpush.msrb.mxu2 %v4516_v2  ;;  %2729 = vmatpush.msra.mxu0 %v4593_v28  ;;  %v4577_v2 = vld [vmem:[%s8869_s5 + $0x780] sm:$0xff]  ;;  %v4554_v28 = vld [vmem:[%s8869_s5 + $0x6c8] sm:$0xff] }
 0x2d1   : > { %2287 = vmatpush.msrb.mxu3 %v1870_v40  ;;  %2470 = vmatpush.msrb.mxu1 %v4470_v41  ;;  %v4579_v40 = vld [vmem:[%s8869_s5 + $0x790] sm:$0xff]  ;;  %v4631_v41 = vld [vmem:[%s8869_s5 + $0x8e8] sm:$0xff] }
 0x2d2   : > { %2691 = vmatpush.msra.mxu2 %v4590_v48  ;;  %2880 = vmatpush.msrb.mxu0 %v4667_v50  ;;  %v4574_v48 = vld [vmem:[%s8869_s5 + $0x768] sm:$0xff]  ;;  %v4551_v50 = vld [vmem:[%s8869_s5 + $0x6b0] sm:$0xff] }
 0x2d3   : > { %2288 = vmatpush.msrb.mxu3 %v1867_v5  ;;  %2471 = vmatpush.msrb.mxu1 %v4467_v52  ;;  %v4576_v5 = vld [vmem:[%s8869_s5 + $0x778] sm:$0xff]  ;;  %v4628_v52 = vld [vmem:[%s8869_s5 + $0x8d0] sm:$0xff] }
 0x2d4   : > { %2692 = vmatpush.msra.mxu2 %v4587_v30  ;;  %2881 = vmatpush.msrb.mxu0 %v4664_v3  ;;  %v4571_v30 = vld [vmem:[%s8869_s5 + $0x750] sm:$0xff]  ;;  %v4548_v3 = vld [vmem:[%s8869_s5 + $0x698] sm:$0xff] }
 0x2d5   : > { %4538 = vmatpush.msk.msra.mxu3 %vm502_vm0, %v4533_v56  ;;  %4613 = vmatpush.msk.msra.mxu1 %vm502_vm0, %v4610_v33  ;;  %v4573_v56 = vld [vmem:[%s8869_s5 + $0x760] sm:$0xff]  ;;  %v4625_v33 = vld [vmem:[%s8869_s5 + $0x8b8] sm:$0xff] }
 0x2d6   : > { %4461 = vmatmul.msk.f32.vlgmr.msrb.gmra.mxu3 %vm6861_vm7, %v5040_v38  ;;  %2472 = vmatmul.f32.vlgmr.msrb.gmra.mxu1 %v7214_v7  ;;  %v4572_v7 = vld [vmem:[%s8869_s5 + $0x758] sm:$0xff] }
 0x2d7   : > { %4542 = vmatmul.msk.f32.vlgmr.msrb.gmra.mxu2 %vm2016_vm11, %v7093_v0  ;;  %4617 = vmatmul.msk.f32.vlgmr.msra.gmra.mxu0 %vm2016_vm11, %v7338_v32 }
 0x2d8   : > { %2693 = vmatpush.msra.mxu2 %v4584_v63  ;;  %2882 = vmatpush.msrb.mxu0 %v4661_v20  ;;  %v4568_v63 = vld [vmem:[%s8869_s5 + $0x738] sm:$0xff]  ;;  %v4545_v20 = vld [vmem:[%s8869_s5 + $0x680] sm:$0xff] }
 0x2d9   : > { %2489 = vmatpush.msra.mxu3 %v4530_v13  ;;  %2678 = vmatpush.msra.mxu1 %v4607_v4  ;;  %v2859_v13 = vrot.slane %v6868_v31, 4  ;;  %v4688_v4 = vld [vmem:[%s8869_s5 + $0xab0] sm:$0xf] }
 0x2da   : > { %2694 = vmatpush.msra.mxu2 %v4581_v49  ;;  %2883 = vmatpush.msrb.mxu0 %v4658_v58  ;;  %v4565_v49 = vld [vmem:[%s8869_s5 + $0x720] sm:$0xff]  ;;  %v4567_v31 = vld [vmem:[%s8869_s5 + $0x730] sm:$0xff] }
 0x2db   : > { %2490 = vmatpush.msra.mxu3 %v4527_v59  ;;  %2679 = vmatpush.msra.mxu1 %v4604_v60  ;;  %v7534_v58 = vsel %vm502_vm0, %v2859_v13, %v7507_v17  ;;  %v4690_v59 = vld [vmem:[%s8869_s5 + $0xac0] sm:$0xf]  ;;  %v4685_v60 = vld [vmem:[%s8869_s5 + $0xa98] sm:$0xff] }
 0x2dc   : > { %2695 = vmatpush.msra.mxu2 %v4578_v15  ;;  %2884 = vmatpush.msrb.mxu0 %v4655_v22  ;;  %v4562_v15 = vld [vmem:[%s8869_s5 + $0x708] sm:$0xff]  ;;  %v4564_v22 = vld [vmem:[%s8869_s5 + $0x718] sm:$0xff]  ;;  %v4674_v13 = vld [vmem:[%s8869_s5 + $0xa40] sm:$0xff] }
 0x2dd   : > { %2491 = vmatpush.msra.mxu3 %v4524_v37  ;;  %2680 = vmatpush.msra.mxu1 %v4601_v29  ;;  %v4687_v37 = vld [vmem:[%s8869_s5 + $0xaa8] sm:$0xff]  ;;  %v4682_v29 = vld [vmem:[%s8869_s5 + $0xa80] sm:$0xff] }
 0x2de   : > { %2696 = vmatpush.msra.mxu2 %v4575_v46  ;;  %2885 = vmatpush.msrb.mxu0 %v4652_v14  ;;  %v4559_v46 = vld [vmem:[%s8869_s5 + $0x6f0] sm:$0xff]  ;;  %v4561_v14 = vld [vmem:[%s8869_s5 + $0x700] sm:$0xff] }
 0x2df   : > { %2492 = vmatpush.msra.mxu3 %v4521_v44  ;;  %2681 = vmatpush.msra.mxu1 %v4598_v34  ;;  %v4684_v44 = vld [vmem:[%s8869_s5 + $0xa90] sm:$0xff]  ;;  %v4679_v34 = vld [vmem:[%s8869_s5 + $0xa68] sm:$0xff] }
 0x2e0   : > { %4462 = vmatmul.msk.f32.gmra.mxu3 %vm6870_vm8, %v5040_v38  ;;  %2475 = vmatmul.f32.gmra.mxu1 %v7191_v24  ;;  %v4646_v24 = vld [vmem:[%s8869_s5 + $0x960] sm:$0xff] }
 0x2e1   : > { %4543 = vmatmul.msk.f32.gmra.mxu2 %vm2016_vm11, %v7069_v35  ;;  %4618 = vmatmul.msk.f32.gmra.mxu0 %vm2016_vm11, %v7315_v39 }
 0x2e2   : > { %2697 = vmatpush.msra.mxu2 %v4572_v7  ;;  %2886 = vmatpush.msrb.mxu0 %v4649_v18  ;;  %v4556_v7 = vld [vmem:[%s8869_s5 + $0x6d8] sm:$0xff]  ;;  %v4558_v18 = vld [vmem:[%s8869_s5 + $0x6e8] sm:$0xff] }
 0x2e3   : > { %2493 = vmatpush.msra.mxu3 %v4518_v57  ;;  %2682 = vmatpush.msra.mxu1 %v4595_v26  ;;  %v4676_v57 = vld [vmem:[%s8869_s5 + $0xa50] sm:$0xff]  ;;  %v4553_v26 = vld [vmem:[%s8869_s5 + $0x6c0] sm:$0xff] }
 0x2e4   : > { %2698 = vmatpush.msra.mxu2 %v4569_v54  ;;  %2887 = vmatpush.msrb.mxu0 %v4646_v24  ;;  %v4555_v54 = vld [vmem:[%s8869_s5 + $0x6d0] sm:$0xff]  ;;  %v4681_v24 = vld [vmem:[%s8869_s5 + $0xa78] sm:$0xff] }
 0x2e5   : > { %2494 = vmatpush.msra.mxu3 %v4515_v45  ;;  %2683 = vmatpush.msra.mxu1 %v4592_v36  ;;  %v4673_v45 = vld [vmem:[%s8869_s5 + $0xa38] sm:$0xff]  ;;  %v4550_v36 = vld [vmem:[%s8869_s5 + $0x6a8] sm:$0xff] }
 0x2e6   : > { %2699 = vmatpush.msra.mxu2 %v4566_v23  ;;  %2888 = vmatpush.msrb.mxu0 %v4643_v55  ;;  %v4678_v23 = vld [vmem:[%s8869_s5 + $0xa60] sm:$0xff]  ;;  %v4547_v55 = vld [vmem:[%s8869_s5 + $0x690] sm:$0xff] }
 0x2e7   : > { %2645 = vmatpush.msrb.mxu3 %v4589_v11  ;;  %2737 = vmatpush.msrb.mxu1 %v4591_v6  ;;  %v4552_v11 = vld [vmem:[%s8869_s5 + $0x6b8] sm:$0xff]  ;;  %v4670_v6 = vld [vmem:[%s8869_s5 + $0xa20] sm:$0xff] }
 0x2e8   : > { %2700 = vmatpush.msra.mxu2 %v4563_v27  ;;  %2889 = vmatpush.msrb.mxu0 %v4640_v25  ;;  %v4669_v27 = vld [vmem:[%s8869_s5 + $0xa18] sm:$0xff] }
 0x2e9   : > { %2646 = vmatpush.msrb.mxu3 %v4586_v21  ;;  %2738 = vmatpush.msrb.mxu1 %v4588_v61  ;;  %v4549_v21 = vld [vmem:[%s8869_s5 + $0x6a0] sm:$0xff]  ;;  %v4675_v61 = vld [vmem:[%s8869_s5 + $0xa48] sm:$0xff]  ;;  %v4544_v25 = vld [vmem:[%s8869_s5 + $0x678] sm:$0xff] }
 0x2ea   : > { %4539 = vmatmul.msk.f32.vlgmr.msra.gmra.mxu3 %vm2016_vm11, %v7093_v0  ;;  %4614 = vmatmul.msk.f32.vlgmr.msra.gmra.mxu1 %vm2016_vm11, %v7338_v32  ;;  %v4634_v0 = vld [vmem:[%s8869_s5 + $0x900] sm:$0xff] }
 0x2eb   : > { %2647 = vmatpush.msrb.mxu3 %v4583_v12  ;;  %2701 = vmatpush.msra.mxu2 %v4560_v9  ;;  %v4546_v12 = vld [vmem:[%s8869_s5 + $0x688] sm:$0xff]  ;;  %v4666_v9 = vld [vmem:[%s8869_s5 + $0xa00] sm:$0xff] }
 0x2ec   : > { %2739 = vmatpush.msrb.mxu1 %v4585_v53  ;;  %2890 = vmatpush.msrb.mxu0 %v4637_v42  ;;  %v4672_v53 = vld [vmem:[%s8869_s5 + $0xa30] sm:$0xff] }
 0x2ed   : > { %2648 = vmatpush.msrb.mxu3 %v4580_v1  ;;  %2702 = vmatpush.msra.mxu2 %v4557_v16  ;;  %v4612_v1 = vld [vmem:[%s8869_s5 + $0x898] sm:$0xf]  ;;  %v4663_v16 = vld [vmem:[%s8869_s5 + $0x9e8] sm:$0xff] }
 0x2ee   : > { %2740 = vmatpush.msrb.mxu1 %v4582_v8  ;;  %2891 = vmatpush.msrb.mxu0 %v4634_v0  ;;  %v4609_v8 = vld [vmem:[%s8869_s5 + $0x880] sm:$0xff]  ;;  %v4689_v0 = vld [vmem:[%s8869_s5 + $0xab8] sm:$0xf] }
 0x2ef   : > { %2649 = vmatpush.msrb.mxu3 %v4577_v2  ;;  %2703 = vmatpush.msra.mxu2 %v4554_v28  ;;  %v4660_v2 = vld [vmem:[%s8869_s5 + $0x9d0] sm:$0xff]  ;;  %v4686_v28 = vld [vmem:[%s8869_s5 + $0xaa0] sm:$0xff] }
 0x2f0   : > { %2741 = vmatpush.msrb.mxu1 %v4579_v40  ;;  %2892 = vmatpush.msrb.mxu0 %v4631_v41  ;;  %v4657_v41 = vld [vmem:[%s8869_s5 + $0x9b8] sm:$0xff] }
 0x2f1   : > { %2650 = vmatpush.msrb.mxu3 %v4574_v48  ;;  %2704 = vmatpush.msra.mxu2 %v4551_v50  ;;  %v4603_v48 = vld [vmem:[%s8869_s5 + $0x850] sm:$0xff]  ;;  %v4683_v50 = vld [vmem:[%s8869_s5 + $0xa88] sm:$0xff] }
 0x2f2   : > { %2742 = vmatpush.msrb.mxu1 %v4576_v5  ;;  %2893 = vmatpush.msrb.mxu0 %v4628_v52  ;;  %v4654_v52 = vld [vmem:[%s8869_s5 + $0x9a0] sm:$0xff] }
 0x2f3   : > { %4540 = vmatmul.msk.f32.gmra.mxu3 %vm2016_vm11, %v7069_v35  ;;  %4615 = vmatmul.msk.f32.gmra.mxu1 %vm2016_vm11, %v7315_v39  ;;  %v4622_v35 = vld [vmem:[%s8869_s5 + $0x8a0] sm:$0xff] }
 0x2f4   : > { %2651 = vmatpush.msrb.mxu3 %v4571_v30  ;;  %2705 = vmatpush.msra.mxu2 %v4548_v3  ;;  %v4600_v30 = vld [vmem:[%s8869_s5 + $0x838] sm:$0xff]  ;;  %v4680_v3 = vld [vmem:[%s8869_s5 + $0xa70] sm:$0xff] }
 0x2f5   : > { %2743 = vmatpush.msrb.mxu1 %v4573_v56  ;;  %2894 = vmatpush.msrb.mxu0 %v4625_v33  ;;  %v4651_v56 = vld [vmem:[%s8869_s5 + $0x988] sm:$0xff]  ;;  %v4597_v33 = vld [vmem:[%s8869_s5 + $0x820] sm:$0xff] }
 0x2f6   : > { %2652 = vmatpush.msrb.mxu3 %v4568_v63  ;;  %2706 = vmatpush.msra.mxu2 %v4545_v20  ;;  %v4677_v63 = vld [vmem:[%s8869_s5 + $0xa58] sm:$0xff]  ;;  %v4648_v20 = vld [vmem:[%s8869_s5 + $0x970] sm:$0xff] }
 0x2f7   : > { %2744 = vmatpush.msrb.mxu1 %v4570_v10  ;;  %2895 = vmatpush.msrb.mxu0 %v4622_v35  ;;  %v4594_v10 = vld [vmem:[%s8869_s5 + $0x808] sm:$0xff]  ;;  %v4668_v35 = vld [vmem:[%s8869_s5 + $0xa10] sm:$0xff] }
 0x2f8   : > { %2707 = vmatmul.f32.vlgmr.msra.gmra.mxu2 %v6897_v43  ;;  %2896 = vmatmul.f32.vlgmr.msrb.gmra.mxu0 %v7534_v58 }
 0x2f9   : > { %4691 = vmatpush.msk.msrb.mxu2 %vm502_vm0, %v4688_v4  ;;  %2653 = vmatpush.msrb.mxu3 %v4565_v49  ;;  %v4645_v49 = vld [vmem:[%s8869_s5 + $0x958] sm:$0xff] }
 0x2fa   : > { %2745 = vmatpush.msrb.mxu1 %v4567_v31  ;;  %4697 = vmatpush.msk.msra.mxu0 %vm502_vm0, %v4690_v59 }
 0x2fb   : > { %2913 = vmatpush.msrb.mxu2 %v4685_v60  ;;  %2654 = vmatpush.msrb.mxu3 %v4562_v15  ;;  %v4665_v60 = vld [vmem:[%s8869_s5 + $0x9f8] sm:$0xff]  ;;  %v4671_v15 = vld [vmem:[%s8869_s5 + $0xa28] sm:$0xff] }
 0x2fc   : > { %2746 = vmatpush.msrb.mxu1 %v4564_v22  ;;  %3005 = vmatpush.msra.mxu0 %v4687_v37  ;;  %v4642_v22 = vld [vmem:[%s8869_s5 + $0x940] sm:$0xff] }
 0x2fd   : > { %2914 = vmatpush.msrb.mxu2 %v4682_v29  ;;  %2655 = vmatpush.msrb.mxu3 %v4559_v46  ;;  %v4662_v29 = vld [vmem:[%s8869_s5 + $0x9e0] sm:$0xff]  ;;  %v4639_v46 = vld [vmem:[%s8869_s5 + $0x928] sm:$0xff] }
 0x2fe   : > { %2747 = vmatpush.msrb.mxu1 %v4561_v14  ;;  %3006 = vmatpush.msra.mxu0 %v4684_v44  ;;  %v4659_v14 = vld [vmem:[%s8869_s5 + $0x9c8] sm:$0xff] }
 0x2ff   : > { %2915 = vmatpush.msrb.mxu2 %v4679_v34  ;;  %2656 = vmatpush.msrb.mxu3 %v4556_v7  ;;  %v4656_v34 = vld [vmem:[%s8869_s5 + $0x9b0] sm:$0xff] }
 0x300   : > { %2748 = vmatpush.msrb.mxu1 %v4558_v18  ;;  %2710 = vmatmul.f32.gmra.mxu2 %v6883_v47  ;;  %v4653_v18 = vld [vmem:[%s8869_s5 + $0x998] sm:$0xff] }
 0x301   : > { %2899 = vmatmul.f32.gmra.mxu0 %v7507_v17  ;;  %2916 = vmatpush.msrb.mxu2 %v4676_v57 }
 0x302   : > { %2657 = vmatpush.msrb.mxu3 %v4553_v26  ;;  %2749 = vmatpush.msrb.mxu1 %v4555_v54  ;;  %v4630_v26 = vld [vmem:[%s8869_s5 + $0x8e0] sm:$0xff] }
 0x303   : > { %3007 = vmatpush.msra.mxu0 %v4681_v24  ;;  %2917 = vmatpush.msrb.mxu2 %v4673_v45  ;;  %v4650_v24 = vld [vmem:[%s8869_s5 + $0x980] sm:$0xff] }
 0x304   : > { %2658 = vmatpush.msrb.mxu3 %v4550_v36  ;;  %2750 = vmatpush.msrb.mxu1 %v4552_v11  ;;  %v4627_v36 = vld [vmem:[%s8869_s5 + $0x8c8] sm:$0xff] }
 0x305   : > { %3008 = vmatpush.msra.mxu0 %v4678_v23  ;;  %2918 = vmatpush.msrb.mxu2 %v4670_v6  ;;  %v4647_v11 = vld [vmem:[%s8869_s5 + $0x968] sm:$0xff]  ;;  %v4644_v23 = vld [vmem:[%s8869_s5 + $0x950] sm:$0xff] }
 0x306   : > { %2659 = vmatpush.msrb.mxu3 %v4547_v55  ;;  %2751 = vmatpush.msrb.mxu1 %v4549_v21  ;;  %v2093_v42 = vpop.f32.mrf.mxu0  ;;  %v4638_v55 = vld [vmem:[%s8869_s5 + $0x920] sm:$0xff] }
 0x307   : > { %2972 = vmatpush.msra.mxu2 %v4669_v27  ;;  %3009 = vmatpush.msra.mxu0 %v4675_v61  ;;  %v4635_v27 = vld [vmem:[%s8869_s5 + $0x908] sm:$0xff]  ;;  %v4632_v61 = vld [vmem:[%s8869_s5 + $0x8f0] sm:$0xff] }
 0x308   : > { %2660 = vmatpush.msrb.mxu3 %v4544_v25  ;;  %2752 = vmatpush.msrb.mxu1 %v4546_v12  ;;  %v4629_v25 = vld [vmem:[%s8869_s5 + $0x8d8] sm:$0xff] }
 0x309   : > { %2973 = vmatpush.msra.mxu2 %v4666_v9  ;;  %3010 = vmatpush.msra.mxu0 %v4672_v53  ;;  %v4626_v53 = vld [vmem:[%s8869_s5 + $0x8c0] sm:$0xff] }
 0x30a   : > { %2661 = vmatmul.f32.vlgmr.msrb.gmra.mxu3 %v6897_v43  ;;  %2753 = vmatmul.f32.vlgmr.msrb.gmra.mxu1 %v6897_v43  ;;  %v4606_v43 = vld [vmem:[%s8869_s5 + $0x868] sm:$0xff] }
 0x30b   : > { %4619 = vmatpush.msk.msra.mxu3 %vm502_vm0, %v4612_v1  ;;  %4692 = vmatmul.msk.f32.vlgmr.msrb.gmra.mxu2 %vm2016_vm11, %v6965_v62 }
 0x30c   : > { %4698 = vmatmul.msk.f32.vlgmr.msra.gmra.mxu0 %vm2016_vm11, %v6965_v62  ;;  %2974 = vmatpush.msra.mxu2 %v4663_v16  ;;  %v7660_v40 = vpop.f32.mrf.mxu2 }
 0x30d   : > { %2770 = vmatpush.msra.mxu3 %v4609_v8  ;;  %4694 = vmatpush.msk.msra.mxu1 %vm502_vm0, %v4689_v0  ;;  %vm3628_vm0 = vcmask 261120  }
 0x30e   : > { %2975 = vmatpush.msra.mxu2 %v4660_v2  ;;  %v2096_v5 = vpop.f32.mrf.mxu0 }
 0x30f   : > { %2771 = vmatpush.msra.mxu3 %v4606_v43  ;;  %2959 = vmatpush.msra.mxu1 %v4686_v28  ;;  %v3068_v28 = vld [vmem:[%s8871_s7 + $0xf0] sm:$0xff] }
 0x310   : > { %2976 = vmatpush.msra.mxu2 %v4657_v41  ;;  %v3066_v41 = vld [vmem:[%s8871_s7 + $0xe0] sm:$0xff] }
 0x311   : > { %2772 = vmatpush.msra.mxu3 %v4603_v48  ;;  %2960 = vmatpush.msra.mxu1 %v4683_v50 }
 0x312   : > { %2977 = vmatpush.msra.mxu2 %v4654_v52  ;;  %2664 = vmatmul.f32.gmra.mxu3 %v6883_v47  ;;  %v3062_v52 = vld [vmem:[%s8871_s7 + $0xc0] sm:$0xff] }
 0x313   : > { %2756 = vmatmul.f32.gmra.mxu1 %v6883_v47  ;;  %2773 = vmatpush.msra.mxu3 %v4600_v30  ;;  %v3067_v30 = vld [vmem:[%s8871_s7 + $0xe8] sm:$0xff] }
 0x314   : > { %4693 = vmatmul.msk.f32.gmra.mxu2 %vm2016_vm11, %v6949_v51  ;;  %4699 = vmatmul.msk.f32.gmra.mxu0 %vm2016_vm11, %v6949_v51  ;;  %v7699_v47 = vpop.f32.mrf.mxu2 }
 0x315   : > { %2961 = vmatpush.msra.mxu1 %v4680_v3  ;;  %2978 = vmatpush.msra.mxu2 %v4651_v56  ;;  %v3060_v56 = vld [vmem:[%s8871_s7 + $0xb0] sm:$0xff] }
 0x316   : > { %2774 = vmatpush.msra.mxu3 %v4597_v33  ;;  %v2116_v4 = vpop.f32.mrf.mxu1  ;;  %v3124_v33 = vld [vmem:[%s8871_s7 + $0x2b0] sm:$0xff] }
 0x317   : > { %2962 = vmatpush.msra.mxu1 %v4677_v63  ;;  %2979 = vmatpush.msra.mxu2 %v4648_v20  ;;  %v2117_v31 = vadd.f32 %v2116_v4, %v2093_v42  ;;  %v2244_v59 = vpop.f32.mrf.mxu0  ;;  %v4623_v42 = vld [vmem:[%s8869_s5 + $0x8a8] sm:$0xff]  ;;  %v3065_v63 = vld [vmem:[%s8871_s7 + $0xd8] sm:$0xff] }
 0x318   : > { %2775 = vmatpush.msra.mxu3 %v4594_v10  ;;  %3183 = vmatpush.msrb.mxu0 %v3124_v33  ;;  %v3063_v4 = vld [vmem:[%s8871_s7 + $0xc8] sm:$0xff]  ;;  %v4734_v33 = vld [vmem:[%s8871_s7 + $0x3b0] sm:$0xff] }
 0x319   : > { %2963 = vmatpush.msra.mxu1 %v4674_v13  ;;  %v2245_v37 = vadd.f32 %v2244_v59, %v2117_v31  ;;  %2980 = vmatpush.msra.mxu2 %v4645_v49  ;;  %v3122_v13 = vld [vmem:[%s8871_s7 + $0x2a0] sm:$0xff]  ;;  %v3056_v31 = vld [vmem:[%s8871_s7 + $0x90] sm:$0xff] }
 0x31a   : > { %2926 = vmatpush.msrb.mxu3 %v4668_v35  ;;  %v3058_v35 = vld [vmem:[%s8871_s7 + $0xa0] sm:$0xff]  ;;  %3184 = vmatpush.msrb.mxu0 %v3122_v13  ;;  %v3120_v59 = vld [vmem:[%s8871_s7 + $0x290] sm:$0xff]  ;;  %v3099_v13 = vld [vmem:[%s8871_s7 + $0x1e8] sm:$0xff] }
 0x31b   : > { %4620 = vmatmul.msk.f32.vlgmr.msra.gmra.mxu3 %vm2016_vm11, %v7338_v32  ;;  %2964 = vmatpush.msra.mxu1 %v4671_v15  ;;  %v4636_v32 = vld [vmem:[%s8869_s5 + $0x910] sm:$0xff]  ;;  %v3054_v15 = vld [vmem:[%s8871_s7 + $0x80] sm:$0xff] }
 0x31c   : > { %2927 = vmatpush.msrb.mxu3 %v4665_v60  ;;  %2981 = vmatpush.msra.mxu2 %v4642_v22  ;;  %v7780_v21 = vpop.f32.mrf.mxu3  ;;  %v3061_v60 = vld [vmem:[%s8871_s7 + $0xb8] sm:$0xff]  ;;  %v3118_v22 = vld [vmem:[%s8871_s7 + $0x280] sm:$0xff] }
 0x31d   : > { %4695 = vmatmul.msk.f32.vlgmr.msra.gmra.mxu1 %vm2016_vm11, %v6965_v62  ;;  %v7738_v44 = vpop.f32.mrf.mxu2  ;;  %v4633_v62 = vld [vmem:[%s8869_s5 + $0x8f8] sm:$0xff]  ;;  %3185 = vmatpush.msrb.mxu0 %v3120_v59  ;;  %v3098_v59 = vld [vmem:[%s8871_s7 + $0x1e0] sm:$0xff] }
 0x31e   : > { %2928 = vmatpush.msrb.mxu3 %v4662_v29  ;;  %2982 = vmatpush.msra.mxu2 %v4639_v46  ;;  %v3052_v29 = vld [vmem:[%s8871_s7 + $0x70] sm:$0xff] }
 0x31f   : > { %v2119_v7 = vpop.f32.mrf.mxu1  ;;  %3133 = vmatpush.msrb.mxu1 %v3068_v28  ;;  %v3116_v46 = vld [vmem:[%s8871_s7 + $0x270] sm:$0xff]  ;;  %3186 = vmatpush.msrb.mxu0 %v3118_v22 }
 0x320   : > { %2929 = vmatpush.msrb.mxu3 %v4659_v14  ;;  %2983 = vmatpush.msra.mxu2 %v4636_v32  ;;  %v2120_v57 = vadd.f32 %v2119_v7, %v2096_v5  ;;  %v2247_v54 = vpop.f32.mrf.mxu0  ;;  %v3069_v5 = vld [vmem:[%s8871_s7 + $0xf8] sm:$0xff]  ;;  %v3114_v7 = vld [vmem:[%s8871_s7 + $0x260] sm:$0xff]  ;;  %v3104_v28 = vld [vmem:[%s8871_s7 + $0x210] sm:$0xff] }
 0x321   : > { %3134 = vmatpush.msrb.mxu1 %v3066_v41  ;;  %v3057_v32 = vld [vmem:[%s8871_s7 + $0x98] sm:$0xff]  ;;  %3187 = vmatpush.msrb.mxu0 %v3116_v46  ;;  %v4730_v22 = vld [vmem:[%s8871_s7 + $0x390] sm:$0xff]  ;;  %v3095_v46 = vld [vmem:[%s8871_s7 + $0x1c8] sm:$0xff] }
 0x322   : > { %2930 = vmatpush.msrb.mxu3 %v4656_v34  ;;  %2984 = vmatpush.msra.mxu2 %v4633_v62  ;;  %v2248_v45 = vadd.f32 %v2247_v54, %v2120_v57  ;;  %v3050_v62 = vld [vmem:[%s8871_s7 + $0x60] sm:$0xff]  ;;  %v3048_v54 = vld [vmem:[%s8871_s7 + $0x50] sm:$0xff]  ;;  %v3045_v41 = vld [vmem:[%s8871_s7 + $0x38] sm:$0xff] }
 0x323   : > { %4621 = vmatmul.msk.f32.gmra.mxu3 %vm2016_vm11, %v7315_v39  ;;  %v4624_v39 = vld [vmem:[%s8869_s5 + $0x8b0] sm:$0xff]  ;;  %3188 = vmatpush.msrb.mxu0 %v3114_v7 }
 0x324   : > { %2931 = vmatpush.msrb.mxu3 %v4653_v18  ;;  %2985 = vmatpush.msra.mxu2 %v4630_v26  ;;  %v3055_v18 = vld [vmem:[%s8871_s7 + $0x88] sm:$0xff] }
 0x325   : > { %4696 = vmatmul.msk.f32.gmra.mxu1 %vm2016_vm11, %v6949_v51  ;;  %v4641_v51 = vld [vmem:[%s8869_s5 + $0x938] sm:$0xff]  ;;  %v7800_v1 = vpop.f32.mrf.mxu3 }
 0x326   : > { %2932 = vmatpush.msrb.mxu3 %v4650_v24  ;;  %2986 = vmatpush.msra.mxu2 %v4627_v36  ;;  %v7771_v6 = vpop.f32.mrf.mxu2  ;;  %v3112_v24 = vld [vmem:[%s8871_s7 + $0x250] sm:$0xff]  ;;  %v3046_v36 = vld [vmem:[%s8871_s7 + $0x40] sm:$0xff] }
 0x327   : > { %3189 = vmatpush.msrb.mxu0 %v3112_v24  ;;  %v4726_v24 = vld [vmem:[%s8871_s7 + $0x370] sm:$0xff] }
 0x328   : > { %2933 = vmatpush.msrb.mxu3 %v4647_v11  ;;  %2987 = vmatpush.msra.mxu2 %v4624_v39  ;;  %v3110_v11 = vld [vmem:[%s8871_s7 + $0x240] sm:$0xff]  ;;  %v3051_v39 = vld [vmem:[%s8871_s7 + $0x68] sm:$0xff] }
 0x329   : > { %2988 = vmatmul.f32.vlgmr.msra.gmra.mxu2 %v7534_v58  ;;  %v7810_v43 = vpop.f32.mrf.mxu1  ;;  %3190 = vmatpush.msrb.mxu0 %v3110_v11  ;;  %v3091_v11 = vld [vmem:[%s8871_s7 + $0x1a8] sm:$0xff] }
 0x32a   : > { %2934 = vmatpush.msrb.mxu3 %v4644_v23  ;;  %3202 = vmatpush.msrb.mxu2 %v3069_v5  ;;  %v3044_v23 = vld [vmem:[%s8871_s7 + $0x30] sm:$0xff]  ;;  %v3038_v5 = vld [vmem:[%s8871_s7] sm:$0xff] }
 0x32c   : > { %2935 = vmatpush.msrb.mxu3 %v4641_v51  ;;  %3203 = vmatpush.msrb.mxu2 %v3067_v30  ;;  %v3108_v51 = vld [vmem:[%s8871_s7 + $0x230] sm:$0xff]  ;;  %v3043_v30 = vld [vmem:[%s8871_s7 + $0x28] sm:$0xff] }
 0x32d   : > { %3191 = vmatpush.msrb.mxu0 %v3108_v51  ;;  %v3090_v51 = vld [vmem:[%s8871_s7 + $0x1a0] sm:$0xff] }
 0x32e   : > { %2936 = vmatpush.msrb.mxu3 %v4638_v55  ;;  %3204 = vmatpush.msrb.mxu2 %v3065_v63  ;;  %v3049_v55 = vld [vmem:[%s8871_s7 + $0x58] sm:$0xff]  ;;  %v3100_v63 = vld [vmem:[%s8871_s7 + $0x1f0] sm:$0xff] }
 0x32f   : > { %v7805_v0 = vpop.f32.mrf.mxu3 }
 0x330   : > { %2937 = vmatpush.msrb.mxu3 %v4635_v27  ;;  %v2267_v12 = vpop.f32.mrf.mxu2  ;;  %3205 = vmatpush.msrb.mxu2 %v3063_v4  ;;  %v4732_v4 = vld [vmem:[%s8871_s7 + $0x3a0] sm:$0xff] }
 0x331   : > { %2991 = vmatmul.f32.gmra.mxu2 %v7507_v17  ;;  %v7792_v9 = vadd.f32 %v2267_v12, %v2245_v37  ;;  %v3059_v37 = vld [vmem:[%s8871_s7 + $0xa8] sm:$0xff] }
 0x332   : > { %2938 = vmatpush.msrb.mxu3 %v4632_v61  ;;  %3206 = vmatpush.msrb.mxu2 %v3061_v60  ;;  %v3042_v61 = vld [vmem:[%s8871_s7 + $0x20] sm:$0xff]  ;;  %v3047_v12 = vld [vmem:[%s8871_s7 + $0x48] sm:$0xff] }
 0x333   : > { %v7836_v3 = vpop.f32.mrf.mxu1  ;;  %v3039_v60 = vld [vmem:[%s8871_s7 + $0x8] sm:$0xff] }
 0x334   : > { %2939 = vmatpush.msrb.mxu3 %v4629_v25  ;;  %3207 = vmatpush.msrb.mxu2 %v3059_v37  ;;  %v3106_v25 = vld [vmem:[%s8871_s7 + $0x220] sm:$0xff]  ;;  %v3096_v37 = vld [vmem:[%s8871_s7 + $0x1d0] sm:$0xff] }
 0x335   : > { %3192 = vmatpush.msrb.mxu0 %v3106_v25  ;;  %v4762_v25 = vld [vmem:[%s8871_s7 + $0x490] sm:$0xff] }
 0x336   : > { %2940 = vmatpush.msrb.mxu3 %v4626_v53  ;;  %3208 = vmatpush.msrb.mxu2 %v3057_v32  ;;  %v4728_v32 = vld [vmem:[%s8871_s7 + $0x380] sm:$0xff] }
 0x337   : > { %3193 = vmatpush.msrb.mxu0 %v3104_v28  ;;  %v3087_v28 = vld [vmem:[%s8871_s7 + $0x188] sm:$0xff] }
 0x338   : > { %2941 = vmatpush.msrb.mxu3 %v4623_v42  ;;  %3209 = vmatpush.msrb.mxu2 %v3055_v18  ;;  %v3094_v18 = vld [vmem:[%s8871_s7 + $0x1c0] sm:$0xff] }
 0x339   : > { %2942 = vmatmul.f32.vlgmr.msrb.gmra.mxu3 %v7534_v58  ;;  %v7808_v2 = vpop.f32.mrf.mxu3  ;;  %v7818_v58 = vpop.f32.mrf.mxu0 }
 0x33a   : > { %v2270_v16 = vpop.f32.mrf.mxu2  ;;  %3156 = vmatpush.msra.mxu3 %v3100_v63  ;;  %v3084_v63 = vld [vmem:[%s8871_s7 + $0x170] sm:$0xff] }
 0x33b   : > { %v7803_v8 = vadd.f32 %v2270_v16, %v2248_v45  ;;  %v3053_v45 = vld [vmem:[%s8871_s7 + $0x78] sm:$0xff]  ;;  %v3040_v16 = vld [vmem:[%s8871_s7 + $0x10] sm:$0xff] }
 0x33c   : > { %3210 = vmatpush.msrb.mxu2 %v3053_v45  ;;  %3157 = vmatpush.msra.mxu3 %v3098_v59  ;;  %v4766_v45 = vld [vmem:[%s8871_s7 + $0x4b0] sm:$0xff] }
 0x33e   : > { %v7886_v14 = vpop.f32.mrf.mxu1  ;;  %3211 = vmatpush.msrb.mxu2 %v3051_v39  ;;  %3158 = vmatpush.msra.mxu3 %v3096_v37  ;;  %v4724_v39 = vld [vmem:[%s8871_s7 + $0x360] sm:$0xff] }
 0x33f   : > { %v3082_v37 = vld [vmem:[%s8871_s7 + $0x160] sm:$0xff] }
 0x340   : > { %3212 = vmatpush.msrb.mxu2 %v3049_v55  ;;  %3159 = vmatpush.msra.mxu3 %v3094_v18  ;;  %v3089_v55 = vld [vmem:[%s8871_s7 + $0x198] sm:$0xff]  ;;  %v3079_v18 = vld [vmem:[%s8871_s7 + $0x148] sm:$0xff] }
 0x341   : > { %2945 = vmatmul.f32.gmra.mxu3 %v7507_v17  ;;  %v3064_v17 = vld [vmem:[%s8871_s7 + $0xd0] sm:$0xff]  ;;  %v7847_v20 = vpop.f32.mrf.mxu0 }
 0x342   : > { %3135 = vmatpush.msrb.mxu1 %v3064_v17  ;;  %3213 = vmatpush.msrb.mxu2 %v3047_v12 }
 0x343   : > { %v7820_v48 = vpop.f32.mrf.mxu3 }
 0x344   : > { %3136 = vmatpush.msrb.mxu1 %v3062_v52  ;;  %3214 = vmatpush.msrb.mxu2 %v3045_v41  ;;  %v3102_v52 = vld [vmem:[%s8871_s7 + $0x200] sm:$0xff] }
 0x345   : > { %v7822_v50 = vpop.f32.mrf.mxu2  ;;  %3194 = vmatpush.msrb.mxu0 %v3102_v52  ;;  %v4720_v41 = vld [vmem:[%s8871_s7 + $0x340] sm:$0xff] }
 0x346   : > { %3137 = vmatpush.msrb.mxu1 %v3060_v56  ;;  %v3101_v56 = vld [vmem:[%s8871_s7 + $0x1f8] sm:$0xff]  ;;  %3215 = vmatpush.msrb.mxu2 %v3043_v30  ;;  %v3086_v52 = vld [vmem:[%s8871_s7 + $0x180] sm:$0xff] }
 0x347   : > { %3360 = vmatpush.msra.mxu0 %v4734_v33  ;;  %v3085_v30 = vld [vmem:[%s8871_s7 + $0x178] sm:$0xff]  ;;  %v4758_v33 = vld [vmem:[%s8871_s7 + $0x470] sm:$0xff] }
 0x348   : > { %3138 = vmatpush.msrb.mxu1 %v3058_v35  ;;  %v7933_v27 = vpop.f32.mrf.mxu1  ;;  %v3041_v35 = vld [vmem:[%s8871_s7 + $0x18] sm:$0xff] }
 0x349   : > { %v7891_v34 = vpop.f32.mrf.mxu0  ;;  %3216 = vmatpush.msrb.mxu2 %v3041_v35  ;;  %3361 = vmatpush.msra.mxu0 %v4732_v4  ;;  %v4756_v4 = vld [vmem:[%s8871_s7 + $0x460] sm:$0xff] }
 0x34a   : > { %3139 = vmatpush.msrb.mxu1 %v3056_v31 }
 0x34b   : > { %3217 = vmatpush.msrb.mxu2 %v3039_v60  ;;  %3362 = vmatpush.msra.mxu0 %v4730_v22  ;;  %v2071_v22 = vadd.f32 %v7780_v21, %v7660_v40  ;;  %v4714_v40 = vld [vmem:[%s8871_s7 + $0x310] sm:$0xff] }
 0x34c   : > { %3140 = vmatpush.msrb.mxu1 %v3054_v15  ;;  %v3097_v15 = vld [vmem:[%s8871_s7 + $0x1d8] sm:$0xff]  ;;  %v4754_v21 = vld [vmem:[%s8871_s7 + $0x450] sm:$0xff] }
 0x34d   : > { %3363 = vmatpush.msra.mxu0 %v4728_v32  ;;  %3383 = vmatpush.msra.mxu2 %v4766_v45  ;;  %v3081_v32 = vld [vmem:[%s8871_s7 + $0x158] sm:$0xff]  ;;  %v2451_v45 = vadd.f32 %v7818_v58, %v7822_v50  ;;  %v4710_v58 = vld [vmem:[%s8871_s7 + $0x2f0] sm:$0xff] }
 0x34e   : > { %v7849_v10 = vpop.f32.mrf.mxu3  ;;  %3141 = vmatpush.msrb.mxu1 %v3052_v29  ;;  %v4750_v50 = vld [vmem:[%s8871_s7 + $0x430] sm:$0xff] }
 0x34f   : > { %v7860_v49 = vpop.f32.mrf.mxu2  ;;  %3364 = vmatpush.msra.mxu0 %v4726_v24 }
 0x350   : > { %3142 = vmatpush.msrb.mxu1 %v3050_v62 }
 0x351   : > { %v7944_v53 = vpop.f32.mrf.mxu0  ;;  %3365 = vmatpush.msra.mxu0 %v4724_v39  ;;  %v3078_v39 = vld [vmem:[%s8871_s7 + $0x140] sm:$0xff] }
 0x352   : > { %3143 = vmatpush.msrb.mxu1 %v3048_v54  ;;  %v3093_v54 = vld [vmem:[%s8871_s7 + $0x1b8] sm:$0xff] }
 0x353   : > { %v7986_v31 = vpop.f32.mrf.mxu1 }
 0x354   : > { %3144 = vmatpush.msrb.mxu1 %v3046_v36  ;;  %v3092_v36 = vld [vmem:[%s8871_s7 + $0x1b0] sm:$0xff] }
 0x355   : > { %3160 = vmatpush.msra.mxu3 %v3092_v36  ;;  %v4752_v36 = vld [vmem:[%s8871_s7 + $0x440] sm:$0xff] }
 0x356   : > { %3145 = vmatpush.msrb.mxu1 %v3044_v23  ;;  %v4764_v23 = vld [vmem:[%s8871_s7 + $0x4a0] sm:$0xff] }
 0x357   : > { %3384 = vmatpush.msra.mxu2 %v4764_v23  ;;  %3161 = vmatpush.msra.mxu3 %v3090_v51 }
 0x358   : > { %3146 = vmatpush.msrb.mxu1 %v3042_v61  ;;  %v4722_v61 = vld [vmem:[%s8871_s7 + $0x350] sm:$0xff] }
 0x359   : > { %v7902_v57 = vpop.f32.mrf.mxu3  ;;  %v8003_v29 = vpop.f32.mrf.mxu0  ;;  %3385 = vmatpush.msra.mxu2 %v4762_v25  ;;  %3366 = vmatpush.msra.mxu0 %v4722_v61  ;;  %v3076_v61 = vld [vmem:[%s8871_s7 + $0x130] sm:$0xff]  ;;  %v2074_v25 = vadd.f32 %v7800_v1, %v7699_v47  ;;  %v3074_v47 = vld [vmem:[%s8871_s7 + $0x120] sm:$0xff] }
 0x35a   : > { %v7904_v26 = vpop.f32.mrf.mxu2  ;;  %3147 = vmatpush.msrb.mxu1 %v3040_v16  ;;  %v3088_v16 = vld [vmem:[%s8871_s7 + $0x190] sm:$0xff] }
 0x35b   : > { %3162 = vmatpush.msra.mxu3 %v3088_v16  ;;  %3367 = vmatpush.msra.mxu0 %v4720_v41  ;;  %v2202_v1 = vadd.f32 %v7836_v3, %v2074_v25  ;;  %v3072_v3 = vld [vmem:[%s8871_s7 + $0x110] sm:$0xff]  ;;  %v3121_v25 = vld [vmem:[%s8871_s7 + $0x298] sm:$0xff] }
 0x35c   : > { %3148 = vmatpush.msrb.mxu1 %v3038_v5  ;;  %v4760_v5 = vld [vmem:[%s8871_s7 + $0x480] sm:$0xff] }
 0x35d   : > { %v8051_v12 = vpop.f32.mrf.mxu1  ;;  %3386 = vmatpush.msra.mxu2 %v4760_v5  ;;  %3163 = vmatpush.msra.mxu3 %v3086_v52  ;;  %v3075_v5 = vld [vmem:[%s8871_s7 + $0x128] sm:$0xff]  ;;  %v4708_v52 = vld [vmem:[%s8871_s7 + $0x2e0] sm:$0xff] }
 0x35e   : > { %3225 = vmatpush.msra.mxu1 %v3101_v56  ;;  %v4718_v56 = vld [vmem:[%s8871_s7 + $0x330] sm:$0xff] }
 0x35f   : > { %3387 = vmatpush.msra.mxu2 %v4758_v33  ;;  %3368 = vmatpush.msra.mxu0 %v4718_v56 }
 0x360   : > { %3226 = vmatpush.msra.mxu1 %v3099_v13  ;;  %v3083_v13 = vld [vmem:[%s8871_s7 + $0x168] sm:$0xff]  ;;  %3164 = vmatpush.msra.mxu3 %v3084_v63 }
 0x361   : > { %v8088_v59 = vpop.f32.mrf.mxu0  ;;  %3388 = vmatpush.msra.mxu2 %v4756_v4  ;;  %v4706_v4 = vld [vmem:[%s8871_s7 + $0x2d0] sm:$0xff] }
 0x362   : > { %3227 = vmatpush.msra.mxu1 %v3097_v15  ;;  %v4716_v15 = vld [vmem:[%s8871_s7 + $0x320] sm:$0xff]  ;;  %3165 = vmatpush.msra.mxu3 %v3082_v37  ;;  %v2454_v37 = vadd.f32 %v7847_v20, %v7860_v49  ;;  %v4735_v49 = vld [vmem:[%s8871_s7 + $0x3b8] sm:$0xff] }
 0x363   : > { %v7946_v42 = vpop.f32.mrf.mxu3  ;;  %3369 = vmatpush.msra.mxu0 %v4716_v15  ;;  %3389 = vmatpush.msra.mxu2 %v4754_v21  ;;  %v4746_v15 = vld [vmem:[%s8871_s7 + $0x410] sm:$0xff]  ;;  %v4744_v21 = vld [vmem:[%s8871_s7 + $0x400] sm:$0xff] }
 0x364   : > { %v7957_v17 = vpop.f32.mrf.mxu2  ;;  %3228 = vmatpush.msra.mxu1 %v3095_v46  ;;  %v2199_v46 = vadd.f32 %v7810_v43, %v2071_v22  ;;  %v3080_v43 = vld [vmem:[%s8871_s7 + $0x150] sm:$0xff]  ;;  %v2225_v22 = vadd.f32 %v7849_v10, %v2202_v1  ;;  %v3070_v20 = vld [vmem:[%s8871_s7 + $0x100] sm:$0xff]  ;;  %v4727_v1 = vld [vmem:[%s8871_s7 + $0x378] sm:$0xff] }
 0x365   : > { %3370 = vmatpush.msra.mxu0 %v4714_v40  ;;  %3166 = vmatpush.msra.mxu3 %v3080_v43  ;;  %v4704_v40 = vld [vmem:[%s8871_s7 + $0x2c0] sm:$0xff]  ;;  %v3125_v43 = vld [vmem:[%s8871_s7 + $0x2b8] sm:$0xff] }
 0x366   : > { %3229 = vmatpush.msra.mxu1 %v3093_v54  ;;  %v4712_v54 = vld [vmem:[%s8871_s7 + $0x300] sm:$0xff]  ;;  %v2222_v24 = vadd.f32 %v7820_v48, %v2199_v46  ;;  %3390 = vmatpush.msra.mxu2 %v4752_v36  ;;  %v3077_v48 = vld [vmem:[%s8871_s7 + $0x138] sm:$0xff] }
 0x367   : > { %3371 = vmatpush.msra.mxu0 %v4712_v54  ;;  %3167 = vmatpush.msra.mxu3 %v3078_v39  ;;  %v3123_v39 = vld [vmem:[%s8871_s7 + $0x2a8] sm:$0xff] }
 0x368   : > { %3230 = vmatpush.msra.mxu1 %v3091_v11  ;;  %v2685_v11 = vpop.f32.mrf.mxu1  ;;  %3391 = vmatpush.msra.mxu2 %v4750_v50  ;;  %v2548_v16 = vadd.f32 %v2451_v45, %v2222_v24  ;;  %v2551_v45 = vadd.f32 %v2454_v37, %v2225_v22  ;;  %v2163_v22 = vadd.f32 %v7805_v0, %v7738_v44  ;;  %v4785_v37 = vld [vmem:[%s8871_s7 + $0x548] sm:$0xff]  ;;  %v4719_v0 = vld [vmem:[%s8871_s7 + $0x338] sm:$0xff] }
 0x369   : > { %3372 = vmatpush.msra.mxu0 %v4710_v58  ;;  %3168 = vmatpush.msra.mxu3 %v3076_v61  ;;  %v4731_v61 = vld [vmem:[%s8871_s7 + $0x398] sm:$0xff] }
 0x36a   : > { %3231 = vmatpush.msra.mxu1 %v3089_v55  ;;  %v8140_v55 = vld [vmem:[%s8870_s6] sm:$0x7] }
 0x36b   : > { %v3026_v63 = vperm.slane %v8140_v55, 0  ;;  %3373 = vmatpush.msra.mxu0 %v4708_v52  ;;  %3169 = vmatpush.msra.mxu3 %v3074_v47  ;;  %v4736_v52 = vld [vmem:[%s8871_s7 + $0x3c0] sm:$0xff] }
 0x36c   : > { %3232 = vmatpush.msra.mxu1 %v3087_v28 }
 0x36d   : > { %v8011_v62 = vpop.f32.mrf.mxu3  ;;  %3374 = vmatpush.msra.mxu0 %v4706_v4  ;;  %3170 = vmatpush.msra.mxu3 %v3072_v3  ;;  %v4787_v4 = vld [vmem:[%s8871_s7 + $0x558] sm:$0xff] }
 0x36e   : > { %3233 = vmatpush.msra.mxu1 %v3085_v30  ;;  %v4748_v30 = vld [vmem:[%s8871_s7 + $0x420] sm:$0xff]  ;;  %v3113_v3 = vld [vmem:[%s8871_s7 + $0x258] sm:$0xff] }
 0x36f   : > { %3392 = vmatpush.msra.mxu2 %v4748_v30  ;;  %3375 = vmatpush.msra.mxu0 %v4704_v40  ;;  %v4791_v30 = vld [vmem:[%s8871_s7 + $0x578] sm:$0xff]  ;;  %v2291_v40 = vadd.f32 %v7902_v57, %v2163_v22  ;;  %v4717_v57 = vld [vmem:[%s8871_s7 + $0x328] sm:$0xff] }
 0x370   : > { %3234 = vmatpush.msra.mxu1 %v3083_v13  ;;  %v3073_v13 = vld [vmem:[%s8871_s7 + $0x118] sm:$0xff]  ;;  %3171 = vmatpush.msra.mxu3 %v3070_v20  ;;  %v2688_v54 = vpop.f32.mrf.mxu1 }
 0x371   : > { %3393 = vmatpush.msra.mxu2 %v4746_v15  ;;  %v4723_v15 = vld [vmem:[%s8871_s7 + $0x358] sm:$0xff] }
 0x372   : > { %3235 = vmatpush.msra.mxu1 %v3081_v32  ;;  %v3071_v32 = vld [vmem:[%s8871_s7 + $0x108] sm:$0xff]  ;;  %3252 = vmatpush.msrb.mxu3 %v3125_v43 }
 0x373   : > { %3394 = vmatpush.msra.mxu2 %v4744_v21  ;;  %v4783_v21 = vld [vmem:[%s8871_s7 + $0x538] sm:$0xff]  ;;  %v4781_v43 = vld [vmem:[%s8871_s7 + $0x528] sm:$0xff] }
 0x374   : > { %3236 = vmatpush.msra.mxu1 %v3079_v18  ;;  %v4742_v18 = vld [vmem:[%s8871_s7 + $0x3f0] sm:$0xff]  ;;  %3253 = vmatpush.msrb.mxu3 %v3123_v39  ;;  %v3105_v39 = vld [vmem:[%s8871_s7 + $0x218] sm:$0xff] }
 0x375   : > { %v2897_v23 = vpop.f32.mrf.mxu0  ;;  %3395 = vmatpush.msra.mxu2 %v4742_v18  ;;  %v2314_v18 = vadd.f32 %v7886_v14, %v2291_v40  ;;  %v2543_v14 = vadd.f32 %v7904_v26, %v7891_v34  ;;  %v3103_v26 = vld [vmem:[%s8871_s7 + $0x208] sm:$0xff]  ;;  %v2497_v40 = vadd.f32 %v8011_v62, %v7986_v31 }
 0x376   : > { %v8090_v60 = vpop.f32.mrf.mxu3  ;;  %3237 = vmatpush.msra.mxu1 %v3077_v48  ;;  %v4740_v48 = vld [vmem:[%s8871_s7 + $0x3e0] sm:$0xff]  ;;  %3254 = vmatpush.msrb.mxu3 %v3121_v25  ;;  %v3028_v25 = vperm.slane %v8140_v55, 2  ;;  %v4757_v62 = vld [vmem:[%s8871_s7 + $0x468] sm:$0xff] }
 0x377   : > { %3396 = vmatpush.msra.mxu2 %v4740_v48 }
 0x378   : > { %3238 = vmatpush.msra.mxu1 %v3075_v5  ;;  %v3119_v5 = vld [vmem:[%s8871_s7 + $0x288] sm:$0xff] }
 0x379   : > { %3255 = vmatpush.msrb.mxu3 %v3119_v5 }
 0x37a   : > { %3239 = vmatpush.msra.mxu1 %v3073_v13  ;;  %v3115_v13 = vld [vmem:[%s8871_s7 + $0x268] sm:$0xff] }
 0x37b   : > { %v8013_v7 = vpop.f32.mrf.mxu2 }
 0x37c   : > { %3240 = vmatpush.msra.mxu1 %v3071_v32  ;;  %v3111_v32 = vld [vmem:[%s8871_s7 + $0x248] sm:$0xff] }
 0x37e   : > { %v2900_v58 = vpop.f32.mrf.mxu0 }
 0x383   : > { %v8080_v35 = vpop.f32.mrf.mxu2 }
 0x387   : > { %v2754_v20 = vpop.f32.mrf.mxu1 }
 0x389   : > { %v3012_v48 = vpop.f32.mrf.mxu0 }
 0x38d   : > { %v2662_v51 = vpop.f32.mrf.mxu3 }
 0x38e   : > { %v2686_v28 = vadd.f32 %v2685_v11, %v2662_v51  ;;  %v2920_v41 = vpop.f32.mrf.mxu2  ;;  %v4733_v11 = vld [vmem:[%s8871_s7 + $0x3a8] sm:$0xff] }
 0x38f   : > { %v2921_v33 = vadd.f32 %v2920_v41, %v2897_v23  ;;  %v4729_v41 = vld [vmem:[%s8871_s7 + $0x388] sm:$0xff] }
 0x390   : > { %v2783_v56 = vadd.f32 %v2686_v28, %v2548_v16  ;;  %v4738_v16 = vld [vmem:[%s8871_s7 + $0x3d0] sm:$0xff] }
 0x391   : > { %3397 = vmatpush.msra.mxu2 %v4738_v16 }
 0x392   : > { %v3018_v46 = vadd.f32 %v2921_v33, %v2783_v56  ;;  %v3117_v56 = vld [vmem:[%s8871_s7 + $0x278] sm:$0xff]  ;;  %v4789_v33 = vld [vmem:[%s8871_s7 + $0x568] sm:$0xff] }
 0x393   : > { %3398 = vmatpush.msra.mxu2 %v4736_v52  ;;  %3256 = vmatpush.msrb.mxu3 %v3117_v56  ;;  %v2757_v52 = vpop.f32.mrf.mxu1  ;;  %v4771_v56 = vld [vmem:[%s8871_s7 + $0x4d8] sm:$0xff] }
 0x394   : > { %v8188_v10 = vadd.f32 %v3026_v63, %v3018_v46  ;;  %v4721_v46 = vld [vmem:[%s8871_s7 + $0x348] sm:$0xff] }
 0x395   : > { %v2665_v24 = vpop.f32.mrf.mxu3  ;;  %3257 = vmatpush.msrb.mxu3 %v3115_v13 }
 0x396   : > { %v2689_v36 = vadd.f32 %v2688_v54, %v2665_v24  ;;  %3149 = vmatmul.f32.vlgmr.msrb.gmra.mxu1 %v8188_v10  ;;  %3218 = vmatmul.f32.vlgmr.msrb.gmra.mxu2 %v8188_v10  ;;  %v3107_v54 = vld [vmem:[%s8871_s7 + $0x228] sm:$0xff]  ;;  %v4715_v24 = vld [vmem:[%s8871_s7 + $0x318] sm:$0xff] }
 0x397   : > { %v2923_v50 = vpop.f32.mrf.mxu2  ;;  %3429 = vmatpush.msrb.mxu1 %v4735_v49  ;;  %3479 = vmatpush.msrb.mxu2 %v4791_v30  ;;  %v3109_v49 = vld [vmem:[%s8871_s7 + $0x238] sm:$0xff] }
 0x398   : > { %v2786_v23 = vadd.f32 %v2689_v36, %v2551_v45  ;;  %v2924_v51 = vadd.f32 %v2923_v50, %v2900_v58  ;;  %3258 = vmatpush.msrb.mxu3 %v3113_v3  ;;  %v4779_v45 = vld [vmem:[%s8871_s7 + $0x518] sm:$0xff]  ;;  %v2166_v36 = vadd.f32 %v7808_v2, %v7771_v6  ;;  %v4713_v58 = vld [vmem:[%s8871_s7 + $0x308] sm:$0xff]  ;;  %v2550_v2 = vadd.f32 %v2543_v14, %v2314_v18 }
 0x399   : > { %3430 = vmatpush.msrb.mxu1 %v4733_v11  ;;  %3480 = vmatpush.msrb.mxu2 %v4789_v33  ;;  %v4777_v6 = vld [vmem:[%s8871_s7 + $0x508] sm:$0xff]  ;;  %v2546_v33 = vadd.f32 %v7957_v17, %v7944_v53  ;;  %v3015_v17 = vpop.f32.mrf.mxu0  ;;  %v3027_v18 = vperm.slane %v8140_v55, 1  ;;  %v4751_v55 = vld [vmem:[%s8871_s7 + $0x438] sm:$0xff] }
 0x39a   : > { %v3021_v28 = vadd.f32 %v2924_v51, %v2786_v23  ;;  %3259 = vmatpush.msrb.mxu3 %v3111_v32  ;;  %v2294_v34 = vadd.f32 %v7946_v42, %v2166_v36  ;;  %v4711_v23 = vld [vmem:[%s8871_s7 + $0x2f8] sm:$0xff]  ;;  %v4765_v53 = vld [vmem:[%s8871_s7 + $0x4a8] sm:$0xff]  ;;  %v2735_v36 = vadd.f32 %v8088_v59, %v8080_v35 }
 0x39b   : > { %3431 = vmatpush.msrb.mxu1 %v4731_v61  ;;  %3481 = vmatpush.msrb.mxu2 %v4787_v4  ;;  %v4775_v42 = vld [vmem:[%s8871_s7 + $0x4f8] sm:$0xff]  ;;  %v4705_v4 = vld [vmem:[%s8871_s7 + $0x2c8] sm:$0xff] }
 0x39c   : > { %v8231_v47 = vadd.f32 %v3026_v63, %v3021_v28  ;;  %v4725_v63 = vld [vmem:[%s8871_s7 + $0x368] sm:$0xff]  ;;  %3260 = vmatpush.msrb.mxu3 %v3109_v49  ;;  %v2317_v5 = vadd.f32 %v7933_v27, %v2294_v34  ;;  %v4767_v27 = vld [vmem:[%s8871_s7 + $0x4b8] sm:$0xff] }
 0x39d   : > { %3432 = vmatpush.msrb.mxu1 %v4729_v41  ;;  %3482 = vmatpush.msrb.mxu2 %v4785_v37  ;;  %v4709_v28 = vld [vmem:[%s8871_s7 + $0x2e8] sm:$0xff]  ;;  %v4763_v32 = vld [vmem:[%s8871_s7 + $0x498] sm:$0xff] }
 0x39e   : > { %3152 = vmatmul.f32.gmra.mxu1 %v8231_v47  ;;  %3221 = vmatmul.f32.gmra.mxu2 %v8231_v47  ;;  %v2777_v44 = vpop.f32.mrf.mxu3  ;;  %v4773_v41 = vld [vmem:[%s8871_s7 + $0x4e8] sm:$0xff]  ;;  %v2553_v3 = vadd.f32 %v2546_v33, %v2317_v5  ;;  %v4774_v5 = vld [vmem:[%s8871_s7 + $0x4f0] sm:$0xff] }
 0x39f   : > { %3433 = vmatpush.msrb.mxu1 %v4727_v1  ;;  %3483 = vmatpush.msrb.mxu2 %v4783_v21  ;;  %v2778_v11 = vadd.f32 %v2777_v44, %v2754_v20  ;;  %v4707_v1 = vld [vmem:[%s8871_s7 + $0x2d8] sm:$0xff]  ;;  %v2732_v21 = vadd.f32 %v8003_v29, %v8013_v7  ;;  %v2966_v20 = vpop.f32.mrf.mxu1  ;;  %v4749_v35 = vld [vmem:[%s8871_s7 + $0x428] sm:$0xff] }
 0x3a0   : > { %3261 = vmatpush.msrb.mxu3 %v3107_v54  ;;  %v4755_v54 = vld [vmem:[%s8871_s7 + $0x458] sm:$0xff]  ;;  %v4745_v34 = vld [vmem:[%s8871_s7 + $0x408] sm:$0xff] }
 0x3a1   : > { %3434 = vmatpush.msrb.mxu1 %v4725_v63  ;;  %3484 = vmatpush.msrb.mxu2 %v4781_v43  ;;  %v2785_v51 = vadd.f32 %v2778_v11, %v2550_v2  ;;  %v2549_v43 = vadd.f32 %v2497_v40, %v7792_v9  ;;  %v2500_v9 = vadd.f32 %v8090_v60, %v8051_v12  ;;  %v4790_v12 = vld [vmem:[%s8871_s7 + $0x570] sm:$0xff] }
 0x3a2   : > { %3262 = vmatpush.msrb.mxu3 %v3105_v39  ;;  %v4786_v2 = vld [vmem:[%s8871_s7 + $0x550] sm:$0xff] }
 0x3a3   : > { %3435 = vmatpush.msrb.mxu1 %v4723_v15  ;;  %3485 = vmatpush.msrb.mxu2 %v4779_v45  ;;  %v4769_v15 = vld [vmem:[%s8871_s7 + $0x4c8] sm:$0xff]  ;;  %v2784_v29 = vadd.f32 %v2732_v21, %v2549_v43  ;;  %v2552_v11 = vadd.f32 %v2500_v9, %v7803_v8  ;;  %v4788_v8 = vld [vmem:[%s8871_s7 + $0x560] sm:$0xff]  ;;  %v4820_v9 = vld [vmem:[%s8873_s9 + $0xf8] sm:$0xff] }
 0x3a4   : > { %3263 = vmatpush.msrb.mxu3 %v3103_v26  ;;  %v4753_v45 = vld [vmem:[%s8871_s7 + $0x448] sm:$0xff] }
 0x3a5   : > { %3436 = vmatpush.msrb.mxu1 %v4721_v46  ;;  %3486 = vmatpush.msrb.mxu2 %v4777_v6  ;;  %v2787_v59 = vadd.f32 %v2735_v36, %v2552_v11 }
 0x3a6   : > { %v2780_v16 = vpop.f32.mrf.mxu3 }
 0x3a7   : > { %3437 = vmatpush.msrb.mxu1 %v4719_v0  ;;  %3487 = vmatpush.msrb.mxu2 %v4775_v42  ;;  %v2781_v63 = vadd.f32 %v2780_v16, %v2757_v52  ;;  %v4761_v0 = vld [vmem:[%s8871_s7 + $0x488] sm:$0xff]  ;;  %v2969_v60 = vpop.f32.mrf.mxu1  ;;  %v4780_v42 = vld [vmem:[%s8871_s7 + $0x520] sm:$0xff] }
 0x3a8   : > { %v4737_v16 = vld [vmem:[%s8871_s7 + $0x3c8] sm:$0xff]  ;;  %v4772_v52 = vld [vmem:[%s8871_s7 + $0x4e0] sm:$0xff] }
 0x3a9   : > { %3438 = vmatpush.msrb.mxu1 %v4717_v57  ;;  %3488 = vmatpush.msrb.mxu2 %v4773_v41  ;;  %v2788_v37 = vadd.f32 %v2781_v63, %v2553_v3  ;;  %v4759_v57 = vld [vmem:[%s8871_s7 + $0x478] sm:$0xff]  ;;  %v4776_v41 = vld [vmem:[%s8871_s7 + $0x500] sm:$0xff] }
 0x3ab   : > { %3439 = vmatpush.msrb.mxu1 %v4715_v24  ;;  %3489 = vmatpush.msrb.mxu2 %v4771_v56 }
 0x3ac   : > { %v2989_v50 = vpop.f32.mrf.mxu2 }
 0x3ad   : > { %v3013_v61 = vadd.f32 %v3012_v48, %v2989_v50  ;;  %3440 = vmatpush.msrb.mxu1 %v4713_v58  ;;  %3490 = vmatpush.msrb.mxu2 %v4769_v15  ;;  %v4747_v58 = vld [vmem:[%s8871_s7 + $0x418] sm:$0xff] }
 0x3ae   : > { %v4743_v50 = vld [vmem:[%s8871_s7 + $0x3f8] sm:$0xff] }
 0x3af   : > { %v3020_v30 = vadd.f32 %v3013_v61, %v2785_v51  ;;  %3441 = vmatpush.msrb.mxu1 %v4711_v23  ;;  %v4784_v23 = vld [vmem:[%s8871_s7 + $0x540] sm:$0xff]  ;;  %v4741_v51 = vld [vmem:[%s8871_s7 + $0x3e8] sm:$0xff]  ;;  %v4782_v61 = vld [vmem:[%s8871_s7 + $0x530] sm:$0xff] }
 0x3b1   : > { %v8335_v13 = vadd.f32 %v3028_v25, %v3020_v30  ;;  %3442 = vmatpush.msrb.mxu1 %v4709_v28  ;;  %v4778_v28 = vld [vmem:[%s8871_s7 + $0x510] sm:$0xff]  ;;  %v4768_v30 = vld [vmem:[%s8871_s7 + $0x4c0] sm:$0xff] }
 0x3b3   : > { %4700 = vmatmul.msk.f32.vlgmr.msrb.gmra.mxu0 %vm3126_vm12, %v8335_v13  ;;  %3443 = vmatpush.msrb.mxu1 %v4707_v1 }
 0x3b4   : > { %v2992_v22 = vpop.f32.mrf.mxu2  ;;  %3452 = vmatpush.msrb.mxu0 %v4767_v27 }
 0x3b5   : > { %v3016_v46 = vadd.f32 %v3015_v17, %v2992_v22  ;;  %3444 = vmatpush.msrb.mxu1 %v4705_v4 }
 0x3b6   : > { %3453 = vmatpush.msrb.mxu0 %v4765_v53 }
 0x3b7   : > { %v3023_v44 = vadd.f32 %v3016_v46, %v2788_v37 }
 0x3b8   : > { %3454 = vmatpush.msrb.mxu0 %v4763_v32 }
 0x3b9   : > { %v8361_v49 = vadd.f32 %v3028_v25, %v3023_v44  ;;  %v4739_v25 = vld [vmem:[%s8871_s7 + $0x3d8] sm:$0xff] }
 0x3ba   : > { %3455 = vmatpush.msrb.mxu0 %v4761_v0 }
 0x3bb   : > { %4701 = vmatmul.msk.f32.gmra.mxu0 %vm3126_vm12, %v8361_v49 }
 0x3bc   : > { %v2943_v31 = vpop.f32.mrf.mxu3  ;;  %3456 = vmatpush.msrb.mxu0 %v4759_v57  ;;  %v4822_v57 = vld [vmem:[%s8873_s9 + $0x108] sm:$0xff] }
 0x3bd   : > { %v2967_v7 = vadd.f32 %v2966_v20, %v2943_v31  ;;  %v4824_v20 = vld [vmem:[%s8873_s9 + $0x118] sm:$0xff]  ;;  %v4821_v31 = vld [vmem:[%s8873_s9 + $0x100] sm:$0xff] }
 0x3be   : > { %3457 = vmatpush.msrb.mxu0 %v4757_v62  ;;  %v3623_v62 = vld [vmem:[%s8873_s9 + $0x78] sm:$0xff] }
 0x3bf   : > { %v3019_v24 = vadd.f32 %v2967_v7, %v2784_v29  ;;  %v3622_v29 = vld [vmem:[%s8873_s9 + $0x70] sm:$0xff] }
 0x3c0   : > { %3458 = vmatpush.msrb.mxu0 %v4755_v54 }
 0x3c1   : > { %v3033_v14 = vadd.f32 %v3027_v18, %v3019_v24  ;;  %v3621_v24 = vld [vmem:[%s8873_s9 + $0x68] sm:$0xff] }
 0x3c2   : > { %3459 = vmatpush.msrb.mxu0 %v4753_v45 }
 0x3c3   : > { %3172 = vmatmul.f32.vlgmr.msra.gmra.mxu3 %v3033_v14  ;;  %3241 = vmatmul.f32.vlgmr.msra.gmra.mxu1 %v3033_v14 }
 0x3c4   : > { %3376 = vmatmul.f32.vlgmr.msra.gmra.mxu0 %v8188_v10  ;;  %v2946_v39 = vpop.f32.mrf.mxu3  ;;  %3399 = vmatmul.f32.vlgmr.msra.gmra.mxu2 %v3033_v14 }
 0x3c5   : > { %v2970_v48 = vadd.f32 %v2969_v60, %v2946_v39  ;;  %3460 = vmatpush.msrb.mxu0 %v4751_v55  ;;  %3410 = vmatpush.msra.mxu3 %v4790_v12  ;;  %v4819_v60 = vld [vmem:[%s8873_s9 + $0xf0] sm:$0xff]  ;;  %v3620_v39 = vld [vmem:[%s8873_s9 + $0x60] sm:$0xff] }
 0x3c6   : > { %3700 = vmatpush.msra.mxu2 %v4824_v20  ;;  %v3614_v20 = vld [vmem:[%s8873_s9 + $0x30] sm:$0xff] }
 0x3c7   : > { %v3022_v6 = vadd.f32 %v2970_v48, %v2787_v59  ;;  %3461 = vmatpush.msrb.mxu0 %v4749_v35  ;;  %3411 = vmatpush.msra.mxu3 %v4788_v8 }
 0x3c9   : > { %v3036_v26 = vadd.f32 %v3027_v18, %v3022_v6  ;;  %3462 = vmatpush.msrb.mxu0 %v4747_v58  ;;  %3412 = vmatpush.msra.mxu3 %v4786_v2 }
 0x3cb   : > { %3463 = vmatpush.msrb.mxu0 %v4745_v34  ;;  %3175 = vmatmul.f32.gmra.mxu3 %v3036_v26 }
 0x3cc   : > { %3244 = vmatmul.f32.gmra.mxu1 %v3036_v26  ;;  %3379 = vmatmul.f32.gmra.mxu0 %v8231_v47 }
 0x3cd   : > { %3402 = vmatmul.f32.gmra.mxu2 %v3036_v26  ;;  %3464 = vmatpush.msrb.mxu0 %v4743_v50  ;;  %v4818_v50 = vld [vmem:[%s8873_s9 + $0xe8] sm:$0xff] }
 0x3ce   : > { %3413 = vmatpush.msra.mxu3 %v4784_v23  ;;  %v3619_v23 = vld [vmem:[%s8873_s9 + $0x58] sm:$0xff] }
 0x3cf   : > { %3465 = vmatpush.msrb.mxu0 %v4741_v51 }
 0x3d0   : > { %3414 = vmatpush.msra.mxu3 %v4782_v61 }
 0x3d1   : > { %3466 = vmatpush.msrb.mxu0 %v4739_v25 }
 0x3d2   : > { %3415 = vmatpush.msra.mxu3 %v4780_v42  ;;  %v3502_v42 = vld [vmem:[%s8872_s8] sm:$0x1f] }
 0x3d3   : > { %3467 = vmatpush.msrb.mxu0 %v4737_v16  ;;  %4702 = vmatmul.msk.f32.vlgmr.msrb.gmra.mxu3 %vm3126_vm12, %v8335_v13  ;;  %v4800_v16 = vld [vmem:[%s8872_s8 + $0x8] sm:$0x1f] }
 0x3d4   : > { %3445 = vmatmul.f32.vlgmr.msrb.gmra.mxu1 %v8188_v10  ;;  %3468 = vmatmul.f32.vlgmr.msrb.gmra.mxu0 %v3033_v14  ;;  %v4770_v10 = vld [vmem:[%s8871_s7 + $0x4d0] sm:$0xff] }
 0x3d5   : > { %4794 = vmatmul.msk.f32.vlgmr.msrb.gmra.mxu2 %vm3126_vm12, %v8335_v13  ;;  %3416 = vmatpush.msra.mxu3 %v4778_v28  ;;  %v4817_v28 = vld [vmem:[%s8873_s9 + $0xe0] sm:$0xff] }
 0x3d6   : > { %3632 = vmatpush.msra.mxu0 %v3623_v62  ;;  %v4880_v62 = vld [vmem:[%s8873_s9 + $0x2c0] sm:$0xff] }
 0x3d7   : > { %3417 = vmatpush.msra.mxu3 %v4776_v41 }
 0x3d8   : > { %3633 = vmatpush.msra.mxu0 %v3622_v29  ;;  %v4844_v29 = vld [vmem:[%s8873_s9 + $0x1b0] sm:$0xff] }
 0x3d9   : > { %3418 = vmatpush.msra.mxu3 %v4774_v5  ;;  %v3627_v5 = vld [vmem:[%s8873_s9 + $0x98] sm:$0xff] }
 0x3da   : > { %3634 = vmatpush.msra.mxu0 %v3621_v24  ;;  %v3609_v24 = vld [vmem:[%s8873_s9 + $0x8] sm:$0xff] }
 0x3db   : > { %4703 = vmatmul.msk.f32.gmra.mxu3 %vm3126_vm12, %v8361_v49 }
 0x3dc   : > { %3448 = vmatmul.f32.gmra.mxu1 %v8231_v47  ;;  %3471 = vmatmul.f32.gmra.mxu0 %v3036_v26 }
 0x3dd   : > { %4795 = vmatmul.msk.f32.gmra.mxu2 %vm3126_vm12, %v8361_v49  ;;  %3419 = vmatpush.msra.mxu3 %v4772_v52  ;;  %v3618_v52 = vld [vmem:[%s8873_s9 + $0x50] sm:$0xff] }
 0x3de   : > { %3635 = vmatpush.msra.mxu0 %v3620_v39  ;;  %v4839_v39 = vld [vmem:[%s8873_s9 + $0x188] sm:$0xff] }
 0x3df   : > { %3420 = vmatpush.msra.mxu3 %v4770_v10  ;;  %v4816_v10 = vld [vmem:[%s8873_s9 + $0xd8] sm:$0xff] }
 0x3e0   : > { %3636 = vmatpush.msra.mxu0 %v3619_v23  ;;  %v4849_v23 = vld [vmem:[%s8873_s9 + $0x1d8] sm:$0xff] }
 0x3e1   : > { %3421 = vmatpush.msra.mxu3 %v4768_v30 }
 0x3e2   : > { %3637 = vmatpush.msra.mxu0 %v3618_v52  ;;  %v4846_v52 = vld [vmem:[%s8873_s9 + $0x1c0] sm:$0xff] }
 0x3e3   : > { %4792 = vmatmul.msk.f32.vlgmr.msra.gmra.mxu3 %vm3126_vm12, %v8335_v13 }
 0x3eb   : > { %4793 = vmatmul.msk.f32.gmra.mxu3 %vm3126_vm12, %v8361_v49  ;;  %v4823_v49 = vld [vmem:[%s8873_s9 + $0x110] sm:$0xff] }
 0x3ec   : > { %3701 = vmatpush.msra.mxu2 %v4823_v49  ;;  %v3613_v49 = vld [vmem:[%s8873_s9 + $0x28] sm:$0xff] }
 0x3ee   : > { %3702 = vmatpush.msra.mxu2 %v4822_v57  ;;  %v3612_v57 = vld [vmem:[%s8873_s9 + $0x20] sm:$0xff] }
 0x3f0   : > { %3703 = vmatpush.msra.mxu2 %v4821_v31  ;;  %v3611_v31 = vld [vmem:[%s8873_s9 + $0x18] sm:$0xff] }
 0x3f2   : > { %3704 = vmatpush.msra.mxu2 %v4820_v9  ;;  %v4842_v9 = vld [vmem:[%s8873_s9 + $0x1a0] sm:$0xff] }
 0x3f4   : > { %3705 = vmatpush.msra.mxu2 %v4819_v60  ;;  %v4828_v60 = vld [vmem:[%s8873_s9 + $0x138] sm:$0xff] }
 0x3f6   : > { %3706 = vmatpush.msra.mxu2 %v4818_v50  ;;  %v4836_v50 = vld [vmem:[%s8873_s9 + $0x170] sm:$0xff] }
 0x3f8   : > { %3707 = vmatpush.msra.mxu2 %v4817_v28  ;;  %v4847_v28 = vld [vmem:[%s8873_s9 + $0x1c8] sm:$0xff] }
 0x3fa   : > { %3708 = vmatpush.msra.mxu2 %v4816_v10  ;;  %v4867_v10 = vld [vmem:[%s8873_s9 + $0x260] sm:$0xff] }
 0x413   : > { %v3150_v1 = vpop.f32.mrf.mxu1 }
 0x419   : > { %v3219_v56 = vpop.f32.mrf.mxu2 }
 0x41b   : > { %v3153_v63 = vpop.f32.mrf.mxu1 }
 0x421   : > { %v3222_v4 = vpop.f32.mrf.mxu2 }
 0x430   : > { %v3196_v47 = vpop.f32.mrf.mxu0 }
 0x438   : > { %v3199_v33 = vpop.f32.mrf.mxu0 }
 0x440   : > { %v3242_v15 = vpop.f32.mrf.mxu1 }
 0x441   : > { %v3377_v3 = vpop.f32.mrf.mxu0  ;;  %v3243_v8 = vadd.f32 %v3242_v15, %v3219_v56  ;;  %v3617_v56 = vld [vmem:[%s8873_s9 + $0x48] sm:$0xff]  ;;  %v4813_v15 = vld [vmem:[%s8873_s9 + $0xc0] sm:$0xff] }
 0x442   : > { %3638 = vmatpush.msra.mxu0 %v3617_v56 }
 0x446   : > { %v3173_v27 = vpop.f32.mrf.mxu3 }
 0x447   : > { %v3400_v17 = vpop.f32.mrf.mxu2  ;;  %v3174_v7 = vadd.f32 %v3173_v27, %v3150_v1  ;;  %v4815_v1 = vld [vmem:[%s8873_s9 + $0xd0] sm:$0xff]  ;;  %v3616_v27 = vld [vmem:[%s8873_s9 + $0x40] sm:$0xff] }
 0x448   : > { %v3401_v45 = vadd.f32 %v3400_v17, %v3377_v3  ;;  %3709 = vmatpush.msra.mxu2 %v4815_v1  ;;  %v4845_v3 = vld [vmem:[%s8873_s9 + $0x1b8] sm:$0xff]  ;;  %3639 = vmatpush.msra.mxu0 %v3616_v27  ;;  %v4811_v17 = vld [vmem:[%s8873_s9 + $0xb0] sm:$0xff]  ;;  %v4830_v1 = vld [vmem:[%s8873_s9 + $0x140] sm:$0xff] }
 0x449   : > { %v3245_v37 = vpop.f32.mrf.mxu1  ;;  %v3380_v46 = vpop.f32.mrf.mxu0  ;;  %v3197_v58 = vadd.f32 %v3196_v47, %v3174_v7  ;;  %v3626_v47 = vld [vmem:[%s8873_s9 + $0x90] sm:$0xff]  ;;  %v4843_v7 = vld [vmem:[%s8873_s9 + $0x1a8] sm:$0xff]  ;;  %v4891_v27 = vld [vmem:[%s8873_s9 + $0x318] sm:$0xff] }
 0x44a   : > { %v3246_v14 = vadd.f32 %v3245_v37, %v3222_v4  ;;  %v3624_v4 = vld [vmem:[%s8873_s9 + $0x80] sm:$0xff] }
 0x44b   : > { %v4809_v37 = vld [vmem:[%s8873_s9 + $0xa0] sm:$0xff] }
 0x44e   : > { %v3176_v53 = vpop.f32.mrf.mxu3 }
 0x44f   : > { %v3177_v43 = vadd.f32 %v3176_v53, %v3153_v63  ;;  %v4814_v63 = vld [vmem:[%s8873_s9 + $0xc8] sm:$0xff]  ;;  %v4812_v53 = vld [vmem:[%s8873_s9 + $0xb8] sm:$0xff] }
 0x450   : > { %v3403_v32 = vpop.f32.mrf.mxu2  ;;  %3710 = vmatpush.msra.mxu2 %v4814_v63 }
 0x451   : > { %v3446_v13 = vpop.f32.mrf.mxu1  ;;  %v3469_v44 = vpop.f32.mrf.mxu0  ;;  %v3404_v36 = vadd.f32 %v3403_v32, %v3380_v46  ;;  %v3200_v55 = vadd.f32 %v3199_v33, %v3177_v43  ;;  %v3625_v33 = vld [vmem:[%s8873_s9 + $0x88] sm:$0xff]  ;;  %v4887_v46 = vld [vmem:[%s8873_s9 + $0x2f8] sm:$0xff]  ;;  %v4886_v32 = vld [vmem:[%s8873_s9 + $0x2f0] sm:$0xff] }
 0x452   : > { %v3470_v6 = vadd.f32 %v3469_v44, %v3446_v13  ;;  %3711 = vmatpush.msra.mxu2 %v4813_v15  ;;  %v4884_v13 = vld [vmem:[%s8873_s9 + $0x2e0] sm:$0xff]  ;;  %v4883_v44 = vld [vmem:[%s8873_s9 + $0x2d8] sm:$0xff]  ;;  %v4881_v43 = vld [vmem:[%s8873_s9 + $0x2c8] sm:$0xff] }
 0x453   : > { %v4890_v15 = vld [vmem:[%s8873_s9 + $0x310] sm:$0xff] }
 0x454   : > { %3712 = vmatpush.msra.mxu2 %v4812_v53  ;;  %v4889_v53 = vld [vmem:[%s8873_s9 + $0x308] sm:$0xff] }
 0x456   : > { %v3265_v22 = vpop.f32.mrf.mxu3  ;;  %3713 = vmatpush.msra.mxu2 %v4811_v17 }
 0x457   : > { %v3266_v51 = vadd.f32 %v3265_v22, %v3243_v8  ;;  %v4810_v22 = vld [vmem:[%s8873_s9 + $0xa8] sm:$0xff]  ;;  %v4875_v8 = vld [vmem:[%s8873_s9 + $0x298] sm:$0xff] }
 0x458   : > { %v3492_v0 = vpop.f32.mrf.mxu2  ;;  %3714 = vmatpush.msra.mxu2 %v4810_v22  ;;  %v4888_v22 = vld [vmem:[%s8873_s9 + $0x300] sm:$0xff] }
 0x459   : > { %v3449_v18 = vpop.f32.mrf.mxu1  ;;  %v3472_v54 = vpop.f32.mrf.mxu0  ;;  %v3493_v61 = vadd.f32 %v3492_v0, %v3470_v6  ;;  %v4882_v0 = vld [vmem:[%s8873_s9 + $0x2d0] sm:$0xff]  ;;  %v4837_v6 = vld [vmem:[%s8873_s9 + $0x178] sm:$0xff] }
 0x45a   : > { %v3473_v35 = vadd.f32 %v3472_v54, %v3449_v18  ;;  %3715 = vmatpush.msra.mxu2 %v4809_v37  ;;  %v4879_v18 = vld [vmem:[%s8873_s9 + $0x2b8] sm:$0xff]  ;;  %v3610_v54 = vld [vmem:[%s8873_s9 + $0x10] sm:$0xff] }
 0x45b   : > { %v3499_v30 = vmax.f32 %v3266_v51, %v3493_v61  ;;  %v4870_v51 = vld [vmem:[%s8873_s9 + $0x278] sm:$0xff]  ;;  %v4835_v61 = vld [vmem:[%s8873_s9 + $0x168] sm:$0xff] }
 0x45c   : > { %3901 = vmatpush.msrb.mxu2 %v4887_v46 }
 0x45e   : > { %v3268_v40 = vpop.f32.mrf.mxu3  ;;  %3902 = vmatpush.msrb.mxu2 %v4886_v32 }
 0x45f   : > { %v3269_v2 = vadd.f32 %v3268_v40, %v3246_v14  ;;  %v4885_v40 = vld [vmem:[%s8873_s9 + $0x2e8] sm:$0xff]  ;;  %v4841_v14 = vld [vmem:[%s8873_s9 + $0x198] sm:$0xff] }
 0x460   : > { %v3495_v11 = vpop.f32.mrf.mxu2  ;;  %3903 = vmatpush.msrb.mxu2 %v4885_v40 }
 0x461   : > { %v3496_v34 = vadd.f32 %v3495_v11, %v3473_v35  ;;  %v4876_v11 = vld [vmem:[%s8873_s9 + $0x2a0] sm:$0xff]  ;;  %v4827_v35 = vld [vmem:[%s8873_s9 + $0x130] sm:$0xff] }
 0x462   : > { %3904 = vmatpush.msrb.mxu2 %v4884_v13 }
 0x463   : > { %v3501_v41 = vmax.f32 %v3269_v2, %v3496_v34  ;;  %v4825_v2 = vld [vmem:[%s8873_s9 + $0x120] sm:$0xff]  ;;  %v4873_v34 = vld [vmem:[%s8873_s9 + $0x288] sm:$0xff] }
 0x464   : > { %3905 = vmatpush.msrb.mxu2 %v4883_v44  ;;  %v4866_v44 = vld [vmem:[%s8873_s9 + $0x258] sm:$0xff] }
 0x466   : > { %v3423_v21 = vpop.f32.mrf.mxu3  ;;  %3906 = vmatpush.msrb.mxu2 %v4882_v0  ;;  %v4865_v0 = vld [vmem:[%s8873_s9 + $0x250] sm:$0xff] }
 0x467   : > { %v3424_v59 = vadd.f32 %v3423_v21, %v3401_v45  ;;  %v3615_v21 = vld [vmem:[%s8873_s9 + $0x38] sm:$0xff]  ;;  %v4878_v45 = vld [vmem:[%s8873_s9 + $0x2b0] sm:$0xff] }
 0x468   : > { %3640 = vmatpush.msra.mxu0 %v3615_v21  ;;  %3907 = vmatpush.msrb.mxu2 %v4881_v43  ;;  %v4864_v21 = vld [vmem:[%s8873_s9 + $0x248] sm:$0xff] }
 0x469   : > { %v3498_v25 = vmax.f32 %v3197_v58, %v3424_v59  ;;  %v4838_v59 = vld [vmem:[%s8873_s9 + $0x180] sm:$0xff]  ;;  %v4874_v58 = vld [vmem:[%s8873_s9 + $0x290] sm:$0xff] }
 0x46a   : > { %3641 = vmatpush.msra.mxu0 %v3614_v20  ;;  %3908 = vmatpush.msrb.mxu2 %v4880_v62  ;;  %v4861_v62 = vld [vmem:[%s8873_s9 + $0x230] sm:$0xff] }
 0x46c   : > { %3642 = vmatpush.msra.mxu0 %v3613_v49  ;;  %3909 = vmatpush.msrb.mxu2 %v4879_v18  ;;  %v4863_v49 = vld [vmem:[%s8873_s9 + $0x240] sm:$0xff]  ;;  %v4858_v18 = vld [vmem:[%s8873_s9 + $0x218] sm:$0xff] }
 0x46e   : > { %v3426_v12 = vpop.f32.mrf.mxu3  ;;  %3643 = vmatpush.msra.mxu0 %v3612_v57  ;;  %3910 = vmatpush.msrb.mxu2 %v4878_v45  ;;  %v4854_v45 = vld [vmem:[%s8873_s9 + $0x1f8] sm:$0xff] }
 0x46f   : > { %v3427_v48 = vadd.f32 %v3426_v12, %v3404_v36  ;;  %v3608_v36 = vld [vmem:[%s8873_s9] sm:$0xff]  ;;  %v4840_v12 = vld [vmem:[%s8873_s9 + $0x190] sm:$0xff] }
 0x470   : > { %3644 = vmatpush.msra.mxu0 %v3611_v31  ;;  %v4862_v31 = vld [vmem:[%s8873_s9 + $0x238] sm:$0xff] }
 0x471   : > { %v3500_v26 = vmax.f32 %v3200_v55, %v3427_v48  ;;  %v4877_v55 = vld [vmem:[%s8873_s9 + $0x2a8] sm:$0xff] }
 0x472   : > { %3645 = vmatpush.msra.mxu0 %v3610_v54  ;;  %3911 = vmatpush.msrb.mxu2 %v4877_v55  ;;  %v4826_v48 = vld [vmem:[%s8873_s9 + $0x128] sm:$0xff]  ;;  %v4857_v54 = vld [vmem:[%s8873_s9 + $0x210] sm:$0xff]  ;;  %v4851_v55 = vld [vmem:[%s8873_s9 + $0x1e0] sm:$0xff] }
 0x473   : > { %4796 = vmatpush.msk.msrb.mxu3 %vm3507_vm13, %v3500_v26  ;;  %4801 = vmatpush.msk.msra.mxu1 %vm3507_vm13, %v3500_v26  ;;  %v4872_v26 = vld [vmem:[%s8873_s9 + $0x280] sm:$0xff] }
 0x474   : > { %3646 = vmatpush.msra.mxu0 %v3609_v24  ;;  %3912 = vmatpush.msrb.mxu2 %v4876_v11  ;;  %v4855_v24 = vld [vmem:[%s8873_s9 + $0x200] sm:$0xff] }
 0x475   : > { %3529 = vmatpush.msrb.mxu3 %v3498_v25  ;;  %3574 = vmatpush.msra.mxu1 %v3498_v25  ;;  %v4848_v25 = vld [vmem:[%s8873_s9 + $0x1d0] sm:$0xff] }
 0x476   : > { %4797 = vmatmul.msk.f32.vlgmr.msrb.gmra.mxu3 %vm3503_vm14, %v3502_v42  ;;  %4802 = vmatmul.msk.f32.vlgmr.msra.gmra.mxu1 %vm3503_vm14, %v4800_v16 }
 0x477   : > { %4798 = vmatpush.msk.msra.mxu3 %vm3507_vm13, %v3501_v41  ;;  %3664 = vmatpush.msrb.mxu1 %v3627_v5  ;;  %v4833_v5 = vld [vmem:[%s8873_s9 + $0x158] sm:$0xff] }
 0x478   : > { %3647 = vmatpush.msra.mxu0 %v3608_v36  ;;  %3913 = vmatpush.msrb.mxu2 %v4875_v8  ;;  %v4853_v36 = vld [vmem:[%s8873_s9 + $0x1f0] sm:$0xff] }
 0x479   : > { %3549 = vmatpush.msra.mxu3 %v3499_v30  ;;  %3665 = vmatpush.msrb.mxu1 %v3626_v47  ;;  %v4831_v47 = vld [vmem:[%s8873_s9 + $0x148] sm:$0xff] }
 0x47a   : > { %3914 = vmatpush.msrb.mxu2 %v4874_v58  ;;  %3866 = vmatpush.msrb.mxu0 %v4870_v51  ;;  %v3607_v58 = vld [vmem:[%s8874_s10] sm:$0x1] }
 0x47b   : > { %4803 = vmatpush.msk.msrb.mxu3 %vm3507_vm13, %v3501_v41  ;;  %3666 = vmatpush.msrb.mxu1 %v3625_v33  ;;  %v4868_v41 = vld [vmem:[%s8873_s9 + $0x268] sm:$0xff] }
 0x47c   : > { %3915 = vmatpush.msrb.mxu2 %v4873_v34 }
 0x47d   : > { %3594 = vmatpush.msrb.mxu3 %v3499_v30  ;;  %3667 = vmatpush.msrb.mxu1 %v3624_v4  ;;  %v4832_v30 = vld [vmem:[%s8873_s9 + $0x150] sm:$0xff] }
 0x47e   : > { %4799 = vmatmul.msk.f32.vlgmr.msra.gmra.mxu3 %vm3503_vm14, %v3502_v42  ;;  %v4869_v42 = vld [vmem:[%s8873_s9 + $0x270] sm:$0xff]  ;;  %3916 = vmatpush.msrb.mxu2 %v4872_v26 }
 0x47f   : > { %3767 = vmatpush.msra.mxu1 %v4845_v3  ;;  %3732 = vmatpush.msra.mxu3 %v4828_v60 }
 0x480   : > { %3867 = vmatpush.msrb.mxu0 %v4869_v42 }
 0x481   : > { %3768 = vmatpush.msra.mxu1 %v4844_v29  ;;  %3733 = vmatpush.msra.mxu3 %v4827_v35  ;;  %v4860_v29 = vld [vmem:[%s8873_s9 + $0x228] sm:$0xff] }
 0x482   : > { %3868 = vmatpush.msrb.mxu0 %v4868_v41 }
 0x483   : > { %3769 = vmatpush.msra.mxu1 %v4843_v7  ;;  %3734 = vmatpush.msra.mxu3 %v4826_v48  ;;  %v4859_v7 = vld [vmem:[%s8873_s9 + $0x220] sm:$0xff] }
 0x484   : > { %3869 = vmatpush.msrb.mxu0 %v4867_v10 }
 0x485   : > { %3770 = vmatpush.msra.mxu1 %v4842_v9  ;;  %3735 = vmatpush.msra.mxu3 %v4825_v2  ;;  %v4856_v9 = vld [vmem:[%s8873_s9 + $0x208] sm:$0xff] }
 0x486   : > { %4804 = vmatmul.msk.f32.vlgmr.msrb.gmra.mxu3 %vm3503_vm14, %v4800_v16  ;;  %v4834_v16 = vld [vmem:[%s8873_s9 + $0x160] sm:$0xff] }
 0x487   : > { %3771 = vmatpush.msra.mxu1 %v4841_v14  ;;  %3799 = vmatpush.msrb.mxu3 %v4849_v23  ;;  %v4852_v14 = vld [vmem:[%s8873_s9 + $0x1e8] sm:$0xff] }
 0x489   : > { %3772 = vmatpush.msra.mxu1 %v4840_v12  ;;  %3800 = vmatpush.msrb.mxu3 %v4848_v25 }
 0x48b   : > { %3773 = vmatpush.msra.mxu1 %v4839_v39  ;;  %3801 = vmatpush.msrb.mxu3 %v4847_v28 }
 0x48d   : > { %3774 = vmatpush.msra.mxu1 %v4838_v59  ;;  %3802 = vmatpush.msrb.mxu3 %v4846_v52 }
 0x48f   : > { %3775 = vmatpush.msra.mxu1 %v4837_v6 }
 0x491   : > { %3776 = vmatpush.msra.mxu1 %v4836_v50 }
 0x493   : > { %3777 = vmatpush.msra.mxu1 %v4835_v61 }
 0x495   : > { %3778 = vmatpush.msra.mxu1 %v4834_v16 }
 0x497   : > { %3779 = vmatpush.msra.mxu1 %v4833_v5 }
 0x499   : > { %3780 = vmatpush.msra.mxu1 %v4832_v30 }
 0x49b   : > { %3781 = vmatpush.msra.mxu1 %v4831_v47 }
 0x49d   : > { %3782 = vmatpush.msra.mxu1 %v4830_v1 }
 0x4f3   : > { %v3576_v56 = vpop.f32.mrf.mxu1 }
 0x4f9   : > { %v3531_v33 = vpop.f32.mrf.mxu3 }
 0x4fa   : > { %v3599_v63 = vmax.f32 %v3531_v33, %v3576_v56 }
 0x4fc   : > { %vm3601_vm15 = vcmp.gt.f32.partialorder %v3599_v63, 1.0 }
 0x4fd   : > { %v8718_v4 = vsel %vm3601_vm15, 1.0, %v5039_v19  ;;  %4807 = vmatmul.msk.f32.vlgmr.msra.gmra.mxu0 %vm3601_vm15, %v5040_v38 }
 0x4fe   : > { %v3695_v3 = vrot.slane %v8718_v4, 1  ;;  %3933 = vmatpush.msra.mxu0 %v4891_v27  ;;  %v3896_v38 = vrot.slane %v8718_v4, 4  ;;  %v3762_v20 = vrot.slane %v8718_v4, 2  ;;  %v3829_v11 = vrot.slane %v8718_v4, 3 }
 0x500   : > { %3716 = vmatmul.f32.vlgmr.msra.gmra.mxu2 %v3695_v3  ;;  %3934 = vmatpush.msra.mxu0 %v4890_v15 }
 0x501   : > { %v3551_v17 = vpop.f32.mrf.mxu3 }
 0x502   : > { %3935 = vmatpush.msra.mxu0 %v4889_v53 }
 0x504   : > { %3936 = vmatpush.msra.mxu0 %v4888_v22 }
 0x508   : > { %3917 = vmatmul.f32.vlgmr.msrb.gmra.mxu2 %v3896_v38 }
 0x509   : > { %v3596_v37 = vpop.f32.mrf.mxu3 }
 0x50a   : > { %v3600_v46 = vmax.f32 %v3551_v17, %v3596_v37 }
 0x50c   : > { %vm3602_vm1 = vcmp.gt.f32.partialorder %v3600_v46, 1.0 }
 0x50d   : > { %v4806_v32 = vsel %vm3602_vm1, 1.0, %v5039_v19 }
 0x50e   : > { %v3696_v40 = vrot.slane %v4806_v32, 1  ;;  %v3830_v13 = vrot.slane %v4806_v32, 3  ;;  %4808 = vmatmul.msk.f32.vlgmr.msrb.gmra.mxu1 %vm3628_vm0, %v4806_v32  ;;  %v3763_v57 = vrot.slane %v4806_v32, 2  ;;  %v3897_v43 = vrot.slane %v4806_v32, 4 }
 0x510   : > { %4829 = vmatmul.msk.f32.vlgmr.msra.gmra.mxu3 %vm3628_vm0, %v3696_v40  ;;  %4871 = vmatmul.msk.f32.vlgmr.msrb.gmra.mxu0 %vm3628_vm0, %v3830_v13 }
 0x511   : > { %3834 = vmatpush.msra.mxu3 %v4866_v44 }
 0x513   : > { %3835 = vmatpush.msra.mxu3 %v4865_v0 }
 0x515   : > { %3836 = vmatpush.msra.mxu3 %v4864_v21 }
 0x516   : > { %3783 = vmatmul.f32.vlgmr.msra.gmra.mxu1 %v3762_v20 }
 0x517   : > { %3837 = vmatpush.msra.mxu3 %v4863_v49 }
 0x518   : > { %4850 = vmatmul.msk.f32.vlgmr.msrb.gmra.mxu3 %vm3628_vm0, %v3763_v57  ;;  %4892 = vmatmul.msk.f32.vlgmr.msra.gmra.mxu0 %vm3628_vm0, %v3897_v43 }
 0x519   : > { %3838 = vmatpush.msra.mxu3 %v4862_v31 }
 0x51b   : > { %3839 = vmatpush.msra.mxu3 %v4861_v62 }
 0x51d   : > { %3840 = vmatpush.msra.mxu3 %v4860_v29 }
 0x51f   : > { %3841 = vmatpush.msra.mxu3 %v4859_v7 }
 0x521   : > { %3842 = vmatpush.msra.mxu3 %v4858_v18 }
 0x523   : > { %3843 = vmatpush.msra.mxu3 %v4857_v54 }
 0x525   : > { %3844 = vmatpush.msra.mxu3 %v4856_v9 }
 0x527   : > { %3845 = vmatpush.msra.mxu3 %v4855_v24 }
 0x529   : > { %3846 = vmatpush.msra.mxu3 %v4854_v45 }
 0x52b   : > { %3847 = vmatpush.msra.mxu3 %v4853_v36 }
 0x52d   : > { %3848 = vmatpush.msra.mxu3 %v4852_v14 }
 0x52f   : > { %3849 = vmatpush.msra.mxu3 %v4851_v55 }
 0x530   : > { %3850 = vmatmul.f32.vlgmr.msra.gmra.mxu3 %v3829_v11 }
 0x57a   : > { %v3649_v12 = vpop.f32.mrf.mxu0 }
 0x583   : > { %v3717_v59 = vpop.f32.mrf.mxu2 }
 0x58b   : > { %v3669_v39 = vpop.f32.mrf.mxu1  ;;  %v3918_v42 = vpop.f32.mrf.mxu2 }
 0x58c   : > { %v3670_v8 = vadd.f32 %v3669_v39, %v3649_v12 }
 0x58d   : > { %v3871_v35 = vpop.f32.mrf.mxu0 }
 0x58e   : > { %v3672_v34 = vadd.f32 %v3670_v8, %v3607_v58 }
 0x593   : > { %v3737_v60 = vpop.f32.mrf.mxu3  ;;  %v3784_v2 = vpop.f32.mrf.mxu1 }
 0x594   : > { %v3738_v6 = vadd.f32 %v3737_v60, %v3717_v59 }
 0x595   : > { %v3938_v23 = vpop.f32.mrf.mxu0 }
 0x596   : > { %v3740_v50 = vadd.f32 %v3738_v6, %v3672_v34  ;;  %v3939_v16 = vadd.f32 %v3938_v23, %v3918_v42 }
 0x59b   : > { %v3804_v48 = vpop.f32.mrf.mxu3 }
 0x59c   : > { %v3805_v26 = vadd.f32 %v3804_v48, %v3784_v2 }
 0x59e   : > { %v3807_v61 = vadd.f32 %v3805_v26, %v3740_v50 }
 0x5b3   : > { %v3851_v51 = vpop.f32.mrf.mxu3 }
 0x5b4   : > { %v3872_v25 = vadd.f32 %v3871_v35, %v3851_v51 }
 0x5b6   : > { %v3874_v28 = vadd.f32 %v3872_v25, %v3807_v61 }
 0x5b8   : > { %v3941_v41 = vadd.f32 %v3939_v16, %v3874_v28 }
 0x5ba   : > { %vm3944_vm3 = vcmp.gt.f32.partialorder %v3941_v41, 1.0  ;;  %3943 = vst.msk [vmem:[%s415_s15] sm:$0x1] %vm3942_vm2, %v3941_v41 }
 0x5bb   : > { %v4893_v5 = vsel %vm3944_vm3, 1.0, %v5039_v19 }
 0x5bc   : > { %4970 = shalt.err (!%p4967_p3)
}
 0x5bd   : > { %4898 = dma.vmem_to_hbm [thread:$0]  (%p5144_p5), %s3977_s30, 16, %s3979_s16, %s3953_s25   ;;  %3947 = vst.msk [vmem:[%s409_s20] sm:$0x1] %vm3942_vm2, %v4893_v5 }
 0x5be   : > { %s3949_s15 = scalar_lea.sflag [#allocation3], %s8792_s27  ;;  %s4985_s23 = sshra.s32 %s3966_s19, 4  ;;  %s4986_s23 = int_to_ptr.hbm [resolvable:$true] %s4985_s23 }
 0x5bf   : > { %s4987_s18 = scalar_lea.hbm %s4986_s23, 1  ;;  %s4991_s26 = scalar_lea.hbm %s8875_s11, 2 }
 0x5c0   : > { %p4988_p4 = scmp.ne.s32.totalorder %s4986_s23, %s4987_s18  ;;  %p4992_p9 = scmp.lt.s32.totalorder %s4986_s23, %s8875_s11 }
 0x5c1   : > { %p4993_p10 = scmp.lt.s32.totalorder %s4991_s26, %s4987_s18 }
 0x5c2   : > { %p4989_p7 = pnand %p4988_p4, %p5144_p5 }
 0x5c3   : > { %p4994_p11 = por %p4993_p10, %p4992_p9 }
 0x5c4   : > { %p4990_p8 = pneg %p4989_p7 }
 0x5c6   : > { %p4995_p12 = pnand %p4994_p11, %p4990_p8 }
 0x5c8   : > { %4998 = shalt.err (!%p4995_p12)
}
 0x5c9   : > { %4897 = dma.vmem_to_hbm [thread:$0]  (%p5144_p5), %s3964_s17, 16, %s3966_s19, %s3949_s15  }
 0x5ca PF: > { %p4908_p13 = scmp.ge.s32.totalorder %s5037_s24, 2  ;;  %s3990_s27 = sand.u32 1, %s5025_s21  }
 0x5cb   : > { %s3991_s30 = scalar_lea.sflag [#allocation3], %s3990_s27 }
 0x5cc   : > { %p4902_p0 = pnand %p4908_p13, %p5148_p6 }
 0x5ce   : > { %p4903_p1 = pneg %p4902_p0 }
 0x5d0   : > { %5016 = dma.done.wait (%p4903_p1), %s3991_s30, 16  }
 0x5d1   : > { %5018 = vsyncadd (%p4903_p1), %s3991_s30, 4294967280  ;;  %s4000_s16 = scalar_lea.sflag [#allocation5], %s3990_s27 }
 0x5d2   : > { %5020 = dma.done.wait (%p4903_p1), %s4000_s16, 16  }
 0x5d3   : > { %5022 = vsyncadd (%p4903_p1), %s4000_s16, 4294967280  ;;  %s8893_s24 = sld [smem:[#allocation9_spill]]  ;;  %s8896_s21 = smov %s5029_s22 }
 0x5d4   : > { %s8894_s13 = sld [smem:[#allocation8_spill]] }
 0x5d5   : > { %s8895_s23 = sld [smem:[#allocation10_spill]] }
 0x5d9   : > { %p26_p5 = scmp.ge.s32.totalorder %s8893_s24, 4  }
 0x5da   : > { %s8897_s22 = smov %s8894_s13 }
 0x5db   :  { %28 = sbr.rel (!%p26_p5) target bundleno = 8 (0x8), region = 132 }
 0x5e0   :  { %4005 = vsyncpa [#allocation3], 1 }
 0x5e1   :  { %4007 = vsyncpa [#allocation3 + $0x1], 1 }
 0x5e2   :  { %4008 = vsyncpa [#allocation5], 1 }
 0x5e3   :  { %4010 = vsyncpa [#allocation5 + $0x1], 1 }

</bundles_post_ra>
